<compile_context>
chip_gen: v5e
topology: v5e:2x2
jax: 0.10.0
libtpu: 0.0.40
codegen_flags: <defaults>
</compile_context>

<pallas_src>
import jax
import jax.numpy as jnp
import numpy as np
from jax.experimental import pallas as pl
from jax.experimental.pallas import tpu as pltpu


# ------------------------------ Pallas kernel -------------------------------

def _mygcn_kernel(xs_ref, xv_ref, sadj_ref, vadj_ref,
                  w1t_ref, b1t_ref, w2t_ref, b2t_ref,
                  sel_ref, fw1s_ref, fw1v_ref, fb1_ref,
                  fw2_ref, fb2_ref, fw3_ref, fb3_ref, fw4_ref, fb4_ref,
                  o_ref):
    """Whole MyGCN forward for the (small) batch in a single invocation.

    Activations are kept transposed ((features, nodes)), so every op is a
    plain rank-2 MXU matmul or a VPU elementwise op — no in-kernel reshape,
    transpose, or unaligned slicing is ever needed.
    """
    B = xs_ref.shape[0]
    C = w2t_ref.shape[0]          # nclass

    w1t = w1t_ref[...]            # (nhid, nfeat)
    b1t = b1t_ref[...]            # (nhid, 1)
    w2t = w2t_ref[...]            # (nclass, nhid)
    b2t = b2t_ref[...]            # (nclass, 1)

    def gcn_branch_t(xt, adjt):
        # gc1 (reassociated):  h1^T = relu(W1^T @ (x^T @ adj^T) + b1^T)
        t = jnp.dot(xt, adjt, preferred_element_type=jnp.float32)          # (F, N)
        h1t = jnp.maximum(
            jnp.dot(w1t, t, preferred_element_type=jnp.float32) + b1t, 0.0)  # (H, N)
        # dropout: identity (inference / training=False)
        # gc2 (original order, nclass < nhid):  h2^T = (W2^T @ h1^T) @ adj^T + b2^T
        s2t = jnp.dot(w2t, h1t, preferred_element_type=jnp.float32)        # (C, N)
        return jnp.dot(s2t, adjt, preferred_element_type=jnp.float32) + b2t  # (C, N)

    # Batch-stacked transposed GCN outputs (aligned 16-row pieces, row b*C+c).
    h2s_all = jnp.concatenate(
        [gcn_branch_t(xs_ref[b], sadj_ref[b]) for b in range(B)], axis=0)   # (B*C, N1)
    h2v_all = jnp.concatenate(
        [gcn_branch_t(xv_ref[b], vadj_ref[b]) for b in range(B)], axis=0)   # (B*C, N2)

    # fc1 with torch.cat((solute, solvent), 1).view(B, -1) folded in:
    #   flat[b, n*C + c] = h2[b, n, c]
    #   fc1(flat)[b, :] = sum_c h2^T[b][c, :] @ fc1_w_packed[c]   (per branch)
    # sel_ref[c] is a constant (B, B*C) one-hot matrix selecting row b*C+c.
    n_fc1 = fw1s_ref.shape[-1]
    acc = jnp.zeros((B, n_fc1), jnp.float32)
    for c in range(C):
        sel_c = sel_ref[c]                                                   # (B, B*C)
        lhs_s = jnp.dot(sel_c, h2s_all, preferred_element_type=jnp.float32)  # (B, N1)
        lhs_v = jnp.dot(sel_c, h2v_all, preferred_element_type=jnp.float32)  # (B, N2)
        acc = acc + jnp.dot(lhs_s, fw1s_ref[c],
                            preferred_element_type=jnp.float32)
        acc = acc + jnp.dot(lhs_v, fw1v_ref[c],
                            preferred_element_type=jnp.float32)

    v = jnp.maximum(acc + fb1_ref[...], 0.0)
    v = jnp.maximum(
        jnp.dot(v, fw2_ref[...], preferred_element_type=jnp.float32)
        + fb2_ref[...], 0.0)
    v = jnp.maximum(
        jnp.dot(v, fw3_ref[...], preferred_element_type=jnp.float32)
        + fb3_ref[...], 0.0)
    out = (jnp.dot(v, fw4_ref[...], preferred_element_type=jnp.float32)
           + fb4_ref[...])
    o_ref[...] = out.astype(o_ref.dtype)


def mygcn_fused(xs_t, xv_t, sadj_t, vadj_t, w1t, b1t, w2t, b2t,
                sel, fw1s, fw1v, fb1, fw2, fb2, fw3, fb3, fw4, fb4):
    """Single fused pallas_call: GCN branches + flatten + fc1..fc4 -> (B, 1)."""
    B, F, N1 = xs_t.shape
    N2 = xv_t.shape[2]
    H = w1t.shape[0]
    C = w2t.shape[0]
    O1, O2, O3, O4 = fw1s.shape[-1], fw2.shape[-1], fw3.shape[-1], fw4.shape[-1]

    flops = 2 * B * (
        (F * N1 * N1 + H * F * N1 + C * H * N1 + C * N1 * N1)      # solute GCN
        + (F * N2 * N2 + H * F * N2 + C * H * N2 + C * N2 * N2)    # solvent GCN
        + C * (B * C) * (N1 + N2)                                  # selectors
        + (N1 + N2) * C * O1 + O1 * O2 + O2 * O3 + O3 * O4)        # fc chain
    args = (xs_t, xv_t, sadj_t, vadj_t, w1t, b1t, w2t, b2t,
            sel, fw1s, fw1v, fb1, fw2, fb2, fw3, fb3, fw4, fb4)
    bytes_accessed = 4 * (sum(int(a.size) for a in args) + B * O4)

    def full(a):  # whole-array VMEM block; index_map takes no args (no grid)
        return pl.BlockSpec(a.shape, lambda: (0,) * a.ndim)

    return pl.pallas_call(
        _mygcn_kernel,
        out_shape=jax.ShapeDtypeStruct((B, O4), xs_t.dtype),
        in_specs=[full(a) for a in args],
        out_specs=pl.BlockSpec((B, O4), lambda: (0, 0)),
        compiler_params=pltpu.CompilerParams(
            vmem_limit_bytes=32 * 1024 * 1024),
        cost_estimate=pl.CostEstimate(
            flops=flops, transcendentals=0, bytes_accessed=bytes_accessed),
    )(*args)


# ------------------------------- Model glue ---------------------------------

def init_params(key, nfeat, nhid, nclass, n_total):
    """Canonical (PyTorch-layout) parameters, uniform fan-in init."""
    def uni(k, shape, fan_in):
        bound = 1.0 / jnp.sqrt(jnp.float32(fan_in))
        return jax.random.uniform(k, shape, jnp.float32, -bound, bound)

    ks = jax.random.split(key, 12)
    flat = n_total * nclass
    return {
        # GraphConvolution weights (shared by the solute and solvent branches)
        "gc1_w": uni(ks[0], (nfeat, nhid), nfeat),
        "gc1_b": uni(ks[1], (1, nhid), nfeat),
        "gc2_w": uni(ks[2], (nhid, nclass), nhid),
        "gc2_b": uni(ks[3], (1, nclass), nhid),
        # FC layers stored as (in, out) so the forward does x @ W
        "fc1_w": uni(ks[4], (flat, 360), flat),
        "fc1_b": uni(ks[5], (1, 360), flat),
        "fc2_w": uni(ks[6], (360, 256), 360),
        "fc2_b": uni(ks[7], (1, 256), 360),
        "fc3_w": uni(ks[8], (256, 128), 256),
        "fc3_b": uni(ks[9], (1, 128), 256),
        "fc4_w": uni(ks[10], (128, 1), 128),
        "fc4_b": uni(ks[11], (1, 1), 128),
    }


def pack_params(params, n_solute, n_solvent):
    """One-time repack into kernel-friendly layouts (done at init, outside the
    forward): transposed GCN weights for the transposed-activation pipeline,
    and the fc1 weight grouped per class so the torch cat+view flatten maps to
    contiguous weight rows (fc1_ws[c, n, :] == fc1_w[n*C + c, :])."""
    nclass = params["gc2_w"].shape[1]
    n_fc1 = params["fc1_w"].shape[1]
    f1 = params["fc1_w"].reshape(n_solute + n_solvent, nclass, n_fc1)
    return {
        "gc1_wt": params["gc1_w"].T,                         # (nhid, nfeat)
        "gc1_bt": params["gc1_b"].reshape(-1, 1),            # (nhid, 1)
        "gc2_wt": params["gc2_w"].T,                         # (nclass, nhid)
        "gc2_bt": params["gc2_b"].reshape(-1, 1),            # (nclass, 1)
        "fc1_ws": jnp.transpose(f1[:n_solute], (1, 0, 2)),   # (C, N1, 360)
        "fc1_wv": jnp.transpose(f1[n_solute:], (1, 0, 2)),   # (C, N2, 360)
        "fc1_b": params["fc1_b"],
        "fc2_w": params["fc2_w"], "fc2_b": params["fc2_b"],
        "fc3_w": params["fc3_w"], "fc3_b": params["fc3_b"],
        "fc4_w": params["fc4_w"], "fc4_b": params["fc4_b"],
    }


@jax.jit
def my_gcn_forward(packed, solute, solvent, solute_adj, solvent_adj):
    B = solute.shape[0]
    C = packed["gc2_wt"].shape[0]

    # Inputs arrive in the PyTorch layout; pre-transposing these tiny arrays
    # here lets the kernel run the whole GCN with only rank-2 matmuls and zero
    # in-kernel transposes/reshapes.
    xs_t = jnp.swapaxes(solute, 1, 2)          # (B, nfeat, N1)
    xv_t = jnp.swapaxes(solvent, 1, 2)         # (B, nfeat, N2)
    sadj_t = jnp.swapaxes(solute_adj, 1, 2)    # (B, N1, N1) == adj^T
    vadj_t = jnp.swapaxes(solvent_adj, 1, 2)   # (B, N2, N2) == adj^T

    # Constant one-hot selectors: sel[c, b, b*C + c] = 1 (folded at compile).
    idx = jnp.arange(C)[:, None] + C * jnp.arange(B)[None, :]      # (C, B)
    sel = jax.nn.one_hot(idx, B * C, dtype=jnp.float32)            # (C, B, B*C)

    return mygcn_fused(
        xs_t, xv_t, sadj_t, vadj_t,
        packed["gc1_wt"], packed["gc1_bt"], packed["gc2_wt"], packed["gc2_bt"],
        sel, packed["fc1_ws"], packed["fc1_wv"], packed["fc1_b"],
        packed["fc2_w"], packed["fc2_b"], packed["fc3_w"], packed["fc3_b"],
        packed["fc4_w"], packed["fc4_b"])                           # (B, 1)


def reference_forward(params, solute, solvent, solute_adj, solvent_adj):
    """Pure-JAX reference (f32 HIGHEST precision) mirroring the PyTorch forward."""
    hp = jax.lax.Precision.HIGHEST

    def gcn(x, adj, w, b):
        sup = jnp.einsum("bnf,fh->bnh", x, w, precision=hp)
        return jnp.einsum("bnm,bmh->bnh", adj, sup, precision=hp) + b

    s = jnp.maximum(gcn(solute, solute_adj, params["gc1_w"], params["gc1_b"]),
                    0.0)
    s = gcn(s, solute_adj, params["gc2_w"], params["gc2_b"])
    v = jnp.maximum(gcn(solvent, solvent_adj, params["gc1_w"],
                        params["gc1_b"]), 0.0)
    v = gcn(v, solvent_adj, params["gc2_w"], params["gc2_b"])

    d = jnp.concatenate([s, v], axis=1).reshape(s.shape[0], -1)
    d = jnp.maximum(jnp.dot(d, params["fc1_w"], precision=hp)
                    + params["fc1_b"], 0.0)
    d = jnp.maximum(jnp.dot(d, params["fc2_w"], precision=hp)
                    + params["fc2_b"], 0.0)
    d = jnp.maximum(jnp.dot(d, params["fc3_w"], precision=hp)
                    + params["fc3_b"], 0.0)
    return jnp.dot(d, params["fc4_w"], precision=hp) + params["fc4_b"]


# ---------------------------------- Driver ----------------------------------

if __name__ == "__main__":
    B = 2          # batch
    N1 = 64        # solute nodes
    N2 = 64        # solvent nodes
    nfeat = 8
    nhid = 32
    nclass = 16    # matches the "* 16" in the original fc1 sizing

    key = jax.random.PRNGKey(0)
    k_p, k_s, k_v, k_sa, k_va = jax.random.split(key, 5)

    params = init_params(k_p, nfeat, nhid, nclass, N1 + N2)
    packed = pack_params(params, N1, N2)

    solute = jax.random.normal(k_s, (B, N1, nfeat), jnp.float32)
    solvent = jax.random.normal(k_v, (B, N2, nfeat), jnp.float32)
    # symmetric, self-loop, row-normalized adjacency matrices
    a1 = jax.random.uniform(k_sa, (B, N1, N1), jnp.float32)
    a1 = (a1 + jnp.swapaxes(a1, -1, -2)) * 0.5 + jnp.eye(N1)
    solute_adj = a1 / jnp.sum(a1, axis=-1, keepdims=True)
    a2 = jax.random.uniform(k_va, (B, N2, N2), jnp.float32)
    a2 = (a2 + jnp.swapaxes(a2, -1, -2)) * 0.5 + jnp.eye(N2)
    solvent_adj = a2 / jnp.sum(a2, axis=-1, keepdims=True)

    out = my_gcn_forward(packed, solute, solvent, solute_adj, solvent_adj)
    out = jax.block_until_ready(out)

    assert out.shape == (B, 1), out.shape
    assert bool(jnp.all(jnp.isfinite(out)))

    ref = jax.block_until_ready(
        reference_forward(params, solute, solvent, solute_adj, solvent_adj))
    np.testing.assert_allclose(np.asarray(out), np.asarray(ref),
                               rtol=1e-2, atol=1e-2)

    print("KERNEL_OK")
</pallas_src>

<mosaic_0001>
module attributes {stable_mosaic.version = 11 : i64} {
  func.func @_mygcn_kernel(%arg0: memref<2x8x64xf32, #tpu.memory_space<vmem>>, %arg1: memref<2x8x64xf32, #tpu.memory_space<vmem>>, %arg2: memref<2x64x64xf32, #tpu.memory_space<vmem>>, %arg3: memref<2x64x64xf32, #tpu.memory_space<vmem>>, %arg4: memref<32x8xf32, #tpu.memory_space<vmem>>, %arg5: memref<32x1xf32, #tpu.memory_space<vmem>>, %arg6: memref<16x32xf32, #tpu.memory_space<vmem>>, %arg7: memref<16x1xf32, #tpu.memory_space<vmem>>, %arg8: memref<16x2x32xf32, #tpu.memory_space<vmem>>, %arg9: memref<16x64x360xf32, #tpu.memory_space<vmem>>, %arg10: memref<16x64x360xf32, #tpu.memory_space<vmem>>, %arg11: memref<1x360xf32, #tpu.memory_space<vmem>>, %arg12: memref<360x256xf32, #tpu.memory_space<vmem>>, %arg13: memref<1x256xf32, #tpu.memory_space<vmem>>, %arg14: memref<256x128xf32, #tpu.memory_space<vmem>>, %arg15: memref<1x128xf32, #tpu.memory_space<vmem>>, %arg16: memref<128x1xf32, #tpu.memory_space<vmem>>, %arg17: memref<1x1xf32, #tpu.memory_space<vmem>>, %arg18: memref<2x1xf32, #tpu.memory_space<vmem>>) attributes {dimension_semantics = [], scalar_prefetch = 0 : i64, scratch_operands = 0 : i64, tpu.core_type = #tpu.core_type<tc>} {
    %c0 = arith.constant 0 : index
    %c0_0 = arith.constant 0 : index
    %0 = vector.load %arg4[%c0, %c0_0] : memref<32x8xf32, #tpu.memory_space<vmem>>, vector<32x8xf32>
    %c0_1 = arith.constant 0 : index
    %c0_2 = arith.constant 0 : index
    %1 = vector.load %arg5[%c0_1, %c0_2] : memref<32x1xf32, #tpu.memory_space<vmem>>, vector<32x1xf32>
    %c0_3 = arith.constant 0 : index
    %c0_4 = arith.constant 0 : index
    %2 = vector.load %arg6[%c0_3, %c0_4] : memref<16x32xf32, #tpu.memory_space<vmem>>, vector<16x32xf32>
    %c0_5 = arith.constant 0 : index
    %c0_6 = arith.constant 0 : index
    %3 = vector.load %arg7[%c0_5, %c0_6] : memref<16x1xf32, #tpu.memory_space<vmem>>, vector<16x1xf32>
    %c0_7 = arith.constant 0 : index
    %c0_8 = arith.constant 0 : index
    %c0_9 = arith.constant 0 : index
    %4 = vector.load %arg0[%c0_7, %c0_8, %c0_9] : memref<2x8x64xf32, #tpu.memory_space<vmem>>, vector<1x8x64xf32>
    %5 = vector.shape_cast %4 : vector<1x8x64xf32> to vector<8x64xf32>
    %c0_10 = arith.constant 0 : index
    %c0_11 = arith.constant 0 : index
    %c0_12 = arith.constant 0 : index
    %6 = vector.load %arg2[%c0_10, %c0_11, %c0_12] : memref<2x64x64xf32, #tpu.memory_space<vmem>>, vector<1x64x64xf32>
    %7 = vector.shape_cast %6 : vector<1x64x64xf32> to vector<64x64xf32>
    %cst = arith.constant dense<0.000000e+00> : vector<8x64xf32>
    %8 = tpu.matmul %5, %7, %cst {dimension_numbers = #tpu.dot_dimension_numbers<[1], [0], [0], [1], [0, 0, 1, 1], [], []>} : vector<8x64xf32>, vector<64x64xf32>, vector<8x64xf32> -> vector<8x64xf32>
    %cst_13 = arith.constant dense<0.000000e+00> : vector<32x64xf32>
    %9 = tpu.matmul %0, %8, %cst_13 {dimension_numbers = #tpu.dot_dimension_numbers<[1], [0], [0], [1], [0, 0, 1, 1], [], []>} : vector<32x8xf32>, vector<8x64xf32>, vector<32x64xf32> -> vector<32x64xf32>
    %10 = vector.broadcast %1 : vector<32x1xf32> to vector<32x64xf32>
    %11 = arith.addf %9, %10 : vector<32x64xf32>
    %cst_14 = arith.constant 0.000000e+00 : f32
    %12 = vector.broadcast %cst_14 : f32 to vector<32x64xf32>
    %13 = arith.maximumf %11, %12 : vector<32x64xf32>
    %cst_15 = arith.constant dense<0.000000e+00> : vector<16x64xf32>
    %14 = tpu.matmul %2, %13, %cst_15 {dimension_numbers = #tpu.dot_dimension_numbers<[1], [0], [0], [1], [0, 0, 1, 1], [], []>} : vector<16x32xf32>, vector<32x64xf32>, vector<16x64xf32> -> vector<16x64xf32>
    %cst_16 = arith.constant dense<0.000000e+00> : vector<16x64xf32>
    %15 = tpu.matmul %14, %7, %cst_16 {dimension_numbers = #tpu.dot_dimension_numbers<[1], [0], [0], [1], [0, 0, 1, 1], [], []>} : vector<16x64xf32>, vector<64x64xf32>, vector<16x64xf32> -> vector<16x64xf32>
    %16 = vector.broadcast %3 : vector<16x1xf32> to vector<16x64xf32>
    %17 = arith.addf %15, %16 : vector<16x64xf32>
    %c1 = arith.constant 1 : index
    %c0_17 = arith.constant 0 : index
    %c0_18 = arith.constant 0 : index
    %18 = vector.load %arg0[%c1, %c0_17, %c0_18] : memref<2x8x64xf32, #tpu.memory_space<vmem>>, vector<1x8x64xf32>
    %19 = vector.shape_cast %18 : vector<1x8x64xf32> to vector<8x64xf32>
    %c1_19 = arith.constant 1 : index
    %c0_20 = arith.constant 0 : index
    %c0_21 = arith.constant 0 : index
    %20 = vector.load %arg2[%c1_19, %c0_20, %c0_21] : memref<2x64x64xf32, #tpu.memory_space<vmem>>, vector<1x64x64xf32>
    %21 = vector.shape_cast %20 : vector<1x64x64xf32> to vector<64x64xf32>
    %cst_22 = arith.constant dense<0.000000e+00> : vector<8x64xf32>
    %22 = tpu.matmul %19, %21, %cst_22 {dimension_numbers = #tpu.dot_dimension_numbers<[1], [0], [0], [1], [0, 0, 1, 1], [], []>} : vector<8x64xf32>, vector<64x64xf32>, vector<8x64xf32> -> vector<8x64xf32>
    %cst_23 = arith.constant dense<0.000000e+00> : vector<32x64xf32>
    %23 = tpu.matmul %0, %22, %cst_23 {dimension_numbers = #tpu.dot_dimension_numbers<[1], [0], [0], [1], [0, 0, 1, 1], [], []>} : vector<32x8xf32>, vector<8x64xf32>, vector<32x64xf32> -> vector<32x64xf32>
    %24 = vector.broadcast %1 : vector<32x1xf32> to vector<32x64xf32>
    %25 = arith.addf %23, %24 : vector<32x64xf32>
    %cst_24 = arith.constant 0.000000e+00 : f32
    %26 = vector.broadcast %cst_24 : f32 to vector<32x64xf32>
    %27 = arith.maximumf %25, %26 : vector<32x64xf32>
    %cst_25 = arith.constant dense<0.000000e+00> : vector<16x64xf32>
    %28 = tpu.matmul %2, %27, %cst_25 {dimension_numbers = #tpu.dot_dimension_numbers<[1], [0], [0], [1], [0, 0, 1, 1], [], []>} : vector<16x32xf32>, vector<32x64xf32>, vector<16x64xf32> -> vector<16x64xf32>
    %cst_26 = arith.constant dense<0.000000e+00> : vector<16x64xf32>
    %29 = tpu.matmul %28, %21, %cst_26 {dimension_numbers = #tpu.dot_dimension_numbers<[1], [0], [0], [1], [0, 0, 1, 1], [], []>} : vector<16x64xf32>, vector<64x64xf32>, vector<16x64xf32> -> vector<16x64xf32>
    %30 = vector.broadcast %3 : vector<16x1xf32> to vector<16x64xf32>
    %31 = arith.addf %29, %30 : vector<16x64xf32>
    %32 = tpu.concatenate %17, %31 in 0 : vector<16x64xf32>, vector<16x64xf32> -> vector<32x64xf32>
    %c0_27 = arith.constant 0 : index
    %c0_28 = arith.constant 0 : index
    %c0_29 = arith.constant 0 : index
    %33 = vector.load %arg1[%c0_27, %c0_28, %c0_29] : memref<2x8x64xf32, #tpu.memory_space<vmem>>, vector<1x8x64xf32>
    %34 = vector.shape_cast %33 : vector<1x8x64xf32> to vector<8x64xf32>
    %c0_30 = arith.constant 0 : index
    %c0_31 = arith.constant 0 : index
    %c0_32 = arith.constant 0 : index
    %35 = vector.load %arg3[%c0_30, %c0_31, %c0_32] : memref<2x64x64xf32, #tpu.memory_space<vmem>>, vector<1x64x64xf32>
    %36 = vector.shape_cast %35 : vector<1x64x64xf32> to vector<64x64xf32>
    %cst_33 = arith.constant dense<0.000000e+00> : vector<8x64xf32>
    %37 = tpu.matmul %34, %36, %cst_33 {dimension_numbers = #tpu.dot_dimension_numbers<[1], [0], [0], [1], [0, 0, 1, 1], [], []>} : vector<8x64xf32>, vector<64x64xf32>, vector<8x64xf32> -> vector<8x64xf32>
    %cst_34 = arith.constant dense<0.000000e+00> : vector<32x64xf32>
    %38 = tpu.matmul %0, %37, %cst_34 {dimension_numbers = #tpu.dot_dimension_numbers<[1], [0], [0], [1], [0, 0, 1, 1], [], []>} : vector<32x8xf32>, vector<8x64xf32>, vector<32x64xf32> -> vector<32x64xf32>
    %39 = vector.broadcast %1 : vector<32x1xf32> to vector<32x64xf32>
    %40 = arith.addf %38, %39 : vector<32x64xf32>
    %cst_35 = arith.constant 0.000000e+00 : f32
    %41 = vector.broadcast %cst_35 : f32 to vector<32x64xf32>
    %42 = arith.maximumf %40, %41 : vector<32x64xf32>
    %cst_36 = arith.constant dense<0.000000e+00> : vector<16x64xf32>
    %43 = tpu.matmul %2, %42, %cst_36 {dimension_numbers = #tpu.dot_dimension_numbers<[1], [0], [0], [1], [0, 0, 1, 1], [], []>} : vector<16x32xf32>, vector<32x64xf32>, vector<16x64xf32> -> vector<16x64xf32>
    %cst_37 = arith.constant dense<0.000000e+00> : vector<16x64xf32>
    %44 = tpu.matmul %43, %36, %cst_37 {dimension_numbers = #tpu.dot_dimension_numbers<[1], [0], [0], [1], [0, 0, 1, 1], [], []>} : vector<16x64xf32>, vector<64x64xf32>, vector<16x64xf32> -> vector<16x64xf32>
    %45 = vector.broadcast %3 : vector<16x1xf32> to vector<16x64xf32>
    %46 = arith.addf %44, %45 : vector<16x64xf32>
    %c1_38 = arith.constant 1 : index
    %c0_39 = arith.constant 0 : index
    %c0_40 = arith.constant 0 : index
    %47 = vector.load %arg1[%c1_38, %c0_39, %c0_40] : memref<2x8x64xf32, #tpu.memory_space<vmem>>, vector<1x8x64xf32>
    %48 = vector.shape_cast %47 : vector<1x8x64xf32> to vector<8x64xf32>
    %c1_41 = arith.constant 1 : index
    %c0_42 = arith.constant 0 : index
    %c0_43 = arith.constant 0 : index
    %49 = vector.load %arg3[%c1_41, %c0_42, %c0_43] : memref<2x64x64xf32, #tpu.memory_space<vmem>>, vector<1x64x64xf32>
    %50 = vector.shape_cast %49 : vector<1x64x64xf32> to vector<64x64xf32>
    %cst_44 = arith.constant dense<0.000000e+00> : vector<8x64xf32>
    %51 = tpu.matmul %48, %50, %cst_44 {dimension_numbers = #tpu.dot_dimension_numbers<[1], [0], [0], [1], [0, 0, 1, 1], [], []>} : vector<8x64xf32>, vector<64x64xf32>, vector<8x64xf32> -> vector<8x64xf32>
    %cst_45 = arith.constant dense<0.000000e+00> : vector<32x64xf32>
    %52 = tpu.matmul %0, %51, %cst_45 {dimension_numbers = #tpu.dot_dimension_numbers<[1], [0], [0], [1], [0, 0, 1, 1], [], []>} : vector<32x8xf32>, vector<8x64xf32>, vector<32x64xf32> -> vector<32x64xf32>
    %53 = vector.broadcast %1 : vector<32x1xf32> to vector<32x64xf32>
    %54 = arith.addf %52, %53 : vector<32x64xf32>
    %cst_46 = arith.constant 0.000000e+00 : f32
    %55 = vector.broadcast %cst_46 : f32 to vector<32x64xf32>
    %56 = arith.maximumf %54, %55 : vector<32x64xf32>
    %cst_47 = arith.constant dense<0.000000e+00> : vector<16x64xf32>
    %57 = tpu.matmul %2, %56, %cst_47 {dimension_numbers = #tpu.dot_dimension_numbers<[1], [0], [0], [1], [0, 0, 1, 1], [], []>} : vector<16x32xf32>, vector<32x64xf32>, vector<16x64xf32> -> vector<16x64xf32>
    %cst_48 = arith.constant dense<0.000000e+00> : vector<16x64xf32>
    %58 = tpu.matmul %57, %50, %cst_48 {dimension_numbers = #tpu.dot_dimension_numbers<[1], [0], [0], [1], [0, 0, 1, 1], [], []>} : vector<16x64xf32>, vector<64x64xf32>, vector<16x64xf32> -> vector<16x64xf32>
    %59 = vector.broadcast %3 : vector<16x1xf32> to vector<16x64xf32>
    %60 = arith.addf %58, %59 : vector<16x64xf32>
    %61 = tpu.concatenate %46, %60 in 0 : vector<16x64xf32>, vector<16x64xf32> -> vector<32x64xf32>
    %cst_49 = arith.constant 0.000000e+00 : f32
    %62 = vector.broadcast %cst_49 : f32 to vector<2x360xf32>
    %c0_50 = arith.constant 0 : index
    %c0_51 = arith.constant 0 : index
    %c0_52 = arith.constant 0 : index
    %63 = vector.load %arg8[%c0_50, %c0_51, %c0_52] : memref<16x2x32xf32, #tpu.memory_space<vmem>>, vector<1x2x32xf32>
    %64 = vector.shape_cast %63 : vector<1x2x32xf32> to vector<2x32xf32>
    %cst_53 = arith.constant dense<0.000000e+00> : vector<2x64xf32>
    %65 = tpu.matmul %64, %32, %cst_53 {dimension_numbers = #tpu.dot_dimension_numbers<[1], [0], [0], [1], [0, 0, 1, 1], [], []>} : vector<2x32xf32>, vector<32x64xf32>, vector<2x64xf32> -> vector<2x64xf32>
    %cst_54 = arith.constant dense<0.000000e+00> : vector<2x64xf32>
    %66 = tpu.matmul %64, %61, %cst_54 {dimension_numbers = #tpu.dot_dimension_numbers<[1], [0], [0], [1], [0, 0, 1, 1], [], []>} : vector<2x32xf32>, vector<32x64xf32>, vector<2x64xf32> -> vector<2x64xf32>
    %c0_55 = arith.constant 0 : index
    %c0_56 = arith.constant 0 : index
    %c0_57 = arith.constant 0 : index
    %67 = vector.load %arg9[%c0_55, %c0_56, %c0_57] : memref<16x64x360xf32, #tpu.memory_space<vmem>>, vector<1x64x360xf32>
    %68 = vector.shape_cast %67 : vector<1x64x360xf32> to vector<64x360xf32>
    %cst_58 = arith.constant dense<0.000000e+00> : vector<2x360xf32>
    %69 = tpu.matmul %65, %68, %cst_58 {dimension_numbers = #tpu.dot_dimension_numbers<[1], [0], [0], [1], [0, 0, 1, 1], [], []>} : vector<2x64xf32>, vector<64x360xf32>, vector<2x360xf32> -> vector<2x360xf32>
    %70 = arith.addf %62, %69 : vector<2x360xf32>
    %c0_59 = arith.constant 0 : index
    %c0_60 = arith.constant 0 : index
    %c0_61 = arith.constant 0 : index
    %71 = vector.load %arg10[%c0_59, %c0_60, %c0_61] : memref<16x64x360xf32, #tpu.memory_space<vmem>>, vector<1x64x360xf32>
    %72 = vector.shape_cast %71 : vector<1x64x360xf32> to vector<64x360xf32>
    %cst_62 = arith.constant dense<0.000000e+00> : vector<2x360xf32>
    %73 = tpu.matmul %66, %72, %cst_62 {dimension_numbers = #tpu.dot_dimension_numbers<[1], [0], [0], [1], [0, 0, 1, 1], [], []>} : vector<2x64xf32>, vector<64x360xf32>, vector<2x360xf32> -> vector<2x360xf32>
    %74 = arith.addf %70, %73 : vector<2x360xf32>
    %c1_63 = arith.constant 1 : index
    %c0_64 = arith.constant 0 : index
    %c0_65 = arith.constant 0 : index
    %75 = vector.load %arg8[%c1_63, %c0_64, %c0_65] : memref<16x2x32xf32, #tpu.memory_space<vmem>>, vector<1x2x32xf32>
    %76 = vector.shape_cast %75 : vector<1x2x32xf32> to vector<2x32xf32>
    %cst_66 = arith.constant dense<0.000000e+00> : vector<2x64xf32>
    %77 = tpu.matmul %76, %32, %cst_66 {dimension_numbers = #tpu.dot_dimension_numbers<[1], [0], [0], [1], [0, 0, 1, 1], [], []>} : vector<2x32xf32>, vector<32x64xf32>, vector<2x64xf32> -> vector<2x64xf32>
    %cst_67 = arith.constant dense<0.000000e+00> : vector<2x64xf32>
    %78 = tpu.matmul %76, %61, %cst_67 {dimension_numbers = #tpu.dot_dimension_numbers<[1], [0], [0], [1], [0, 0, 1, 1], [], []>} : vector<2x32xf32>, vector<32x64xf32>, vector<2x64xf32> -> vector<2x64xf32>
    %c1_68 = arith.constant 1 : index
    %c0_69 = arith.constant 0 : index
    %c0_70 = arith.constant 0 : index
    %79 = vector.load %arg9[%c1_68, %c0_69, %c0_70] : memref<16x64x360xf32, #tpu.memory_space<vmem>>, vector<1x64x360xf32>
    %80 = vector.shape_cast %79 : vector<1x64x360xf32> to vector<64x360xf32>
    %cst_71 = arith.constant dense<0.000000e+00> : vector<2x360xf32>
    %81 = tpu.matmul %77, %80, %cst_71 {dimension_numbers = #tpu.dot_dimension_numbers<[1], [0], [0], [1], [0, 0, 1, 1], [], []>} : vector<2x64xf32>, vector<64x360xf32>, vector<2x360xf32> -> vector<2x360xf32>
    %82 = arith.addf %74, %81 : vector<2x360xf32>
    %c1_72 = arith.constant 1 : index
    %c0_73 = arith.constant 0 : index
    %c0_74 = arith.constant 0 : index
    %83 = vector.load %arg10[%c1_72, %c0_73, %c0_74] : memref<16x64x360xf32, #tpu.memory_space<vmem>>, vector<1x64x360xf32>
    %84 = vector.shape_cast %83 : vector<1x64x360xf32> to vector<64x360xf32>
    %cst_75 = arith.constant dense<0.000000e+00> : vector<2x360xf32>
    %85 = tpu.matmul %78, %84, %cst_75 {dimension_numbers = #tpu.dot_dimension_numbers<[1], [0], [0], [1], [0, 0, 1, 1], [], []>} : vector<2x64xf32>, vector<64x360xf32>, vector<2x360xf32> -> vector<2x360xf32>
    %86 = arith.addf %82, %85 : vector<2x360xf32>
    %c2 = arith.constant 2 : index
    %c0_76 = arith.constant 0 : index
    %c0_77 = arith.constant 0 : index
    %87 = vector.load %arg8[%c2, %c0_76, %c0_77] : memref<16x2x32xf32, #tpu.memory_space<vmem>>, vector<1x2x32xf32>
    %88 = vector.shape_cast %87 : vector<1x2x32xf32> to vector<2x32xf32>
    %cst_78 = arith.constant dense<0.000000e+00> : vector<2x64xf32>
    %89 = tpu.matmul %88, %32, %cst_78 {dimension_numbers = #tpu.dot_dimension_numbers<[1], [0], [0], [1], [0, 0, 1, 1], [], []>} : vector<2x32xf32>, vector<32x64xf32>, vector<2x64xf32> -> vector<2x64xf32>
    %cst_79 = arith.constant dense<0.000000e+00> : vector<2x64xf32>
    %90 = tpu.matmul %88, %61, %cst_79 {dimension_numbers = #tpu.dot_dimension_numbers<[1], [0], [0], [1], [0, 0, 1, 1], [], []>} : vector<2x32xf32>, vector<32x64xf32>, vector<2x64xf32> -> vector<2x64xf32>
    %c2_80 = arith.constant 2 : index
    %c0_81 = arith.constant 0 : index
    %c0_82 = arith.constant 0 : index
    %91 = vector.load %arg9[%c2_80, %c0_81, %c0_82] : memref<16x64x360xf32, #tpu.memory_space<vmem>>, vector<1x64x360xf32>
    %92 = vector.shape_cast %91 : vector<1x64x360xf32> to vector<64x360xf32>
    %cst_83 = arith.constant dense<0.000000e+00> : vector<2x360xf32>
    %93 = tpu.matmul %89, %92, %cst_83 {dimension_numbers = #tpu.dot_dimension_numbers<[1], [0], [0], [1], [0, 0, 1, 1], [], []>} : vector<2x64xf32>, vector<64x360xf32>, vector<2x360xf32> -> vector<2x360xf32>
    %94 = arith.addf %86, %93 : vector<2x360xf32>
    %c2_84 = arith.constant 2 : index
    %c0_85 = arith.constant 0 : index
    %c0_86 = arith.constant 0 : index
    %95 = vector.load %arg10[%c2_84, %c0_85, %c0_86] : memref<16x64x360xf32, #tpu.memory_space<vmem>>, vector<1x64x360xf32>
    %96 = vector.shape_cast %95 : vector<1x64x360xf32> to vector<64x360xf32>
    %cst_87 = arith.constant dense<0.000000e+00> : vector<2x360xf32>
    %97 = tpu.matmul %90, %96, %cst_87 {dimension_numbers = #tpu.dot_dimension_numbers<[1], [0], [0], [1], [0, 0, 1, 1], [], []>} : vector<2x64xf32>, vector<64x360xf32>, vector<2x360xf32> -> vector<2x360xf32>
    %98 = arith.addf %94, %97 : vector<2x360xf32>
    %c3 = arith.constant 3 : index
    %c0_88 = arith.constant 0 : index
    %c0_89 = arith.constant 0 : index
    %99 = vector.load %arg8[%c3, %c0_88, %c0_89] : memref<16x2x32xf32, #tpu.memory_space<vmem>>, vector<1x2x32xf32>
    %100 = vector.shape_cast %99 : vector<1x2x32xf32> to vector<2x32xf32>
    %cst_90 = arith.constant dense<0.000000e+00> : vector<2x64xf32>
    %101 = tpu.matmul %100, %32, %cst_90 {dimension_numbers = #tpu.dot_dimension_numbers<[1], [0], [0], [1], [0, 0, 1, 1], [], []>} : vector<2x32xf32>, vector<32x64xf32>, vector<2x64xf32> -> vector<2x64xf32>
    %cst_91 = arith.constant dense<0.000000e+00> : vector<2x64xf32>
    %102 = tpu.matmul %100, %61, %cst_91 {dimension_numbers = #tpu.dot_dimension_numbers<[1], [0], [0], [1], [0, 0, 1, 1], [], []>} : vector<2x32xf32>, vector<32x64xf32>, vector<2x64xf32> -> vector<2x64xf32>
    %c3_92 = arith.constant 3 : index
    %c0_93 = arith.constant 0 : index
    %c0_94 = arith.constant 0 : index
    %103 = vector.load %arg9[%c3_92, %c0_93, %c0_94] : memref<16x64x360xf32, #tpu.memory_space<vmem>>, vector<1x64x360xf32>
    %104 = vector.shape_cast %103 : vector<1x64x360xf32> to vector<64x360xf32>
    %cst_95 = arith.constant dense<0.000000e+00> : vector<2x360xf32>
    %105 = tpu.matmul %101, %104, %cst_95 {dimension_numbers = #tpu.dot_dimension_numbers<[1], [0], [0], [1], [0, 0, 1, 1], [], []>} : vector<2x64xf32>, vector<64x360xf32>, vector<2x360xf32> -> vector<2x360xf32>
    %106 = arith.addf %98, %105 : vector<2x360xf32>
    %c3_96 = arith.constant 3 : index
    %c0_97 = arith.constant 0 : index
    %c0_98 = arith.constant 0 : index
    %107 = vector.load %arg10[%c3_96, %c0_97, %c0_98] : memref<16x64x360xf32, #tpu.memory_space<vmem>>, vector<1x64x360xf32>
    %108 = vector.shape_cast %107 : vector<1x64x360xf32> to vector<64x360xf32>
    %cst_99 = arith.constant dense<0.000000e+00> : vector<2x360xf32>
    %109 = tpu.matmul %102, %108, %cst_99 {dimension_numbers = #tpu.dot_dimension_numbers<[1], [0], [0], [1], [0, 0, 1, 1], [], []>} : vector<2x64xf32>, vector<64x360xf32>, vector<2x360xf32> -> vector<2x360xf32>
    %110 = arith.addf %106, %109 : vector<2x360xf32>
    %c4 = arith.constant 4 : index
    %c0_100 = arith.constant 0 : index
    %c0_101 = arith.constant 0 : index
    %111 = vector.load %arg8[%c4, %c0_100, %c0_101] : memref<16x2x32xf32, #tpu.memory_space<vmem>>, vector<1x2x32xf32>
    %112 = vector.shape_cast %111 : vector<1x2x32xf32> to vector<2x32xf32>
    %cst_102 = arith.constant dense<0.000000e+00> : vector<2x64xf32>
    %113 = tpu.matmul %112, %32, %cst_102 {dimension_numbers = #tpu.dot_dimension_numbers<[1], [0], [0], [1], [0, 0, 1, 1], [], []>} : vector<2x32xf32>, vector<32x64xf32>, vector<2x64xf32> -> vector<2x64xf32>
    %cst_103 = arith.constant dense<0.000000e+00> : vector<2x64xf32>
    %114 = tpu.matmul %112, %61, %cst_103 {dimension_numbers = #tpu.dot_dimension_numbers<[1], [0], [0], [1], [0, 0, 1, 1], [], []>} : vector<2x32xf32>, vector<32x64xf32>, vector<2x64xf32> -> vector<2x64xf32>
    %c4_104 = arith.constant 4 : index
    %c0_105 = arith.constant 0 : index
    %c0_106 = arith.constant 0 : index
    %115 = vector.load %arg9[%c4_104, %c0_105, %c0_106] : memref<16x64x360xf32, #tpu.memory_space<vmem>>, vector<1x64x360xf32>
    %116 = vector.shape_cast %115 : vector<1x64x360xf32> to vector<64x360xf32>
    %cst_107 = arith.constant dense<0.000000e+00> : vector<2x360xf32>
    %117 = tpu.matmul %113, %116, %cst_107 {dimension_numbers = #tpu.dot_dimension_numbers<[1], [0], [0], [1], [0, 0, 1, 1], [], []>} : vector<2x64xf32>, vector<64x360xf32>, vector<2x360xf32> -> vector<2x360xf32>
    %118 = arith.addf %110, %117 : vector<2x360xf32>
    %c4_108 = arith.constant 4 : index
    %c0_109 = arith.constant 0 : index
    %c0_110 = arith.constant 0 : index
    %119 = vector.load %arg10[%c4_108, %c0_109, %c0_110] : memref<16x64x360xf32, #tpu.memory_space<vmem>>, vector<1x64x360xf32>
    %120 = vector.shape_cast %119 : vector<1x64x360xf32> to vector<64x360xf32>
    %cst_111 = arith.constant dense<0.000000e+00> : vector<2x360xf32>
    %121 = tpu.matmul %114, %120, %cst_111 {dimension_numbers = #tpu.dot_dimension_numbers<[1], [0], [0], [1], [0, 0, 1, 1], [], []>} : vector<2x64xf32>, vector<64x360xf32>, vector<2x360xf32> -> vector<2x360xf32>
    %122 = arith.addf %118, %121 : vector<2x360xf32>
    %c5 = arith.constant 5 : index
    %c0_112 = arith.constant 0 : index
    %c0_113 = arith.constant 0 : index
    %123 = vector.load %arg8[%c5, %c0_112, %c0_113] : memref<16x2x32xf32, #tpu.memory_space<vmem>>, vector<1x2x32xf32>
    %124 = vector.shape_cast %123 : vector<1x2x32xf32> to vector<2x32xf32>
    %cst_114 = arith.constant dense<0.000000e+00> : vector<2x64xf32>
    %125 = tpu.matmul %124, %32, %cst_114 {dimension_numbers = #tpu.dot_dimension_numbers<[1], [0], [0], [1], [0, 0, 1, 1], [], []>} : vector<2x32xf32>, vector<32x64xf32>, vector<2x64xf32> -> vector<2x64xf32>
    %cst_115 = arith.constant dense<0.000000e+00> : vector<2x64xf32>
    %126 = tpu.matmul %124, %61, %cst_115 {dimension_numbers = #tpu.dot_dimension_numbers<[1], [0], [0], [1], [0, 0, 1, 1], [], []>} : vector<2x32xf32>, vector<32x64xf32>, vector<2x64xf32> -> vector<2x64xf32>
    %c5_116 = arith.constant 5 : index
    %c0_117 = arith.constant 0 : index
    %c0_118 = arith.constant 0 : index
    %127 = vector.load %arg9[%c5_116, %c0_117, %c0_118] : memref<16x64x360xf32, #tpu.memory_space<vmem>>, vector<1x64x360xf32>
    %128 = vector.shape_cast %127 : vector<1x64x360xf32> to vector<64x360xf32>
    %cst_119 = arith.constant dense<0.000000e+00> : vector<2x360xf32>
    %129 = tpu.matmul %125, %128, %cst_119 {dimension_numbers = #tpu.dot_dimension_numbers<[1], [0], [0], [1], [0, 0, 1, 1], [], []>} : vector<2x64xf32>, vector<64x360xf32>, vector<2x360xf32> -> vector<2x360xf32>
    %130 = arith.addf %122, %129 : vector<2x360xf32>
    %c5_120 = arith.constant 5 : index
    %c0_121 = arith.constant 0 : index
    %c0_122 = arith.constant 0 : index
    %131 = vector.load %arg10[%c5_120, %c0_121, %c0_122] : memref<16x64x360xf32, #tpu.memory_space<vmem>>, vector<1x64x360xf32>
    %132 = vector.shape_cast %131 : vector<1x64x360xf32> to vector<64x360xf32>
    %cst_123 = arith.constant dense<0.000000e+00> : vector<2x360xf32>
    %133 = tpu.matmul %126, %132, %cst_123 {dimension_numbers = #tpu.dot_dimension_numbers<[1], [0], [0], [1], [0, 0, 1, 1], [], []>} : vector<2x64xf32>, vector<64x360xf32>, vector<2x360xf32> -> vector<2x360xf32>
    %134 = arith.addf %130, %133 : vector<2x360xf32>
    %c6 = arith.constant 6 : index
    %c0_124 = arith.constant 0 : index
    %c0_125 = arith.constant 0 : index
    %135 = vector.load %arg8[%c6, %c0_124, %c0_125] : memref<16x2x32xf32, #tpu.memory_space<vmem>>, vector<1x2x32xf32>
    %136 = vector.shape_cast %135 : vector<1x2x32xf32> to vector<2x32xf32>
    %cst_126 = arith.constant dense<0.000000e+00> : vector<2x64xf32>
    %137 = tpu.matmul %136, %32, %cst_126 {dimension_numbers = #tpu.dot_dimension_numbers<[1], [0], [0], [1], [0, 0, 1, 1], [], []>} : vector<2x32xf32>, vector<32x64xf32>, vector<2x64xf32> -> vector<2x64xf32>
    %cst_127 = arith.constant dense<0.000000e+00> : vector<2x64xf32>
    %138 = tpu.matmul %136, %61, %cst_127 {dimension_numbers = #tpu.dot_dimension_numbers<[1], [0], [0], [1], [0, 0, 1, 1], [], []>} : vector<2x32xf32>, vector<32x64xf32>, vector<2x64xf32> -> vector<2x64xf32>
    %c6_128 = arith.constant 6 : index
    %c0_129 = arith.constant 0 : index
    %c0_130 = arith.constant 0 : index
    %139 = vector.load %arg9[%c6_128, %c0_129, %c0_130] : memref<16x64x360xf32, #tpu.memory_space<vmem>>, vector<1x64x360xf32>
    %140 = vector.shape_cast %139 : vector<1x64x360xf32> to vector<64x360xf32>
    %cst_131 = arith.constant dense<0.000000e+00> : vector<2x360xf32>
    %141 = tpu.matmul %137, %140, %cst_131 {dimension_numbers = #tpu.dot_dimension_numbers<[1], [0], [0], [1], [0, 0, 1, 1], [], []>} : vector<2x64xf32>, vector<64x360xf32>, vector<2x360xf32> -> vector<2x360xf32>
    %142 = arith.addf %134, %141 : vector<2x360xf32>
    %c6_132 = arith.constant 6 : index
    %c0_133 = arith.constant 0 : index
    %c0_134 = arith.constant 0 : index
    %143 = vector.load %arg10[%c6_132, %c0_133, %c0_134] : memref<16x64x360xf32, #tpu.memory_space<vmem>>, vector<1x64x360xf32>
    %144 = vector.shape_cast %143 : vector<1x64x360xf32> to vector<64x360xf32>
    %cst_135 = arith.constant dense<0.000000e+00> : vector<2x360xf32>
    %145 = tpu.matmul %138, %144, %cst_135 {dimension_numbers = #tpu.dot_dimension_numbers<[1], [0], [0], [1], [0, 0, 1, 1], [], []>} : vector<2x64xf32>, vector<64x360xf32>, vector<2x360xf32> -> vector<2x360xf32>
    %146 = arith.addf %142, %145 : vector<2x360xf32>
    %c7 = arith.constant 7 : index
    %c0_136 = arith.constant 0 : index
    %c0_137 = arith.constant 0 : index
    %147 = vector.load %arg8[%c7, %c0_136, %c0_137] : memref<16x2x32xf32, #tpu.memory_space<vmem>>, vector<1x2x32xf32>
    %148 = vector.shape_cast %147 : vector<1x2x32xf32> to vector<2x32xf32>
    %cst_138 = arith.constant dense<0.000000e+00> : vector<2x64xf32>
    %149 = tpu.matmul %148, %32, %cst_138 {dimension_numbers = #tpu.dot_dimension_numbers<[1], [0], [0], [1], [0, 0, 1, 1], [], []>} : vector<2x32xf32>, vector<32x64xf32>, vector<2x64xf32> -> vector<2x64xf32>
    %cst_139 = arith.constant dense<0.000000e+00> : vector<2x64xf32>
    %150 = tpu.matmul %148, %61, %cst_139 {dimension_numbers = #tpu.dot_dimension_numbers<[1], [0], [0], [1], [0, 0, 1, 1], [], []>} : vector<2x32xf32>, vector<32x64xf32>, vector<2x64xf32> -> vector<2x64xf32>
    %c7_140 = arith.constant 7 : index
    %c0_141 = arith.constant 0 : index
    %c0_142 = arith.constant 0 : index
    %151 = vector.load %arg9[%c7_140, %c0_141, %c0_142] : memref<16x64x360xf32, #tpu.memory_space<vmem>>, vector<1x64x360xf32>
    %152 = vector.shape_cast %151 : vector<1x64x360xf32> to vector<64x360xf32>
    %cst_143 = arith.constant dense<0.000000e+00> : vector<2x360xf32>
    %153 = tpu.matmul %149, %152, %cst_143 {dimension_numbers = #tpu.dot_dimension_numbers<[1], [0], [0], [1], [0, 0, 1, 1], [], []>} : vector<2x64xf32>, vector<64x360xf32>, vector<2x360xf32> -> vector<2x360xf32>
    %154 = arith.addf %146, %153 : vector<2x360xf32>
    %c7_144 = arith.constant 7 : index
    %c0_145 = arith.constant 0 : index
    %c0_146 = arith.constant 0 : index
    %155 = vector.load %arg10[%c7_144, %c0_145, %c0_146] : memref<16x64x360xf32, #tpu.memory_space<vmem>>, vector<1x64x360xf32>
    %156 = vector.shape_cast %155 : vector<1x64x360xf32> to vector<64x360xf32>
    %cst_147 = arith.constant dense<0.000000e+00> : vector<2x360xf32>
    %157 = tpu.matmul %150, %156, %cst_147 {dimension_numbers = #tpu.dot_dimension_numbers<[1], [0], [0], [1], [0, 0, 1, 1], [], []>} : vector<2x64xf32>, vector<64x360xf32>, vector<2x360xf32> -> vector<2x360xf32>
    %158 = arith.addf %154, %157 : vector<2x360xf32>
    %c8 = arith.constant 8 : index
    %c0_148 = arith.constant 0 : index
    %c0_149 = arith.constant 0 : index
    %159 = vector.load %arg8[%c8, %c0_148, %c0_149] : memref<16x2x32xf32, #tpu.memory_space<vmem>>, vector<1x2x32xf32>
    %160 = vector.shape_cast %159 : vector<1x2x32xf32> to vector<2x32xf32>
    %cst_150 = arith.constant dense<0.000000e+00> : vector<2x64xf32>
    %161 = tpu.matmul %160, %32, %cst_150 {dimension_numbers = #tpu.dot_dimension_numbers<[1], [0], [0], [1], [0, 0, 1, 1], [], []>} : vector<2x32xf32>, vector<32x64xf32>, vector<2x64xf32> -> vector<2x64xf32>
    %cst_151 = arith.constant dense<0.000000e+00> : vector<2x64xf32>
    %162 = tpu.matmul %160, %61, %cst_151 {dimension_numbers = #tpu.dot_dimension_numbers<[1], [0], [0], [1], [0, 0, 1, 1], [], []>} : vector<2x32xf32>, vector<32x64xf32>, vector<2x64xf32> -> vector<2x64xf32>
    %c8_152 = arith.constant 8 : index
    %c0_153 = arith.constant 0 : index
    %c0_154 = arith.constant 0 : index
    %163 = vector.load %arg9[%c8_152, %c0_153, %c0_154] : memref<16x64x360xf32, #tpu.memory_space<vmem>>, vector<1x64x360xf32>
    %164 = vector.shape_cast %163 : vector<1x64x360xf32> to vector<64x360xf32>
    %cst_155 = arith.constant dense<0.000000e+00> : vector<2x360xf32>
    %165 = tpu.matmul %161, %164, %cst_155 {dimension_numbers = #tpu.dot_dimension_numbers<[1], [0], [0], [1], [0, 0, 1, 1], [], []>} : vector<2x64xf32>, vector<64x360xf32>, vector<2x360xf32> -> vector<2x360xf32>
    %166 = arith.addf %158, %165 : vector<2x360xf32>
    %c8_156 = arith.constant 8 : index
    %c0_157 = arith.constant 0 : index
    %c0_158 = arith.constant 0 : index
    %167 = vector.load %arg10[%c8_156, %c0_157, %c0_158] : memref<16x64x360xf32, #tpu.memory_space<vmem>>, vector<1x64x360xf32>
    %168 = vector.shape_cast %167 : vector<1x64x360xf32> to vector<64x360xf32>
    %cst_159 = arith.constant dense<0.000000e+00> : vector<2x360xf32>
    %169 = tpu.matmul %162, %168, %cst_159 {dimension_numbers = #tpu.dot_dimension_numbers<[1], [0], [0], [1], [0, 0, 1, 1], [], []>} : vector<2x64xf32>, vector<64x360xf32>, vector<2x360xf32> -> vector<2x360xf32>
    %170 = arith.addf %166, %169 : vector<2x360xf32>
    %c9 = arith.constant 9 : index
    %c0_160 = arith.constant 0 : index
    %c0_161 = arith.constant 0 : index
    %171 = vector.load %arg8[%c9, %c0_160, %c0_161] : memref<16x2x32xf32, #tpu.memory_space<vmem>>, vector<1x2x32xf32>
    %172 = vector.shape_cast %171 : vector<1x2x32xf32> to vector<2x32xf32>
    %cst_162 = arith.constant dense<0.000000e+00> : vector<2x64xf32>
    %173 = tpu.matmul %172, %32, %cst_162 {dimension_numbers = #tpu.dot_dimension_numbers<[1], [0], [0], [1], [0, 0, 1, 1], [], []>} : vector<2x32xf32>, vector<32x64xf32>, vector<2x64xf32> -> vector<2x64xf32>
    %cst_163 = arith.constant dense<0.000000e+00> : vector<2x64xf32>
    %174 = tpu.matmul %172, %61, %cst_163 {dimension_numbers = #tpu.dot_dimension_numbers<[1], [0], [0], [1], [0, 0, 1, 1], [], []>} : vector<2x32xf32>, vector<32x64xf32>, vector<2x64xf32> -> vector<2x64xf32>
    %c9_164 = arith.constant 9 : index
    %c0_165 = arith.constant 0 : index
    %c0_166 = arith.constant 0 : index
    %175 = vector.load %arg9[%c9_164, %c0_165, %c0_166] : memref<16x64x360xf32, #tpu.memory_space<vmem>>, vector<1x64x360xf32>
    %176 = vector.shape_cast %175 : vector<1x64x360xf32> to vector<64x360xf32>
    %cst_167 = arith.constant dense<0.000000e+00> : vector<2x360xf32>
    %177 = tpu.matmul %173, %176, %cst_167 {dimension_numbers = #tpu.dot_dimension_numbers<[1], [0], [0], [1], [0, 0, 1, 1], [], []>} : vector<2x64xf32>, vector<64x360xf32>, vector<2x360xf32> -> vector<2x360xf32>
    %178 = arith.addf %170, %177 : vector<2x360xf32>
    %c9_168 = arith.constant 9 : index
    %c0_169 = arith.constant 0 : index
    %c0_170 = arith.constant 0 : index
    %179 = vector.load %arg10[%c9_168, %c0_169, %c0_170] : memref<16x64x360xf32, #tpu.memory_space<vmem>>, vector<1x64x360xf32>
    %180 = vector.shape_cast %179 : vector<1x64x360xf32> to vector<64x360xf32>
    %cst_171 = arith.constant dense<0.000000e+00> : vector<2x360xf32>
    %181 = tpu.matmul %174, %180, %cst_171 {dimension_numbers = #tpu.dot_dimension_numbers<[1], [0], [0], [1], [0, 0, 1, 1], [], []>} : vector<2x64xf32>, vector<64x360xf32>, vector<2x360xf32> -> vector<2x360xf32>
    %182 = arith.addf %178, %181 : vector<2x360xf32>
    %c10 = arith.constant 10 : index
    %c0_172 = arith.constant 0 : index
    %c0_173 = arith.constant 0 : index
    %183 = vector.load %arg8[%c10, %c0_172, %c0_173] : memref<16x2x32xf32, #tpu.memory_space<vmem>>, vector<1x2x32xf32>
    %184 = vector.shape_cast %183 : vector<1x2x32xf32> to vector<2x32xf32>
    %cst_174 = arith.constant dense<0.000000e+00> : vector<2x64xf32>
    %185 = tpu.matmul %184, %32, %cst_174 {dimension_numbers = #tpu.dot_dimension_numbers<[1], [0], [0], [1], [0, 0, 1, 1], [], []>} : vector<2x32xf32>, vector<32x64xf32>, vector<2x64xf32> -> vector<2x64xf32>
    %cst_175 = arith.constant dense<0.000000e+00> : vector<2x64xf32>
    %186 = tpu.matmul %184, %61, %cst_175 {dimension_numbers = #tpu.dot_dimension_numbers<[1], [0], [0], [1], [0, 0, 1, 1], [], []>} : vector<2x32xf32>, vector<32x64xf32>, vector<2x64xf32> -> vector<2x64xf32>
    %c10_176 = arith.constant 10 : index
    %c0_177 = arith.constant 0 : index
    %c0_178 = arith.constant 0 : index
    %187 = vector.load %arg9[%c10_176, %c0_177, %c0_178] : memref<16x64x360xf32, #tpu.memory_space<vmem>>, vector<1x64x360xf32>
    %188 = vector.shape_cast %187 : vector<1x64x360xf32> to vector<64x360xf32>
    %cst_179 = arith.constant dense<0.000000e+00> : vector<2x360xf32>
    %189 = tpu.matmul %185, %188, %cst_179 {dimension_numbers = #tpu.dot_dimension_numbers<[1], [0], [0], [1], [0, 0, 1, 1], [], []>} : vector<2x64xf32>, vector<64x360xf32>, vector<2x360xf32> -> vector<2x360xf32>
    %190 = arith.addf %182, %189 : vector<2x360xf32>
    %c10_180 = arith.constant 10 : index
    %c0_181 = arith.constant 0 : index
    %c0_182 = arith.constant 0 : index
    %191 = vector.load %arg10[%c10_180, %c0_181, %c0_182] : memref<16x64x360xf32, #tpu.memory_space<vmem>>, vector<1x64x360xf32>
    %192 = vector.shape_cast %191 : vector<1x64x360xf32> to vector<64x360xf32>
    %cst_183 = arith.constant dense<0.000000e+00> : vector<2x360xf32>
    %193 = tpu.matmul %186, %192, %cst_183 {dimension_numbers = #tpu.dot_dimension_numbers<[1], [0], [0], [1], [0, 0, 1, 1], [], []>} : vector<2x64xf32>, vector<64x360xf32>, vector<2x360xf32> -> vector<2x360xf32>
    %194 = arith.addf %190, %193 : vector<2x360xf32>
    %c11 = arith.constant 11 : index
    %c0_184 = arith.constant 0 : index
    %c0_185 = arith.constant 0 : index
    %195 = vector.load %arg8[%c11, %c0_184, %c0_185] : memref<16x2x32xf32, #tpu.memory_space<vmem>>, vector<1x2x32xf32>
    %196 = vector.shape_cast %195 : vector<1x2x32xf32> to vector<2x32xf32>
    %cst_186 = arith.constant dense<0.000000e+00> : vector<2x64xf32>
    %197 = tpu.matmul %196, %32, %cst_186 {dimension_numbers = #tpu.dot_dimension_numbers<[1], [0], [0], [1], [0, 0, 1, 1], [], []>} : vector<2x32xf32>, vector<32x64xf32>, vector<2x64xf32> -> vector<2x64xf32>
    %cst_187 = arith.constant dense<0.000000e+00> : vector<2x64xf32>
    %198 = tpu.matmul %196, %61, %cst_187 {dimension_numbers = #tpu.dot_dimension_numbers<[1], [0], [0], [1], [0, 0, 1, 1], [], []>} : vector<2x32xf32>, vector<32x64xf32>, vector<2x64xf32> -> vector<2x64xf32>
    %c11_188 = arith.constant 11 : index
    %c0_189 = arith.constant 0 : index
    %c0_190 = arith.constant 0 : index
    %199 = vector.load %arg9[%c11_188, %c0_189, %c0_190] : memref<16x64x360xf32, #tpu.memory_space<vmem>>, vector<1x64x360xf32>
    %200 = vector.shape_cast %199 : vector<1x64x360xf32> to vector<64x360xf32>
    %cst_191 = arith.constant dense<0.000000e+00> : vector<2x360xf32>
    %201 = tpu.matmul %197, %200, %cst_191 {dimension_numbers = #tpu.dot_dimension_numbers<[1], [0], [0], [1], [0, 0, 1, 1], [], []>} : vector<2x64xf32>, vector<64x360xf32>, vector<2x360xf32> -> vector<2x360xf32>
    %202 = arith.addf %194, %201 : vector<2x360xf32>
    %c11_192 = arith.constant 11 : index
    %c0_193 = arith.constant 0 : index
    %c0_194 = arith.constant 0 : index
    %203 = vector.load %arg10[%c11_192, %c0_193, %c0_194] : memref<16x64x360xf32, #tpu.memory_space<vmem>>, vector<1x64x360xf32>
    %204 = vector.shape_cast %203 : vector<1x64x360xf32> to vector<64x360xf32>
    %cst_195 = arith.constant dense<0.000000e+00> : vector<2x360xf32>
    %205 = tpu.matmul %198, %204, %cst_195 {dimension_numbers = #tpu.dot_dimension_numbers<[1], [0], [0], [1], [0, 0, 1, 1], [], []>} : vector<2x64xf32>, vector<64x360xf32>, vector<2x360xf32> -> vector<2x360xf32>
    %206 = arith.addf %202, %205 : vector<2x360xf32>
    %c12 = arith.constant 12 : index
    %c0_196 = arith.constant 0 : index
    %c0_197 = arith.constant 0 : index
    %207 = vector.load %arg8[%c12, %c0_196, %c0_197] : memref<16x2x32xf32, #tpu.memory_space<vmem>>, vector<1x2x32xf32>
    %208 = vector.shape_cast %207 : vector<1x2x32xf32> to vector<2x32xf32>
    %cst_198 = arith.constant dense<0.000000e+00> : vector<2x64xf32>
    %209 = tpu.matmul %208, %32, %cst_198 {dimension_numbers = #tpu.dot_dimension_numbers<[1], [0], [0], [1], [0, 0, 1, 1], [], []>} : vector<2x32xf32>, vector<32x64xf32>, vector<2x64xf32> -> vector<2x64xf32>
    %cst_199 = arith.constant dense<0.000000e+00> : vector<2x64xf32>
    %210 = tpu.matmul %208, %61, %cst_199 {dimension_numbers = #tpu.dot_dimension_numbers<[1], [0], [0], [1], [0, 0, 1, 1], [], []>} : vector<2x32xf32>, vector<32x64xf32>, vector<2x64xf32> -> vector<2x64xf32>
    %c12_200 = arith.constant 12 : index
    %c0_201 = arith.constant 0 : index
    %c0_202 = arith.constant 0 : index
    %211 = vector.load %arg9[%c12_200, %c0_201, %c0_202] : memref<16x64x360xf32, #tpu.memory_space<vmem>>, vector<1x64x360xf32>
    %212 = vector.shape_cast %211 : vector<1x64x360xf32> to vector<64x360xf32>
    %cst_203 = arith.constant dense<0.000000e+00> : vector<2x360xf32>
    %213 = tpu.matmul %209, %212, %cst_203 {dimension_numbers = #tpu.dot_dimension_numbers<[1], [0], [0], [1], [0, 0, 1, 1], [], []>} : vector<2x64xf32>, vector<64x360xf32>, vector<2x360xf32> -> vector<2x360xf32>
    %214 = arith.addf %206, %213 : vector<2x360xf32>
    %c12_204 = arith.constant 12 : index
    %c0_205 = arith.constant 0 : index
    %c0_206 = arith.constant 0 : index
    %215 = vector.load %arg10[%c12_204, %c0_205, %c0_206] : memref<16x64x360xf32, #tpu.memory_space<vmem>>, vector<1x64x360xf32>
    %216 = vector.shape_cast %215 : vector<1x64x360xf32> to vector<64x360xf32>
    %cst_207 = arith.constant dense<0.000000e+00> : vector<2x360xf32>
    %217 = tpu.matmul %210, %216, %cst_207 {dimension_numbers = #tpu.dot_dimension_numbers<[1], [0], [0], [1], [0, 0, 1, 1], [], []>} : vector<2x64xf32>, vector<64x360xf32>, vector<2x360xf32> -> vector<2x360xf32>
    %218 = arith.addf %214, %217 : vector<2x360xf32>
    %c13 = arith.constant 13 : index
    %c0_208 = arith.constant 0 : index
    %c0_209 = arith.constant 0 : index
    %219 = vector.load %arg8[%c13, %c0_208, %c0_209] : memref<16x2x32xf32, #tpu.memory_space<vmem>>, vector<1x2x32xf32>
    %220 = vector.shape_cast %219 : vector<1x2x32xf32> to vector<2x32xf32>
    %cst_210 = arith.constant dense<0.000000e+00> : vector<2x64xf32>
    %221 = tpu.matmul %220, %32, %cst_210 {dimension_numbers = #tpu.dot_dimension_numbers<[1], [0], [0], [1], [0, 0, 1, 1], [], []>} : vector<2x32xf32>, vector<32x64xf32>, vector<2x64xf32> -> vector<2x64xf32>
    %cst_211 = arith.constant dense<0.000000e+00> : vector<2x64xf32>
    %222 = tpu.matmul %220, %61, %cst_211 {dimension_numbers = #tpu.dot_dimension_numbers<[1], [0], [0], [1], [0, 0, 1, 1], [], []>} : vector<2x32xf32>, vector<32x64xf32>, vector<2x64xf32> -> vector<2x64xf32>
    %c13_212 = arith.constant 13 : index
    %c0_213 = arith.constant 0 : index
    %c0_214 = arith.constant 0 : index
    %223 = vector.load %arg9[%c13_212, %c0_213, %c0_214] : memref<16x64x360xf32, #tpu.memory_space<vmem>>, vector<1x64x360xf32>
    %224 = vector.shape_cast %223 : vector<1x64x360xf32> to vector<64x360xf32>
    %cst_215 = arith.constant dense<0.000000e+00> : vector<2x360xf32>
    %225 = tpu.matmul %221, %224, %cst_215 {dimension_numbers = #tpu.dot_dimension_numbers<[1], [0], [0], [1], [0, 0, 1, 1], [], []>} : vector<2x64xf32>, vector<64x360xf32>, vector<2x360xf32> -> vector<2x360xf32>
    %226 = arith.addf %218, %225 : vector<2x360xf32>
    %c13_216 = arith.constant 13 : index
    %c0_217 = arith.constant 0 : index
    %c0_218 = arith.constant 0 : index
    %227 = vector.load %arg10[%c13_216, %c0_217, %c0_218] : memref<16x64x360xf32, #tpu.memory_space<vmem>>, vector<1x64x360xf32>
    %228 = vector.shape_cast %227 : vector<1x64x360xf32> to vector<64x360xf32>
    %cst_219 = arith.constant dense<0.000000e+00> : vector<2x360xf32>
    %229 = tpu.matmul %222, %228, %cst_219 {dimension_numbers = #tpu.dot_dimension_numbers<[1], [0], [0], [1], [0, 0, 1, 1], [], []>} : vector<2x64xf32>, vector<64x360xf32>, vector<2x360xf32> -> vector<2x360xf32>
    %230 = arith.addf %226, %229 : vector<2x360xf32>
    %c14 = arith.constant 14 : index
    %c0_220 = arith.constant 0 : index
    %c0_221 = arith.constant 0 : index
    %231 = vector.load %arg8[%c14, %c0_220, %c0_221] : memref<16x2x32xf32, #tpu.memory_space<vmem>>, vector<1x2x32xf32>
    %232 = vector.shape_cast %231 : vector<1x2x32xf32> to vector<2x32xf32>
    %cst_222 = arith.constant dense<0.000000e+00> : vector<2x64xf32>
    %233 = tpu.matmul %232, %32, %cst_222 {dimension_numbers = #tpu.dot_dimension_numbers<[1], [0], [0], [1], [0, 0, 1, 1], [], []>} : vector<2x32xf32>, vector<32x64xf32>, vector<2x64xf32> -> vector<2x64xf32>
    %cst_223 = arith.constant dense<0.000000e+00> : vector<2x64xf32>
    %234 = tpu.matmul %232, %61, %cst_223 {dimension_numbers = #tpu.dot_dimension_numbers<[1], [0], [0], [1], [0, 0, 1, 1], [], []>} : vector<2x32xf32>, vector<32x64xf32>, vector<2x64xf32> -> vector<2x64xf32>
    %c14_224 = arith.constant 14 : index
    %c0_225 = arith.constant 0 : index
    %c0_226 = arith.constant 0 : index
    %235 = vector.load %arg9[%c14_224, %c0_225, %c0_226] : memref<16x64x360xf32, #tpu.memory_space<vmem>>, vector<1x64x360xf32>
    %236 = vector.shape_cast %235 : vector<1x64x360xf32> to vector<64x360xf32>
    %cst_227 = arith.constant dense<0.000000e+00> : vector<2x360xf32>
    %237 = tpu.matmul %233, %236, %cst_227 {dimension_numbers = #tpu.dot_dimension_numbers<[1], [0], [0], [1], [0, 0, 1, 1], [], []>} : vector<2x64xf32>, vector<64x360xf32>, vector<2x360xf32> -> vector<2x360xf32>
    %238 = arith.addf %230, %237 : vector<2x360xf32>
    %c14_228 = arith.constant 14 : index
    %c0_229 = arith.constant 0 : index
    %c0_230 = arith.constant 0 : index
    %239 = vector.load %arg10[%c14_228, %c0_229, %c0_230] : memref<16x64x360xf32, #tpu.memory_space<vmem>>, vector<1x64x360xf32>
    %240 = vector.shape_cast %239 : vector<1x64x360xf32> to vector<64x360xf32>
    %cst_231 = arith.constant dense<0.000000e+00> : vector<2x360xf32>
    %241 = tpu.matmul %234, %240, %cst_231 {dimension_numbers = #tpu.dot_dimension_numbers<[1], [0], [0], [1], [0, 0, 1, 1], [], []>} : vector<2x64xf32>, vector<64x360xf32>, vector<2x360xf32> -> vector<2x360xf32>
    %242 = arith.addf %238, %241 : vector<2x360xf32>
    %c15 = arith.constant 15 : index
    %c0_232 = arith.constant 0 : index
    %c0_233 = arith.constant 0 : index
    %243 = vector.load %arg8[%c15, %c0_232, %c0_233] : memref<16x2x32xf32, #tpu.memory_space<vmem>>, vector<1x2x32xf32>
    %244 = vector.shape_cast %243 : vector<1x2x32xf32> to vector<2x32xf32>
    %cst_234 = arith.constant dense<0.000000e+00> : vector<2x64xf32>
    %245 = tpu.matmul %244, %32, %cst_234 {dimension_numbers = #tpu.dot_dimension_numbers<[1], [0], [0], [1], [0, 0, 1, 1], [], []>} : vector<2x32xf32>, vector<32x64xf32>, vector<2x64xf32> -> vector<2x64xf32>
    %cst_235 = arith.constant dense<0.000000e+00> : vector<2x64xf32>
    %246 = tpu.matmul %244, %61, %cst_235 {dimension_numbers = #tpu.dot_dimension_numbers<[1], [0], [0], [1], [0, 0, 1, 1], [], []>} : vector<2x32xf32>, vector<32x64xf32>, vector<2x64xf32> -> vector<2x64xf32>
    %c15_236 = arith.constant 15 : index
    %c0_237 = arith.constant 0 : index
    %c0_238 = arith.constant 0 : index
    %247 = vector.load %arg9[%c15_236, %c0_237, %c0_238] : memref<16x64x360xf32, #tpu.memory_space<vmem>>, vector<1x64x360xf32>
    %248 = vector.shape_cast %247 : vector<1x64x360xf32> to vector<64x360xf32>
    %cst_239 = arith.constant dense<0.000000e+00> : vector<2x360xf32>
    %249 = tpu.matmul %245, %248, %cst_239 {dimension_numbers = #tpu.dot_dimension_numbers<[1], [0], [0], [1], [0, 0, 1, 1], [], []>} : vector<2x64xf32>, vector<64x360xf32>, vector<2x360xf32> -> vector<2x360xf32>
    %250 = arith.addf %242, %249 : vector<2x360xf32>
    %c15_240 = arith.constant 15 : index
    %c0_241 = arith.constant 0 : index
    %c0_242 = arith.constant 0 : index
    %251 = vector.load %arg10[%c15_240, %c0_241, %c0_242] : memref<16x64x360xf32, #tpu.memory_space<vmem>>, vector<1x64x360xf32>
    %252 = vector.shape_cast %251 : vector<1x64x360xf32> to vector<64x360xf32>
    %cst_243 = arith.constant dense<0.000000e+00> : vector<2x360xf32>
    %253 = tpu.matmul %246, %252, %cst_243 {dimension_numbers = #tpu.dot_dimension_numbers<[1], [0], [0], [1], [0, 0, 1, 1], [], []>} : vector<2x64xf32>, vector<64x360xf32>, vector<2x360xf32> -> vector<2x360xf32>
    %254 = arith.addf %250, %253 : vector<2x360xf32>
    %c0_244 = arith.constant 0 : index
    %c0_245 = arith.constant 0 : index
    %255 = vector.load %arg11[%c0_244, %c0_245] : memref<1x360xf32, #tpu.memory_space<vmem>>, vector<1x360xf32>
    %256 = vector.broadcast %255 : vector<1x360xf32> to vector<2x360xf32>
    %257 = arith.addf %254, %256 : vector<2x360xf32>
    %cst_246 = arith.constant 0.000000e+00 : f32
    %258 = vector.broadcast %cst_246 : f32 to vector<2x360xf32>
    %259 = arith.maximumf %257, %258 : vector<2x360xf32>
    %c0_247 = arith.constant 0 : index
    %c0_248 = arith.constant 0 : index
    %260 = vector.load %arg12[%c0_247, %c0_248] : memref<360x256xf32, #tpu.memory_space<vmem>>, vector<360x256xf32>
    %cst_249 = arith.constant dense<0.000000e+00> : vector<2x256xf32>
    %261 = tpu.matmul %259, %260, %cst_249 {dimension_numbers = #tpu.dot_dimension_numbers<[1], [0], [0], [1], [0, 0, 1, 1], [], []>} : vector<2x360xf32>, vector<360x256xf32>, vector<2x256xf32> -> vector<2x256xf32>
    %c0_250 = arith.constant 0 : index
    %c0_251 = arith.constant 0 : index
    %262 = vector.load %arg13[%c0_250, %c0_251] : memref<1x256xf32, #tpu.memory_space<vmem>>, vector<1x256xf32>
    %263 = vector.broadcast %262 : vector<1x256xf32> to vector<2x256xf32>
    %264 = arith.addf %261, %263 : vector<2x256xf32>
    %cst_252 = arith.constant 0.000000e+00 : f32
    %265 = vector.broadcast %cst_252 : f32 to vector<2x256xf32>
    %266 = arith.maximumf %264, %265 : vector<2x256xf32>
    %c0_253 = arith.constant 0 : index
    %c0_254 = arith.constant 0 : index
    %267 = vector.load %arg14[%c0_253, %c0_254] : memref<256x128xf32, #tpu.memory_space<vmem>>, vector<256x128xf32>
    %cst_255 = arith.constant dense<0.000000e+00> : vector<2x128xf32>
    %268 = tpu.matmul %266, %267, %cst_255 {dimension_numbers = #tpu.dot_dimension_numbers<[1], [0], [0], [1], [0, 0, 1, 1], [], []>} : vector<2x256xf32>, vector<256x128xf32>, vector<2x128xf32> -> vector<2x128xf32>
    %c0_256 = arith.constant 0 : index
    %c0_257 = arith.constant 0 : index
    %269 = vector.load %arg15[%c0_256, %c0_257] : memref<1x128xf32, #tpu.memory_space<vmem>>, vector<1x128xf32>
    %270 = vector.broadcast %269 : vector<1x128xf32> to vector<2x128xf32>
    %271 = arith.addf %268, %270 : vector<2x128xf32>
    %cst_258 = arith.constant 0.000000e+00 : f32
    %272 = vector.broadcast %cst_258 : f32 to vector<2x128xf32>
    %273 = arith.maximumf %271, %272 : vector<2x128xf32>
    %c0_259 = arith.constant 0 : index
    %c0_260 = arith.constant 0 : index
    %274 = vector.load %arg16[%c0_259, %c0_260] : memref<128x1xf32, #tpu.memory_space<vmem>>, vector<128x1xf32>
    %cst_261 = arith.constant dense<0.000000e+00> : vector<2x1xf32>
    %275 = tpu.matmul %273, %274, %cst_261 {dimension_numbers = #tpu.dot_dimension_numbers<[1], [0], [0], [1], [0, 0, 1, 1], [], []>} : vector<2x128xf32>, vector<128x1xf32>, vector<2x1xf32> -> vector<2x1xf32>
    %c0_262 = arith.constant 0 : index
    %c0_263 = arith.constant 0 : index
    %276 = vector.load %arg17[%c0_262, %c0_263] : memref<1x1xf32, #tpu.memory_space<vmem>>, vector<1x1xf32>
    %277 = vector.broadcast %276 : vector<1x1xf32> to vector<2x1xf32>
    %278 = arith.addf %275, %277 : vector<2x1xf32>
    %c0_264 = arith.constant 0 : index
    %c0_265 = arith.constant 0 : index
    %279 = vector.load %arg18[%c0_264, %c0_265] : memref<2x1xf32, #tpu.memory_space<vmem>>, vector<2x1xf32>
    tpu.vector_store %arg18[%c0_264, %c0_265], %278 {strides = array<i32>} : memref<2x1xf32, #tpu.memory_space<vmem>>, vector<2x1xf32>,
    return
  }
}

</mosaic_0001>

<bundles_post_ra>
// kernel: my_gcn_forward.1
= control target key start
LH: loop header
LB: loop body
LE: loop exit
PB: predicated region body
PF: predicated region fallthrough
CT: control target
= control target key end

     0   :  { %s6306_s0 = inlined_call_operand.hbm [shape: f32[2,8,64], index: 0, kind: input, shape index: {}]   ;;  %s6307_s1 = inlined_call_operand.hbm [shape: f32[2,8,64], index: 1, kind: input, shape index: {}]   ;;  %s6308_s2 = inlined_call_operand.vmem [shape: f32[2,64,64], index: 2, kind: input, shape index: {}]   ;;  %s6309_s3 = inlined_call_operand.vmem [shape: f32[2,64,64], index: 3, kind: input, shape index: {}]   ;;  %s6310_s4 = inlined_call_operand.vmem [shape: f32[32,8], index: 4, kind: input, shape index: {}]   ;;  %s6311_s5 = inlined_call_operand.vmem [shape: f32[32,1], index: 5, kind: input, shape index: {}]   ;;  %s6312_s6 = inlined_call_operand.hbm [shape: f32[16,32], index: 6, kind: input, shape index: {}]   ;;  %s6313_s7 = inlined_call_operand.vmem [shape: f32[16,1], index: 7, kind: input, shape index: {}]   ;;  %s6314_s8 = inlined_call_operand.vmem [shape: f32[16,2,32], index: 8, kind: input, shape index: {}]   ;;  %s6315_s9 = inlined_call_operand.hbm [shape: f32[16,64,360], index: 9, kind: input, shape index: {}]   ;;  %s6316_s10 = inlined_call_operand.hbm [shape: f32[16,64,360], index: 10, kind: input, shape index: {}]   ;;  %s6317_s11 = inlined_call_operand.hbm [shape: f32[1,360], index: 11, kind: input, shape index: {}]   ;;  %s6318_s12 = inlined_call_operand.hbm [shape: f32[360,256], index: 12, kind: input, shape index: {}]   ;;  %s6319_s13 = inlined_call_operand.hbm [shape: f32[1,256], index: 13, kind: input, shape index: {}]   ;;  %s6320_s14 = inlined_call_operand.hbm [shape: f32[256,128], index: 14, kind: input, shape index: {}]   ;;  %s6321_s15 = inlined_call_operand.hbm [shape: f32[1,128], index: 15, kind: input, shape index: {}]   ;;  %s6322_s16 = inlined_call_operand.vmem [shape: f32[128,1], index: 16, kind: input, shape index: {}]   ;;  %s6323_s17 = inlined_call_operand.<no memory space> [shape: f32[1,1], index: 17, kind: input, shape index: {}]   ;;  %s6324_s18 = inlined_call_operand.vmem [shape: f32[2,1], index: 18, kind: output, shape index: {}]  }
   0x1   :  { %6330 = sst [smem:[#allocation25_spill]] %s6306_s0  ;;  %v23_v0 = vstv %s6323_s17 }
   0x2   :  { %6331 = sst [smem:[#allocation26_spill]] %s6307_s1  ;;  %24 = vst [vmem:[#allocation2] sm:$0x1] %v23_v0 }
   0x3   :  { %6332 = sst [smem:[#allocation27_spill]] %s6308_s2 }
   0x4   :  { %25 = vsyncpa [#allocation4], 0 }
   0x5   :  { %26 = vsyncpa [#allocation6], 0 }
   0x6   :  { %27 = vsyncpa [#allocation9], 0 }
   0x7   :  { %28 = vsyncpa [#allocation12], 0 }
   0x8   :  { %29 = vsyncpa [#allocation15], 0 }
   0x9   :  { %30 = vsyncpa [#allocation18], 0  ;;  %s6333_s0 = sld [smem:[#allocation26_spill]]  ;;  %s5205_s1 = smov [#allocation5]  }
   0xa   :  { %s50_s20 = sshll.u32 %s5205_s1, 4  ;;  %s86_s2 = sshll.u32 %s6315_s9, 4  ;;  %s51_s20 = int_to_ptr.vmem [resolvable:$true] %s50_s20  ;;  %s87_s2 = int_to_ptr.hbm [resolvable:$true] %s86_s2 }
   0xb   :  { %s6326_s17 = smov 128   ;;  %s6328_s23 = smov 8  }
   0xc   :  { %s5208_s24 = smov [#allocation8]   ;;  %s5209_s26 = smov 384  }
   0xd   :  { %s88_s25 = sshll.u32 %s5208_s24, 4  ;;  %s5210_s27 = smov 24   ;;  %s89_s25 = int_to_ptr.vmem [resolvable:$true] %s88_s25 }
   0xe   :  { %94 = dma.hbm_to_vmem [thread:$0]  %s87_s2, 49152, %s89_s25, [#allocation9], %s5209_s26, %s5209_s26, %s5210_s27  }
   0xf   :  { %s48_s19 = sshll.u32 %s6333_s0, 4  ;;  %s113_s9 = sshll.u32 %s6317_s11, 4  ;;  %s49_s19 = int_to_ptr.hbm [resolvable:$true] %s48_s19  ;;  %s114_s9 = int_to_ptr.hbm [resolvable:$true] %s113_s9 }
  0x10   :  { %56 = dma.hbm_to_vmem [thread:$0]  %s49_s19, 256, %s51_s20, [#allocation6], %s6326_s17, %s6326_s17, %s6328_s23  }
  0x11   :  { %s5211_s30 = smov [#allocation11]   ;;  %s137_s20 = sshll.u32 %s6319_s13, 4  ;;  %s138_s20 = int_to_ptr.hbm [resolvable:$true] %s137_s20 }
  0x12   :  { %s115_s0 = sshll.u32 %s5211_s30, 4  ;;  %s5212_s21 = smov [#allocation14]   ;;  %s116_s0 = int_to_ptr.vmem [resolvable:$true] %s115_s0 }
  0x13   :  { %118 = dma.hbm_to_vmem [thread:$0]  %s114_s9, 48, %s116_s0, [#allocation12]  }
  0x14   :  { %s139_s22 = sshll.u32 %s5212_s21, 4  ;;  %s6334_s23 = sld [smem:[#allocation25_spill]]  ;;  %s140_s22 = int_to_ptr.vmem [resolvable:$true] %s139_s22 }
  0x15   :  { %142 = dma.hbm_to_vmem [thread:$0]  %s138_s20, 32, %s140_s22, [#allocation15]  }
  0x16   :  { %s69_s28 = sshll.u32 %s6312_s6, 4  ;;  %s5213_s29 = smov [#allocation3]   ;;  %s70_s28 = int_to_ptr.hbm [resolvable:$true] %s69_s28 }
  0x17   :  { %s37_s30 = sshll.u32 %s5213_s29, 4  ;;  %s6335_s13 = smov 8   ;;  %s38_s30 = int_to_ptr.vmem [resolvable:$true] %s37_s30 }
  0x18   :  { %s6336_s9 = smov 128   ;;  %s5214_s0 = smov [#allocation7]  }
  0x19   :  { %s71_s1 = sshll.u32 %s5214_s0, 4  ;;  %s123_s21 = sshll.u32 %s6318_s12, 4  ;;  %s72_s1 = int_to_ptr.vmem [resolvable:$true] %s71_s1  ;;  %s124_s21 = int_to_ptr.hbm [resolvable:$true] %s123_s21 }
  0x1a   :  { %s35_s2 = sshll.u32 %s6334_s23, 4  ;;  %s99_s23 = sshll.u32 %s6316_s10, 4  ;;  %s36_s2 = int_to_ptr.hbm [resolvable:$true] %s35_s2  ;;  %s100_s23 = int_to_ptr.hbm [resolvable:$true] %s99_s23 }
  0x1b   :  { %43 = dma.hbm_to_vmem [thread:$0]  %s36_s2, 256, %s38_s30, [#allocation4], %s6336_s9, %s6336_s9, %s6335_s13  }
  0x1c   :  { %77 = dma.hbm_to_vmem [thread:$0]  %s70_s28, 256, %s72_s1, [#allocation6], %s6336_s9, %s6336_s9, %s6335_s13  }
  0x1d   :  { %s5215_s22 = smov [#allocation10]   ;;  %s5216_s2 = smov [#allocation13]  }
  0x1e   :  { %s101_s24 = sshll.u32 %s5215_s22, 4  ;;  %s125_s10 = sshll.u32 %s5216_s2, 4  ;;  %s102_s24 = int_to_ptr.vmem [resolvable:$true] %s101_s24  ;;  %s126_s10 = int_to_ptr.vmem [resolvable:$true] %s125_s10 }
  0x1f   :  { %107 = dma.hbm_to_vmem [thread:$0]  %s100_s23, 49152, %s102_s24, [#allocation9], %s5209_s26, %s5209_s26, %s5210_s27  }
  0x20   :  { %s5217_s11 = smov 256   ;;  %s5218_s25 = smov 16  }
  0x21   :  { %131 = dma.hbm_to_vmem [thread:$0]  %s124_s21, 11520, %s126_s10, [#allocation12], %s5217_s11, %s5217_s11, %s5218_s25  }
  0x22   :  { %s147_s30 = sshll.u32 %s6320_s14, 4  ;;  %s5219_s12 = smov [#allocation16]   ;;  %s148_s30 = int_to_ptr.hbm [resolvable:$true] %s147_s30 }
  0x23   :  { %s149_s0 = sshll.u32 %s5219_s12, 4  ;;  %s161_s17 = sshll.u32 %s6321_s15, 4  ;;  %s150_s0 = int_to_ptr.vmem [resolvable:$true] %s149_s0  ;;  %s162_s17 = int_to_ptr.hbm [resolvable:$true] %s161_s17 }
  0x24   :  { %155 = dma.hbm_to_vmem [thread:$0]  %s148_s30, 4096, %s150_s0, [#allocation15], %s6336_s9, %s6336_s9, %s6335_s13  }
  0x25   :  { %s5220_s26 = smov [#allocation17]  }
  0x26   :  { %s163_s27 = sshll.u32 %s5220_s26, 4  ;;  %s164_s27 = int_to_ptr.vmem [resolvable:$true] %s163_s27 }
  0x27   :  { %166 = dma.hbm_to_vmem [thread:$0]  %s162_s17, 16, %s164_s27, [#allocation18]  }
  0x28   :  { %5193 = dma.done.wait [#allocation4], 256  }
  0x29   :  { %5194 = vsyncadd [#allocation4], 4294967040 }
  0x2a   :  { %5195 = dma.done.wait [#allocation6], 512  }
  0x2b   :  { %5196 = vsyncadd [#allocation6], 4294966784 }
  0x2c   :  { %5197 = dma.done.wait [#allocation9], 98304  }
  0x2d   :  { %5198 = vsyncadd [#allocation9], 4294868992 }
  0x2e   :  { %5199 = dma.done.wait [#allocation12], 11568  }
  0x2f   :  { %5200 = vsyncadd [#allocation12], 4294955728 }
  0x30   :  { %5201 = dma.done.wait [#allocation15], 4128  }
  0x31   :  { %5202 = vsyncadd [#allocation15], 4294963168 }
  0x32   :  { %5203 = dma.done.wait [#allocation18], 16  }
  0x33   :  { %5204 = vsyncadd [#allocation18], 4294967280  ;;  %s6337_s13 = sld [smem:[#allocation27_spill]]  ;;  %v223_v9 = vld [vmem:[#allocation3] sm:$0xff]  ;;  %vm232_vm0 = vcmask 523264   ;;  %v5221_v11 = vmov 0  }
  0x34   :  { %v216_v10 = vld [vmem:[%s6311_s5 + $0x8] sm:$0xff]  ;;  %4949 = vset.pattern.permute.xlu1 %v5221_v11  ;;  %4948 = vset.pattern.permute.xlu0 %v5221_v11  ;;  %v215_v12 = vld [vmem:[%s6311_s5] sm:$0xff]  ;;  %v218_v13 = vld [vmem:[%s6311_s5 + $0x18] sm:$0xff]  ;;  %vm276_vm1 = vcmask 64512   ;;  %vm322_vm2 = vcmask 261120   ;;  %vm4479_vm3 = vcmask 850944  }
  0x35   :  { %263 = vperm.xlu1 %4949, %v216_v10   ;;  %4950 = vset.pattern.permute.xlu2 %v5221_v11  ;;  %v217_v14 = vld [vmem:[%s6311_s5 + $0x10] sm:$0xff]  ;;  %v5432_v15 = vld [vmem:[%s6310_s4] sm:$0xff]  ;;  %v5437_v17 = vld [vmem:[%s6309_s3 + $0x38] sm:$0xff]  ;;  %vm4722_vm4 = vcmask 1024  }
  0x36   :  { %273 = vperm.xlu0 %4948, %v218_v13   ;;  %v5444_v18 = vld [vmem:[%s6309_s3 + $0x30] sm:$0xff]  ;;  %v5450_v19 = vld [vmem:[%s6309_s3 + $0x28] sm:$0xff]  ;;  %v5456_v20 = vld [vmem:[%s6309_s3 + $0x20] sm:$0xff] }
  0x37   :  { %v5461_v21 = vld [vmem:[%s6310_s4 + $0x8] sm:$0xff]  ;;  %v5467_v22 = vld [vmem:[%s6309_s3 + $0x18] sm:$0xff]  ;;  %v5475_v23 = vld [vmem:[%s6309_s3 + $0x10] sm:$0xff] }
  0x38   :  { %v5481_v24 = vld [vmem:[%s6309_s3 + $0x8] sm:$0xff]  ;;  %v5487_v25 = vld [vmem:[%s6309_s3] sm:$0xff]  ;;  %v5492_v26 = vld [vmem:[%s6310_s4 + $0x10] sm:$0xff] }
  0x39   :  { %v5371_v1 = vld [vmem:[%s6337_s13 + $0x38] sm:$0xff]  ;;  %v5376_v2 = vld [vmem:[%s6337_s13 + $0x30] sm:$0xff]  ;;  %v5382_v3 = vld [vmem:[%s6337_s13 + $0x28] sm:$0xff] }
  0x3a   :  { %244 = vmatpush.msra.mxu0 %v5371_v1  ;;  %v5388_v4 = vld [vmem:[%s6337_s13 + $0x20] sm:$0xff]  ;;  %v5394_v5 = vld [vmem:[%s6337_s13 + $0x18] sm:$0xff]  ;;  %v5400_v6 = vld [vmem:[%s6337_s13 + $0x10] sm:$0xff] }
  0x3b   :  { %v5406_v7 = vld [vmem:[%s6337_s13 + $0x8] sm:$0xff]  ;;  %v5412_v8 = vld [vmem:[%s6337_s13] sm:$0xff]  ;;  %v5501_v27 = vld [vmem:[%s6310_s4 + $0x18] sm:$0xff] }
  0x3c   :  { %245 = vmatpush.msra.mxu0 %v5376_v2  ;;  %v510_v28 = vld [vmem:[#allocation5] sm:$0xff]  ;;  %v5518_v46 = vld [vmem:[#allocation7] sm:$0xff]  ;;  %v5526_v47 = vld [vmem:[#allocation7 + $0x8] sm:$0xff] }
  0x3d   :  { %258 = vperm.xlu1 %4949, %v215_v12   ;;  %v4750_v48 = vld [vmem:[%s6337_s13 + $0x78] sm:$0xff]  ;;  %v4749_v49 = vld [vmem:[%s6337_s13 + $0x70] sm:$0xff]  ;;  %v4748_v50 = vld [vmem:[%s6337_s13 + $0x68] sm:$0xff] }
  0x3e   :  { %246 = vmatpush.msra.mxu0 %v5382_v3  ;;  %268 = vperm.xlu0 %4948, %v217_v14   ;;  %v4747_v51 = vld [vmem:[%s6337_s13 + $0x60] sm:$0xff]  ;;  %v4746_v52 = vld [vmem:[%s6337_s13 + $0x58] sm:$0xff]  ;;  %v4745_v53 = vld [vmem:[%s6337_s13 + $0x50] sm:$0xff] }
  0x3f   :  { %495 = vmatpush.msra.mxu3 %v4750_v48  ;;  %v4744_v54 = vld [vmem:[%s6337_s13 + $0x48] sm:$0xff]  ;;  %v4743_v55 = vld [vmem:[%s6337_s13 + $0x40] sm:$0xff]  ;;  %v5570_v56 = vld [vmem:[%s6309_s3 + $0x78] sm:$0xff] }
  0x40   :  { %247 = vmatpush.msra.mxu0 %v5388_v4  ;;  %v5575_v57 = vld [vmem:[%s6309_s3 + $0x70] sm:$0xff]  ;;  %v5582_v58 = vld [vmem:[%s6309_s3 + $0x68] sm:$0xff]  ;;  %v5592_v60 = vld [vmem:[%s6309_s3 + $0x60] sm:$0xff] }
  0x41   :  { %496 = vmatpush.msra.mxu3 %v4749_v49  ;;  %v222_v59 = vld [vmem:[%s6313_s7 + $0x8] sm:$0xff]  ;;  %v5599_v61 = vld [vmem:[%s6309_s3 + $0x58] sm:$0xff]  ;;  %v5606_v62 = vld [vmem:[%s6309_s3 + $0x50] sm:$0xff] }
  0x42   :  { %248 = vmatpush.msra.mxu0 %v5394_v5  ;;  %359 = vperm.xlu2 %4950, %v222_v59   ;;  %v221_v63 = vld [vmem:[%s6313_s7] sm:$0xff]  ;;  %v5616_v0 = vld [vmem:[%s6309_s3 + $0x48] sm:$0xff] }
  0x43   :  { %497 = vmatpush.msra.mxu3 %v4748_v50  ;;  %v816_v59 = vld [vmem:[#allocation10 + $0x10] sm:$0xff] }
  0x44   :  { %249 = vmatpush.msra.mxu0 %v5400_v6 }
  0x45   :  { %498 = vmatpush.msra.mxu3 %v4747_v51 }
  0x46   :  { %250 = vmatpush.msra.mxu0 %v5406_v7 }
  0x47   :  { %499 = vmatpush.msra.mxu3 %v4746_v52 }
  0x48   :  { %251 = vmatpush.msra.mxu0 %v5412_v8 }
  0x49   :  { %4734 = vmatmul.msk.f32.vlgmr.msra.gmra.mxu0 %vm232_vm0, %v223_v9  ;;  %500 = vmatpush.msra.mxu3 %v4745_v53 }
  0x4a   :  { %354 = vperm.xlu2 %4950, %v221_v63  }
  0x4b   :  { %501 = vmatpush.msra.mxu3 %v4744_v54 }
  0x4d   :  { %502 = vmatpush.msra.mxu3 %v4743_v55 }
  0x4f   :  { %612 = vmatpush.msrb.mxu3 %v5437_v17 }
  0x51   :  { %613 = vmatpush.msrb.mxu3 %v5444_v18 }
  0x53   :  { %614 = vmatpush.msrb.mxu3 %v5450_v19 }
  0x55   :  { %615 = vmatpush.msrb.mxu3 %v5456_v20 }
  0x57   :  { %616 = vmatpush.msrb.mxu3 %v5467_v22 }
  0x59   :  { %617 = vmatpush.msrb.mxu3 %v5475_v23 }
  0x5b   :  { %618 = vmatpush.msrb.mxu3 %v5481_v24 }
  0x5d   :  { %619 = vmatpush.msrb.mxu3 %v5487_v25 }
  0xa7   :  { %v5508_v32 = vpop.permute.xlu1 %263 }
  0xa8   :  { %v5506_v31 = vpop.permute.xlu0 %273 }
  0xaf   :  { %v5514_v38 = vpop.permute.xlu1 %258 }
  0xb0   :  { %v5510_v34 = vpop.permute.xlu0 %268 }
  0xc6   :  { %v253_v16 = vpop.f32.mrf.mxu0 }
  0xc7   :  { %304 = vmatpush.msra.mxu1 %v253_v16 }
  0xc8   :  { %4735 = vmatmul.msk.f32.vlgmr.msra.gmra.mxu1 %vm276_vm1, %v5432_v15 }
  0xc9   :  { %530 = vmatpush.msrb.mxu1 %v5437_v17 }
  0xcb   :  { %531 = vmatpush.msrb.mxu1 %v5444_v18 }
  0xcd   :  { %532 = vmatpush.msrb.mxu1 %v5450_v19 }
  0xcf   :  { %533 = vmatpush.msrb.mxu1 %v5456_v20 }
  0xd0   :  { %4736 = vmatmul.msk.f32.gmra.mxu1 %vm276_vm1, %v5461_v21 }
  0xd1   :  { %534 = vmatpush.msrb.mxu1 %v5467_v22 }
  0xd3   :  { %535 = vmatpush.msrb.mxu1 %v5475_v23 }
  0xd5   :  { %536 = vmatpush.msrb.mxu1 %v5481_v24 }
  0xd7   :  { %537 = vmatpush.msrb.mxu1 %v5487_v25 }
  0xd8   :  { %4737 = vmatmul.msk.f32.gmra.mxu1 %vm276_vm1, %v5492_v26 }
  0xe0   :  { %4738 = vmatmul.msk.f32.gmra.mxu1 %vm276_vm1, %v5501_v27 }
  0xe8   :  { %4760 = vmatmul.msk.f32.vlgmr.msrb.gmra.mxu1 %vm232_vm0, %v510_v28 }
 0x145   :  { %v306_v29 = vpop.f32.mrf.mxu1 }
 0x146   :  { %v307_v41 = vadd.f32 %v306_v29, %v5514_v38 }
 0x148   :  { %v318_v45 = vmax.f32 %v307_v41, 0.0 }
 0x14d   :  { %v309_v30 = vpop.f32.mrf.mxu1 }
 0x14e   :  { %v310_v39 = vadd.f32 %v309_v30, %v5508_v32 }
 0x150   :  { %v319_v43 = vmax.f32 %v310_v39, 0.0 }
 0x155   :  { %v312_v33 = vpop.f32.mrf.mxu1 }
 0x156   :  { %v313_v36 = vadd.f32 %v312_v33, %v5510_v34 }
 0x158   :  { %v320_v42 = vmax.f32 %v313_v36, 0.0 }
 0x15d   :  { %v315_v35 = vpop.f32.mrf.mxu1 }
 0x15e   :  { %v316_v37 = vadd.f32 %v315_v35, %v5506_v31 }
 0x160   :  { %v321_v40 = vmax.f32 %v316_v37, 0.0 }
 0x162   :  { %341 = vmatpush.msra.mxu2 %v321_v40 }
 0x164   :  { %342 = vmatpush.msra.mxu2 %v320_v42 }
 0x165   :  { %v539_v44 = vpop.f32.mrf.mxu1 }
 0x166   :  { %343 = vmatpush.msra.mxu2 %v319_v43  ;;  %557 = vmatpush.msra.mxu1 %v539_v44 }
 0x167   :  { %4761 = vmatmul.msk.f32.vlgmr.msra.gmra.mxu1 %vm276_vm1, %v5432_v15 }
 0x168   :  { %344 = vmatpush.msra.mxu2 %v318_v45  ;;  %649 = vmatpush.msrb.mxu1 %v5570_v56 }
 0x169   :  { %4739 = vmatmul.msk.f32.vlgmr.msra.gmra.mxu2 %vm322_vm2, %v5518_v46 }
 0x16a   :  { %376 = vmatpush.msrb.mxu2 %v5371_v1  ;;  %650 = vmatpush.msrb.mxu1 %v5575_v57  ;;  %v5623_v1 = vld [vmem:[%s6309_s3 + $0x40] sm:$0xff] }
 0x16c   :  { %377 = vmatpush.msrb.mxu2 %v5376_v2  ;;  %651 = vmatpush.msrb.mxu1 %v5582_v58 }
 0x16e   :  { %378 = vmatpush.msrb.mxu2 %v5382_v3  ;;  %652 = vmatpush.msrb.mxu1 %v5592_v60  ;;  %v628_v3 = vld [vmem:[#allocation5 + $0x8] sm:$0xff] }
 0x16f   :  { %4762 = vmatmul.msk.f32.gmra.mxu1 %vm276_vm1, %v5461_v21 }
 0x170   :  { %379 = vmatpush.msrb.mxu2 %v5388_v4  ;;  %653 = vmatpush.msrb.mxu1 %v5599_v61 }
 0x171   :  { %4740 = vmatmul.msk.f32.gmra.mxu2 %vm322_vm2, %v5526_v47 }
 0x172   :  { %380 = vmatpush.msrb.mxu2 %v5394_v5  ;;  %654 = vmatpush.msrb.mxu1 %v5606_v62  ;;  %v392_v5 = vld [vmem:[#allocation3 + $0x8] sm:$0xff] }
 0x174   :  { %381 = vmatpush.msrb.mxu2 %v5400_v6  ;;  %655 = vmatpush.msrb.mxu1 %v5616_v0 }
 0x176   :  { %382 = vmatpush.msrb.mxu2 %v5406_v7  ;;  %656 = vmatpush.msrb.mxu1 %v5623_v1 }
 0x177   :  { %4763 = vmatmul.msk.f32.gmra.mxu1 %vm276_vm1, %v5492_v26 }
 0x178   :  { %383 = vmatpush.msrb.mxu2 %v5412_v8 }
 0x17a   :  { %413 = vmatpush.msra.mxu2 %v4750_v48 }
 0x17c   :  { %414 = vmatpush.msra.mxu2 %v4749_v49 }
 0x17e   :  { %415 = vmatpush.msra.mxu2 %v4748_v50 }
 0x17f   :  { %4764 = vmatmul.msk.f32.gmra.mxu1 %vm276_vm1, %v5501_v27 }
 0x180   :  { %416 = vmatpush.msra.mxu2 %v4747_v51 }
 0x182   :  { %417 = vmatpush.msra.mxu2 %v4746_v52 }
 0x184   :  { %418 = vmatpush.msra.mxu2 %v4745_v53 }
 0x186   :  { %419 = vmatpush.msra.mxu2 %v4744_v54  ;;  %v831_v54 = vld [vmem:[#allocation10 + $0x88] sm:$0xff] }
 0x187   :  { %4777 = vmatmul.msk.f32.vlgmr.msrb.gmra.mxu1 %vm232_vm0, %v628_v3 }
 0x188   :  { %420 = vmatpush.msra.mxu2 %v4743_v55  ;;  %v828_v55 = vld [vmem:[#allocation10 + $0x70] sm:$0xff] }
 0x1e4   :  { %v559_v6 = vpop.f32.mrf.mxu1 }
 0x1e5   :  { %v560_v33 = vadd.f32 %v559_v6, %v5514_v38 }
 0x1e7   :  { %v571_v39 = vmax.f32 %v560_v33, 0.0  ;;  %v826_v33 = vld [vmem:[#allocation10 + $0x60] sm:$0xff] }
 0x1ec   :  { %v346_v2 = vpop.f32.mrf.mxu2  ;;  %v562_v7 = vpop.f32.mrf.mxu1 }
 0x1ed   :  { %4741 = vmatmul.msk.f32.vlgmr.msrb.gmra.mxu2 %vm232_vm0, %v346_v2  ;;  %v563_v29 = vadd.f32 %v562_v7, %v5508_v32 }
 0x1ef   :  { %v572_v36 = vmax.f32 %v563_v29, 0.0  ;;  %v829_v29 = vld [vmem:[#allocation10 + $0x78] sm:$0xff] }
 0x1f4   :  { %v349_v4 = vpop.f32.mrf.mxu2  ;;  %v565_v8 = vpop.f32.mrf.mxu1 }
 0x1f5   :  { %4742 = vmatmul.msk.f32.gmra.mxu2 %vm232_vm0, %v349_v4  ;;  %v746_v4 = vld [vmem:[%s6314_s8] sm:$0x3] }
 0x1fc   :  { %v568_v10 = vpop.f32.mrf.mxu1 }
 0x1fd   :  { %4751 = vmatmul.msk.f32.vlgmr.msra.gmra.mxu2 %vm232_vm0, %v392_v5  ;;  %v569_v24 = vadd.f32 %v568_v10, %v5506_v31 }
 0x1ff   :  { %v574_v30 = vmax.f32 %v569_v24, 0.0  ;;  %v827_v24 = vld [vmem:[#allocation10 + $0x68] sm:$0xff] }
 0x204   :  { %v658_v13 = vpop.f32.mrf.mxu1 }
 0x270   :  { %v5632_v9 = vpop.f32.mrf.mxu2 }
 0x278   :  { %v5634_v11 = vpop.f32.mrf.mxu2 }
 0x280   :  { %v422_v12 = vpop.f32.mrf.mxu2 }
 0x281   :  { %440 = vmatpush.msrb.mxu0 %v422_v12 }
 0x282   :  { %4752 = vmatmul.msk.f32.vlgmr.msrb.gmra.mxu0 %vm276_vm1, %v5432_v15 }
 0x283   :  { %676 = vmatpush.msra.mxu0 %v658_v13  ;;  %v811_v13 = vld [vmem:[#allocation8 + $0xa8] sm:$0xff] }
 0x28a   :  { %4753 = vmatmul.msk.f32.gmra.mxu0 %vm276_vm1, %v5461_v21 }
 0x292   :  { %4754 = vmatmul.msk.f32.gmra.mxu0 %vm276_vm1, %v5492_v26 }
 0x29a   :  { %4755 = vmatmul.msk.f32.gmra.mxu0 %vm276_vm1, %v5501_v27 }
 0x2a2   :  { %4778 = vmatmul.msk.f32.vlgmr.msra.gmra.mxu0 %vm276_vm1, %v5432_v15 }
 0x2aa   :  { %4779 = vmatmul.msk.f32.gmra.mxu0 %vm276_vm1, %v5461_v21 }
 0x2b2   :  { %4780 = vmatmul.msk.f32.gmra.mxu0 %vm276_vm1, %v5492_v26 }
 0x2ba   :  { %4781 = vmatmul.msk.f32.gmra.mxu0 %vm276_vm1, %v5501_v27  ;;  %v566_v27 = vadd.f32 %v565_v8, %v5510_v34 }
 0x2bc   :  { %v573_v35 = vmax.f32 %v566_v27, 0.0  ;;  %v832_v27 = vld [vmem:[#allocation10 + $0x90] sm:$0xff] }
 0x2ff   :  { %v442_v14 = vpop.f32.mrf.mxu0 }
 0x300   :  { %v443_v23 = vadd.f32 %v442_v14, %v5514_v38  ;;  %v808_v14 = vld [vmem:[#allocation8 + $0x90] sm:$0xff] }
 0x302   :  { %v454_v28 = vmax.f32 %v443_v23, 0.0  ;;  %v833_v23 = vld [vmem:[#allocation10 + $0x98] sm:$0xff] }
 0x307   :  { %v445_v16 = vpop.f32.mrf.mxu0 }
 0x308   :  { %v446_v22 = vadd.f32 %v445_v16, %v5508_v32  ;;  %v805_v16 = vld [vmem:[#allocation8 + $0x78] sm:$0xff] }
 0x30a   :  { %v455_v25 = vmax.f32 %v446_v22, 0.0  ;;  %v790_v22 = vld [vmem:[#allocation8] sm:$0xff] }
 0x30f   :  { %v448_v17 = vpop.f32.mrf.mxu0 }
 0x310   :  { %v449_v19 = vadd.f32 %v448_v17, %v5510_v34  ;;  %v802_v17 = vld [vmem:[#allocation8 + $0x60] sm:$0xff] }
 0x312   :  { %v456_v21 = vmax.f32 %v449_v19, 0.0  ;;  %v796_v19 = vld [vmem:[#allocation8 + $0x30] sm:$0xff] }
 0x317   :  { %v451_v18 = vpop.f32.mrf.mxu0 }
 0x318   :  { %v452_v20 = vadd.f32 %v451_v18, %v5506_v31  ;;  %v799_v18 = vld [vmem:[#allocation8 + $0x48] sm:$0xff] }
 0x31a   :  { %v457_v15 = vmax.f32 %v452_v20, 0.0  ;;  %v793_v20 = vld [vmem:[#allocation8 + $0x18] sm:$0xff] }
 0x31c   :  { %470 = vmatpush.msrb.mxu2 %v457_v15  ;;  %v836_v15 = vld [vmem:[#allocation10 + $0xb0] sm:$0xff] }
 0x31e   :  { %471 = vmatpush.msrb.mxu2 %v456_v21  ;;  %v830_v21 = vld [vmem:[#allocation10 + $0x80] sm:$0xff] }
 0x31f   :  { %v678_v26 = vpop.f32.mrf.mxu0 }
 0x320   :  { %472 = vmatpush.msrb.mxu2 %v455_v25  ;;  %v679_v48 = vadd.f32 %v678_v26, %v5514_v38  ;;  %v834_v38 = vld [vmem:[#allocation10 + $0xa0] sm:$0xff]  ;;  %v835_v25 = vld [vmem:[#allocation10 + $0xa8] sm:$0xff]  ;;  %v824_v26 = vld [vmem:[#allocation10 + $0x50] sm:$0xff] }
 0x322   :  { %473 = vmatpush.msrb.mxu2 %v454_v28  ;;  %v690_v51 = vmax.f32 %v679_v48, 0.0  ;;  %v821_v28 = vld [vmem:[#allocation10 + $0x38] sm:$0xff] }
 0x323   :  { %4756 = vmatmul.msk.f32.vlgmr.msrb.gmra.mxu2 %vm322_vm2, %v5518_v46  ;;  %v1033_v48 = vld [vmem:[#allocation8 + $0x178] sm:$0xff] }
 0x324   :  { %587 = vmatpush.msra.mxu2 %v574_v30  ;;  %v818_v30 = vld [vmem:[#allocation10 + $0x20] sm:$0xff] }
 0x326   :  { %588 = vmatpush.msra.mxu2 %v573_v35  ;;  %v815_v35 = vld [vmem:[#allocation10 + $0x8] sm:$0xff] }
 0x327   :  { %v681_v37 = vpop.f32.mrf.mxu0 }
 0x328   :  { %589 = vmatpush.msra.mxu2 %v572_v36  ;;  %v682_v44 = vadd.f32 %v681_v37, %v5508_v32  ;;  %v813_v36 = vld [vmem:[#allocation8 + $0xb8] sm:$0xff]  ;;  %v823_v37 = vld [vmem:[#allocation10 + $0x48] sm:$0xff] }
 0x32a   :  { %590 = vmatpush.msra.mxu2 %v571_v39  ;;  %v691_v50 = vmax.f32 %v682_v44, 0.0  ;;  %v810_v39 = vld [vmem:[#allocation8 + $0xa0] sm:$0xff] }
 0x32b   :  { %4757 = vmatmul.msk.f32.gmra.mxu2 %vm322_vm2, %v5526_v47  ;;  %v814_v44 = vld [vmem:[#allocation10] sm:$0xff] }
 0x32f   :  { %v684_v40 = vpop.f32.mrf.mxu0 }
 0x330   :  { %v685_v42 = vadd.f32 %v684_v40, %v5510_v34  ;;  %v837_v34 = vld [vmem:[#allocation10 + $0xb8] sm:$0xff]  ;;  %v820_v40 = vld [vmem:[#allocation10 + $0x30] sm:$0xff] }
 0x331   :  { %889 = vmatpush.msrb.mxu0 %v837_v34  ;;  %v806_v34 = vld [vmem:[#allocation8 + $0x80] sm:$0xff] }
 0x332   :  { %v692_v49 = vmax.f32 %v685_v42, 0.0  ;;  %v817_v42 = vld [vmem:[#allocation10 + $0x18] sm:$0xff] }
 0x333   :  { %4765 = vmatmul.msk.f32.vlgmr.msra.gmra.mxu2 %vm322_vm2, %v5518_v46  ;;  %890 = vmatpush.msrb.mxu0 %v834_v38  ;;  %v1027_v38 = vld [vmem:[#allocation8 + $0x148] sm:$0xff] }
 0x335   :  { %891 = vmatpush.msrb.mxu0 %v831_v54  ;;  %v792_v54 = vld [vmem:[#allocation8 + $0x10] sm:$0xff] }
 0x337   :  { %v687_v41 = vpop.f32.mrf.mxu0  ;;  %892 = vmatpush.msrb.mxu0 %v828_v55  ;;  %v1021_v55 = vld [vmem:[#allocation8 + $0x118] sm:$0xff] }
 0x338   :  { %v688_v43 = vadd.f32 %v687_v41, %v5506_v31  ;;  %v807_v41 = vld [vmem:[#allocation8 + $0x88] sm:$0xff] }
 0x33a   :  { %v693_v45 = vmax.f32 %v688_v43, 0.0  ;;  %v804_v43 = vld [vmem:[#allocation8 + $0x70] sm:$0xff] }
 0x33b   :  { %4766 = vmatmul.msk.f32.gmra.mxu2 %vm322_vm2, %v5526_v47 }
 0x33c   :  { %706 = vmatpush.msrb.mxu2 %v693_v45  ;;  %v812_v45 = vld [vmem:[#allocation8 + $0xb0] sm:$0xff] }
 0x33e   :  { %707 = vmatpush.msrb.mxu2 %v692_v49  ;;  %v801_v49 = vld [vmem:[#allocation8 + $0x58] sm:$0xff] }
 0x340   :  { %708 = vmatpush.msrb.mxu2 %v691_v50 }
 0x342   :  { %709 = vmatpush.msrb.mxu2 %v690_v51  ;;  %v809_v51 = vld [vmem:[#allocation8 + $0x98] sm:$0xff] }
 0x343   :  { %4782 = vmatmul.msk.f32.vlgmr.msrb.gmra.mxu2 %vm322_vm2, %v5518_v46 }
 0x34b   :  { %4783 = vmatmul.msk.f32.gmra.mxu2 %vm322_vm2, %v5526_v47 }
 0x3a6   :  { %v475_v31 = vpop.f32.mrf.mxu2 }
 0x3a7   :  { %4758 = vmatmul.msk.f32.vlgmr.msra.gmra.mxu3 %vm232_vm0, %v475_v31  ;;  %v1030_v31 = vld [vmem:[#allocation8 + $0x160] sm:$0xff] }
 0x3a8   :  { %731 = vmatpush.msra.mxu3 %v5570_v56  ;;  %v825_v56 = vld [vmem:[#allocation10 + $0x58] sm:$0xff] }
 0x3a9   :  { %893 = vmatpush.msrb.mxu0 %v825_v56  ;;  %v800_v56 = vld [vmem:[#allocation8 + $0x50] sm:$0xff] }
 0x3aa   :  { %732 = vmatpush.msra.mxu3 %v5575_v57  ;;  %v822_v57 = vld [vmem:[#allocation10 + $0x40] sm:$0xff] }
 0x3ab   :  { %894 = vmatpush.msrb.mxu0 %v822_v57  ;;  %v1018_v57 = vld [vmem:[#allocation8 + $0x100] sm:$0xff] }
 0x3ac   :  { %733 = vmatpush.msra.mxu3 %v5582_v58  ;;  %v819_v58 = vld [vmem:[#allocation10 + $0x28] sm:$0xff] }
 0x3ad   :  { %895 = vmatpush.msrb.mxu0 %v819_v58  ;;  %v797_v58 = vld [vmem:[#allocation8 + $0x38] sm:$0xff] }
 0x3ae   :  { %v478_v32 = vpop.f32.mrf.mxu2  ;;  %734 = vmatpush.msra.mxu3 %v5592_v60  ;;  %v360_v60 = vpop.permute.xlu2 %359 }
 0x3af   :  { %4759 = vmatmul.msk.f32.gmra.mxu3 %vm232_vm0, %v478_v32  ;;  %896 = vmatpush.msrb.mxu0 %v816_v59  ;;  %v5697_v2 = vadd.f32 %v5634_v11, %v360_v60  ;;  %v798_v32 = vld [vmem:[#allocation8 + $0x40] sm:$0xff]  ;;  %v1015_v59 = vld [vmem:[#allocation8 + $0xe8] sm:$0xff] }
 0x3b0   :  { %735 = vmatpush.msra.mxu3 %v5599_v61 }
 0x3b2   :  { %736 = vmatpush.msra.mxu3 %v5606_v62 }
 0x3b4   :  { %737 = vmatpush.msra.mxu3 %v5616_v0 }
 0x3b6   :  { %v592_v46 = vpop.f32.mrf.mxu2  ;;  %738 = vmatpush.msra.mxu3 %v5623_v1  ;;  %v355_v0 = vpop.permute.xlu2 %354 }
 0x3b7   :  { %4767 = vmatmul.msk.f32.vlgmr.msrb.gmra.mxu3 %vm232_vm0, %v592_v46  ;;  %v5702_v3 = vadd.f32 %v5632_v9, %v355_v0  ;;  %v795_v46 = vld [vmem:[#allocation8 + $0x28] sm:$0xff] }
 0x3b8   :  { %849 = vmatpush.msrb.mxu3 %v835_v25  ;;  %v1014_v25 = vld [vmem:[#allocation8 + $0xe0] sm:$0xff] }
 0x3ba   :  { %850 = vmatpush.msrb.mxu3 %v832_v27  ;;  %v1011_v27 = vld [vmem:[#allocation8 + $0xc8] sm:$0xff] }
 0x3bc   :  { %851 = vmatpush.msrb.mxu3 %v829_v29  ;;  %v1019_v29 = vld [vmem:[#allocation8 + $0x108] sm:$0xff] }
 0x3be   :  { %v595_v47 = vpop.f32.mrf.mxu2  ;;  %852 = vmatpush.msrb.mxu3 %v826_v33  ;;  %v1016_v33 = vld [vmem:[#allocation8 + $0xf0] sm:$0xff] }
 0x3bf   :  { %4768 = vmatmul.msk.f32.gmra.mxu3 %vm232_vm0, %v595_v47  ;;  %v1024_v47 = vld [vmem:[#allocation8 + $0x130] sm:$0xff] }
 0x3c0   :  { %853 = vmatpush.msrb.mxu3 %v823_v37 }
 0x3c2   :  { %854 = vmatpush.msrb.mxu3 %v820_v40  ;;  %v1010_v40 = vld [vmem:[#allocation8 + $0xc0] sm:$0xff] }
 0x3c4   :  { %855 = vmatpush.msrb.mxu3 %v817_v42  ;;  %v1112_v42 = vld [vmem:[#allocation10 + $0x118] sm:$0xff] }
 0x3c6   :  { %v711_v52 = vpop.f32.mrf.mxu2  ;;  %856 = vmatpush.msrb.mxu3 %v814_v44  ;;  %v1109_v44 = vld [vmem:[#allocation10 + $0x100] sm:$0xff] }
 0x3c7   :  { %4784 = vmatmul.msk.f32.vlgmr.msra.gmra.mxu3 %vm232_vm0, %v711_v52  ;;  %v4794_v52 = vld [vmem:[%s6314_s8 + $0x2] sm:$0x3] }
 0x3c8   :  { %932 = vmatpush.msra.mxu3 %v812_v45  ;;  %v1117_v45 = vld [vmem:[#allocation10 + $0x140] sm:$0xff] }
 0x3ca   :  { %933 = vmatpush.msra.mxu3 %v809_v51  ;;  %v1114_v51 = vld [vmem:[#allocation10 + $0x128] sm:$0xff] }
 0x3cc   :  { %934 = vmatpush.msra.mxu3 %v806_v34  ;;  %v1254_v34 = vld [vmem:[#allocation8 + $0x208] sm:$0xff] }
 0x3ce   :  { %v714_v53 = vpop.f32.mrf.mxu2 }
 0x3cf   :  { %4785 = vmatmul.msk.f32.gmra.mxu3 %vm232_vm0, %v714_v53  ;;  %v803_v53 = vld [vmem:[#allocation8 + $0x68] sm:$0xff] }
 0x3d0   :  { %935 = vmatpush.msra.mxu3 %v803_v53  ;;  %v1248_v53 = vld [vmem:[#allocation8 + $0x1d8] sm:$0xff] }
 0x3d2   :  { %936 = vmatpush.msra.mxu3 %v800_v56  ;;  %v1102_v56 = vld [vmem:[#allocation10 + $0xc8] sm:$0xff] }
 0x3d4   :  { %937 = vmatpush.msra.mxu3 %v797_v58  ;;  %v1239_v58 = vld [vmem:[#allocation8 + $0x190] sm:$0xff] }
 0x42a   :  { %v504_v61 = vpop.f32.mrf.mxu3 }
 0x42b   :  { %v5692_v1 = vadd.f32 %v504_v61, %v355_v0  ;;  %v1012_v61 = vld [vmem:[#allocation8 + $0xd0] sm:$0xff] }
 0x432   :  { %v507_v62 = vpop.f32.mrf.mxu3 }
 0x433   :  { %v5690_v63 = vadd.f32 %v507_v62, %v360_v60  ;;  %v791_v62 = vld [vmem:[#allocation8 + $0x8] sm:$0xff] }
 0x435   :  { %762 = vmatpush.msra.mxu1 %v5690_v63  ;;  %981 = vmatpush.msra.mxu0 %v5690_v63 }
 0x437   :  { %763 = vmatpush.msra.mxu1 %v5692_v1  ;;  %982 = vmatpush.msra.mxu0 %v5692_v1 }
 0x439   :  { %764 = vmatpush.msra.mxu1 %v5697_v2  ;;  %983 = vmatpush.msra.mxu0 %v5697_v2 }
 0x43a   :  { %v621_v5 = vpop.f32.mrf.mxu3 }
 0x43b   :  { %765 = vmatpush.msra.mxu1 %v5702_v3  ;;  %984 = vmatpush.msra.mxu0 %v5702_v3  ;;  %v5720_v12 = vadd.f32 %v621_v5, %v355_v0  ;;  %v1119_v5 = vld [vmem:[#allocation10 + $0x150] sm:$0xff] }
 0x43c   :  { %4786 = vmatmul.msk.f32.vlgmr.msra.gmra.mxu1 %vm322_vm2, %v746_v4 }
 0x43d   :  { %869 = vmatpush.msrb.mxu1 %v836_v15  ;;  %v1020_v15 = vld [vmem:[#allocation8 + $0x110] sm:$0xff] }
 0x43f   :  { %870 = vmatpush.msrb.mxu1 %v833_v23  ;;  %v1028_v23 = vld [vmem:[#allocation8 + $0x150] sm:$0xff] }
 0x441   :  { %871 = vmatpush.msrb.mxu1 %v830_v21  ;;  %v1017_v21 = vld [vmem:[#allocation8 + $0xf8] sm:$0xff] }
 0x442   :  { %v624_v6 = vpop.f32.mrf.mxu3 }
 0x443   :  { %v5717_v11 = vadd.f32 %v624_v6, %v360_v60  ;;  %872 = vmatpush.msrb.mxu1 %v827_v24  ;;  %v1116_v6 = vld [vmem:[#allocation10 + $0x138] sm:$0xff] }
 0x444   :  { %v1025_v24 = vld [vmem:[#allocation8 + $0x138] sm:$0xff] }
 0x445   :  { %873 = vmatpush.msrb.mxu1 %v824_v26  ;;  %v1022_v26 = vld [vmem:[#allocation8 + $0x120] sm:$0xff] }
 0x447   :  { %874 = vmatpush.msrb.mxu1 %v821_v28  ;;  %v1124_v28 = vld [vmem:[#allocation10 + $0x178] sm:$0xff] }
 0x449   :  { %875 = vmatpush.msrb.mxu1 %v818_v30  ;;  %v1121_v30 = vld [vmem:[#allocation10 + $0x160] sm:$0xff] }
 0x44a   :  { %v740_v7 = vpop.f32.mrf.mxu3 }
 0x44b   :  { %v5714_v10 = vadd.f32 %v740_v7, %v355_v0  ;;  %876 = vmatpush.msrb.mxu1 %v815_v35  ;;  %v1122_v0 = vld [vmem:[#allocation10 + $0x168] sm:$0xff]  ;;  %v1113_v7 = vld [vmem:[#allocation10 + $0x120] sm:$0xff] }
 0x44c   :  { %v1118_v35 = vld [vmem:[#allocation10 + $0x148] sm:$0xff] }
 0x44d   :  { %952 = vmatpush.msra.mxu1 %v813_v36  ;;  %v1013_v36 = vld [vmem:[#allocation8 + $0xd8] sm:$0xff] }
 0x44f   :  { %953 = vmatpush.msra.mxu1 %v810_v39  ;;  %v1115_v39 = vld [vmem:[#allocation10 + $0x130] sm:$0xff] }
 0x451   :  { %954 = vmatpush.msra.mxu1 %v807_v41  ;;  %v1123_v41 = vld [vmem:[#allocation10 + $0x170] sm:$0xff] }
 0x452   :  { %v743_v8 = vpop.f32.mrf.mxu3 }
 0x453   :  { %v5712_v9 = vadd.f32 %v743_v8, %v360_v60  ;;  %955 = vmatpush.msra.mxu1 %v804_v43  ;;  %v794_v60 = vld [vmem:[#allocation8 + $0x20] sm:$0xff]  ;;  %v1110_v8 = vld [vmem:[#allocation10 + $0x108] sm:$0xff]  ;;  %v1120_v43 = vld [vmem:[#allocation10 + $0x158] sm:$0xff] }
 0x454   :  { %938 = vmatpush.msra.mxu3 %v794_v60  ;;  %v1349_v60 = vld [vmem:[#allocation10 + $0x228] sm:$0xff] }
 0x455   :  { %782 = vmatpush.msra.mxu2 %v5712_v9  ;;  %956 = vmatpush.msra.mxu1 %v801_v49  ;;  %v1260_v49 = vld [vmem:[#allocation8 + $0x238] sm:$0xff] }
 0x456   :  { %939 = vmatpush.msra.mxu3 %v791_v62  ;;  %v1258_v62 = vld [vmem:[#allocation8 + $0x228] sm:$0xff] }
 0x457   :  { %783 = vmatpush.msra.mxu2 %v5714_v10  ;;  %957 = vmatpush.msra.mxu1 %v798_v32  ;;  %v1257_v32 = vld [vmem:[#allocation8 + $0x220] sm:$0xff] }
 0x459   :  { %784 = vmatpush.msra.mxu2 %v5717_v11  ;;  %958 = vmatpush.msra.mxu1 %v795_v46  ;;  %v1251_v46 = vld [vmem:[#allocation8 + $0x1f0] sm:$0xff] }
 0x45b   :  { %785 = vmatpush.msra.mxu2 %v5720_v12  ;;  %959 = vmatpush.msra.mxu1 %v792_v54  ;;  %v1105_v54 = vld [vmem:[#allocation10 + $0xe0] sm:$0xff] }
 0x45c   :  { %4787 = vmatmul.msk.f32.vlgmr.msra.gmra.mxu2 %vm322_vm2, %v746_v4 }
 0x45d   :  { %912 = vmatpush.msrb.mxu2 %v811_v13  ;;  %v1107_v13 = vld [vmem:[#allocation10 + $0xf0] sm:$0xff] }
 0x45f   :  { %913 = vmatpush.msrb.mxu2 %v808_v14  ;;  %v1104_v14 = vld [vmem:[#allocation10 + $0xd8] sm:$0xff] }
 0x461   :  { %914 = vmatpush.msrb.mxu2 %v805_v16  ;;  %v1101_v16 = vld [vmem:[#allocation10 + $0xc0] sm:$0xff] }
 0x463   :  { %915 = vmatpush.msrb.mxu2 %v802_v17  ;;  %v1032_v17 = vld [vmem:[#allocation8 + $0x170] sm:$0xff] }
 0x465   :  { %916 = vmatpush.msrb.mxu2 %v799_v18  ;;  %v1029_v18 = vld [vmem:[#allocation8 + $0x158] sm:$0xff] }
 0x467   :  { %917 = vmatpush.msrb.mxu2 %v796_v19  ;;  %v1026_v19 = vld [vmem:[#allocation8 + $0x140] sm:$0xff] }
 0x469   :  { %918 = vmatpush.msrb.mxu2 %v793_v20  ;;  %v1023_v20 = vld [vmem:[#allocation8 + $0x128] sm:$0xff] }
 0x46b   :  { %919 = vmatpush.msrb.mxu2 %v790_v22  ;;  %v1031_v22 = vld [vmem:[#allocation8 + $0x168] sm:$0xff] }
 0x46d   :  { %1001 = vmatpush.msra.mxu2 %v5712_v9 }
 0x46f   :  { %1002 = vmatpush.msra.mxu2 %v5714_v10 }
 0x471   :  { %1003 = vmatpush.msra.mxu2 %v5717_v11 }
 0x473   :  { %1004 = vmatpush.msra.mxu2 %v5720_v12 }
 0x4b9   :  { %v767_v50 = vpop.f32.mrf.mxu1 }
 0x4ba   :  { %4791 = vmatmul.msk.f32.vlgmr.msrb.gmra.mxu2 %vm232_vm0, %v767_v50 }
 0x4bb   :  { %1085 = vmatpush.msrb.mxu2 %v1033_v48  ;;  %v1106_v48 = vld [vmem:[#allocation10 + $0xe8] sm:$0xff] }
 0x4bd   :  { %1086 = vmatpush.msrb.mxu2 %v1030_v31  ;;  %v1103_v31 = vld [vmem:[#allocation10 + $0xd0] sm:$0xff] }
 0x4bf   :  { %1087 = vmatpush.msrb.mxu2 %v1027_v38  ;;  %v1111_v38 = vld [vmem:[#allocation10 + $0x110] sm:$0xff] }
 0x4c1   :  { %1088 = vmatpush.msrb.mxu2 %v1024_v47  ;;  %v1108_v47 = vld [vmem:[#allocation10 + $0xf8] sm:$0xff] }
 0x4c2   :  { %4796 = vmatmul.msk.f32.vlgmr.msra.gmra.mxu2 %vm322_vm2, %v4794_v52 }
 0x4c3   :  { %1089 = vmatpush.msrb.mxu2 %v1021_v55  ;;  %v1245_v55 = vld [vmem:[#allocation8 + $0x1c0] sm:$0xff] }
 0x4c5   :  { %1090 = vmatpush.msrb.mxu2 %v1018_v57  ;;  %v1242_v57 = vld [vmem:[#allocation8 + $0x1a8] sm:$0xff] }
 0x4c7   :  { %1091 = vmatpush.msrb.mxu2 %v1015_v59 }
 0x4c9   :  { %1092 = vmatpush.msrb.mxu2 %v1012_v61 }
 0x4cb   :  { %1208 = vmatpush.msra.mxu2 %v5690_v63 }
 0x4cd   :  { %1209 = vmatpush.msra.mxu2 %v5692_v1 }
 0x4cf   :  { %1210 = vmatpush.msra.mxu2 %v5697_v2 }
 0x4d1   :  { %1211 = vmatpush.msra.mxu2 %v5702_v3 }
 0x4df   :  { %v787_v4 = vpop.f32.mrf.mxu2 }
 0x4e0   :  { %4788 = vmatmul.msk.f32.vlgmr.msrb.gmra.mxu3 %vm232_vm0, %v787_v4  ;;  %4789 = vmatmul.msk.f32.vlgmr.msrb.gmra.mxu1 %vm232_vm0, %v787_v4 }
 0x4e1   :  { %4790 = vmatmul.msk.f32.vlgmr.msrb.gmra.mxu0 %vm232_vm0, %v787_v4  ;;  %1136 = vmatpush.msrb.mxu1 %v1122_v0  ;;  %v1259_v0 = vld [vmem:[#allocation8 + $0x230] sm:$0xff] }
 0x4e2   :  { %1065 = vmatpush.msrb.mxu0 %v1032_v17  ;;  %1045 = vmatpush.msrb.mxu3 %v1031_v22  ;;  %v1346_v4 = vld [vmem:[#allocation10 + $0x210] sm:$0xff]  ;;  %v1249_v17 = vld [vmem:[#allocation8 + $0x1e0] sm:$0xff] }
 0x4e3   :  { %1137 = vmatpush.msrb.mxu1 %v1119_v5  ;;  %v1255_v5 = vld [vmem:[#allocation8 + $0x210] sm:$0xff] }
 0x4e4   :  { %1066 = vmatpush.msrb.mxu0 %v1029_v18  ;;  %1046 = vmatpush.msrb.mxu3 %v1028_v23  ;;  %v1250_v18 = vld [vmem:[#allocation8 + $0x1e8] sm:$0xff]  ;;  %v1247_v22 = vld [vmem:[#allocation8 + $0x1d0] sm:$0xff] }
 0x4e5   :  { %1138 = vmatpush.msrb.mxu1 %v1116_v6  ;;  %v1256_v6 = vld [vmem:[#allocation8 + $0x218] sm:$0xff]  ;;  %v1243_v23 = vld [vmem:[#allocation8 + $0x1b0] sm:$0xff] }
 0x4e6   :  { %1067 = vmatpush.msrb.mxu0 %v1026_v19  ;;  %1047 = vmatpush.msrb.mxu3 %v1025_v24  ;;  %v1334_v19 = vld [vmem:[#allocation10 + $0x1b0] sm:$0xff]  ;;  %v1328_v24 = vld [vmem:[#allocation10 + $0x180] sm:$0xff] }
 0x4e7   :  { %1139 = vmatpush.msrb.mxu1 %v1113_v7  ;;  %v1343_v7 = vld [vmem:[#allocation10 + $0x1f8] sm:$0xff] }
 0x4e8   :  { %4792 = vmatmul.msk.f32.vlgmr.msra.gmra.mxu3 %vm232_vm0, %v767_v50  ;;  %4793 = vmatmul.msk.f32.vlgmr.msra.gmra.mxu1 %vm232_vm0, %v767_v50 }
 0x4e9   :  { %4795 = vmatmul.msk.f32.vlgmr.msra.gmra.mxu0 %vm322_vm2, %v4794_v52  ;;  %1140 = vmatpush.msrb.mxu1 %v1110_v8  ;;  %v4803_v52 = vld [vmem:[%s6314_s8 + $0x4] sm:$0x3]  ;;  %v1252_v8 = vld [vmem:[#allocation8 + $0x1f8] sm:$0xff] }
 0x4ea   :  { %1068 = vmatpush.msrb.mxu0 %v1023_v20  ;;  %1048 = vmatpush.msrb.mxu3 %v1022_v26  ;;  %v1246_v20 = vld [vmem:[#allocation8 + $0x1c8] sm:$0xff]  ;;  %v1241_v26 = vld [vmem:[#allocation8 + $0x1a0] sm:$0xff] }
 0x4eb   :  { %1141 = vmatpush.msrb.mxu1 %v1107_v13  ;;  %v1253_v13 = vld [vmem:[#allocation8 + $0x200] sm:$0xff] }
 0x4ec   :  { %1069 = vmatpush.msrb.mxu0 %v1020_v15  ;;  %1049 = vmatpush.msrb.mxu3 %v1019_v29  ;;  %v1331_v15 = vld [vmem:[#allocation10 + $0x198] sm:$0xff] }
 0x4ed   :  { %1142 = vmatpush.msrb.mxu1 %v1104_v14  ;;  %v1340_v14 = vld [vmem:[#allocation10 + $0x1e0] sm:$0xff] }
 0x4ee   :  { %1070 = vmatpush.msrb.mxu0 %v1017_v21  ;;  %1050 = vmatpush.msrb.mxu3 %v1016_v33  ;;  %v1244_v21 = vld [vmem:[#allocation8 + $0x1b8] sm:$0xff]  ;;  %v1350_v33 = vld [vmem:[#allocation10 + $0x230] sm:$0xff] }
 0x4ef   :  { %1143 = vmatpush.msrb.mxu1 %v1101_v16  ;;  %v1337_v16 = vld [vmem:[#allocation10 + $0x1c8] sm:$0xff] }
 0x4f0   :  { %1071 = vmatpush.msrb.mxu0 %v1014_v25  ;;  %1051 = vmatpush.msrb.mxu3 %v1013_v36  ;;  %v1240_v25 = vld [vmem:[#allocation8 + $0x198] sm:$0xff] }
 0x4f1   :  { %1228 = vmatpush.msra.mxu1 %v5712_v9 }
 0x4f2   :  { %1072 = vmatpush.msrb.mxu0 %v1011_v27  ;;  %1052 = vmatpush.msrb.mxu3 %v1010_v40  ;;  %v1237_v27 = vld [vmem:[#allocation8 + $0x180] sm:$0xff] }
 0x4f3   :  { %1229 = vmatpush.msra.mxu1 %v5714_v10  ;;  %v1348_v40 = vld [vmem:[#allocation10 + $0x220] sm:$0xff] }
 0x4f4   :  { %1176 = vmatpush.msra.mxu0 %v1124_v28  ;;  %1156 = vmatpush.msra.mxu3 %v1123_v41  ;;  %v1238_v28 = vld [vmem:[#allocation8 + $0x188] sm:$0xff]  ;;  %v1344_v41 = vld [vmem:[#allocation10 + $0x200] sm:$0xff] }
 0x4f5   :  { %1230 = vmatpush.msra.mxu1 %v5717_v11 }
 0x4f6   :  { %1177 = vmatpush.msra.mxu0 %v1121_v30  ;;  %1157 = vmatpush.msra.mxu3 %v1120_v43  ;;  %v1341_v43 = vld [vmem:[#allocation10 + $0x1e8] sm:$0xff] }
 0x4f7   :  { %1231 = vmatpush.msra.mxu1 %v5720_v12 }
 0x4f8   :  { %1178 = vmatpush.msra.mxu0 %v1118_v35  ;;  %1158 = vmatpush.msra.mxu3 %v1117_v45  ;;  %v1351_v35 = vld [vmem:[#allocation10 + $0x238] sm:$0xff]  ;;  %v1338_v45 = vld [vmem:[#allocation10 + $0x1d0] sm:$0xff] }
 0x4fa   :  { %1179 = vmatpush.msra.mxu0 %v1115_v39  ;;  %1159 = vmatpush.msra.mxu3 %v1114_v51  ;;  %v1347_v39 = vld [vmem:[#allocation10 + $0x218] sm:$0xff]  ;;  %v1336_v51 = vld [vmem:[#allocation10 + $0x1c0] sm:$0xff] }
 0x4fc   :  { %1180 = vmatpush.msra.mxu0 %v1112_v42  ;;  %1160 = vmatpush.msra.mxu3 %v1111_v38  ;;  %v1345_v42 = vld [vmem:[#allocation10 + $0x208] sm:$0xff]  ;;  %v1330_v38 = vld [vmem:[#allocation10 + $0x190] sm:$0xff] }
 0x4fe   :  { %1181 = vmatpush.msra.mxu0 %v1109_v44  ;;  %1161 = vmatpush.msra.mxu3 %v1108_v47  ;;  %v1342_v44 = vld [vmem:[#allocation10 + $0x1f0] sm:$0xff] }
 0x500   :  { %1182 = vmatpush.msra.mxu0 %v1106_v48  ;;  %1162 = vmatpush.msra.mxu3 %v1105_v54  ;;  %v1339_v48 = vld [vmem:[#allocation10 + $0x1d8] sm:$0xff]  ;;  %v1480_v54 = vld [vmem:[#allocation8 + $0x2c0] sm:$0xff] }
 0x502   :  { %1183 = vmatpush.msra.mxu0 %v1103_v31  ;;  %1163 = vmatpush.msra.mxu3 %v1102_v56  ;;  %v1332_v31 = vld [vmem:[#allocation10 + $0x1a0] sm:$0xff]  ;;  %v1487_v56 = vld [vmem:[#allocation8 + $0x2f8] sm:$0xff] }
 0x53d   :  { %v5748_v37 = vpop.f32.mrf.mxu2 }
 0x545   :  { %v5750_v50 = vpop.f32.mrf.mxu2 }
 0x546   :  { %4800 = vmatmul.msk.f32.vlgmr.msrb.gmra.mxu1 %vm232_vm0, %v5750_v50 }
 0x547   :  { %1312 = vmatpush.msrb.mxu1 %v1260_v49 }
 0x549   :  { %1313 = vmatpush.msrb.mxu1 %v1257_v32  ;;  %v1333_v32 = vld [vmem:[#allocation10 + $0x1a8] sm:$0xff] }
 0x54b   :  { %1314 = vmatpush.msrb.mxu1 %v1254_v34  ;;  %v1329_v34 = vld [vmem:[#allocation10 + $0x188] sm:$0xff] }
 0x54d   :  { %1315 = vmatpush.msrb.mxu1 %v1251_v46  ;;  %v4812_v46 = vld [vmem:[%s6314_s8 + $0x6] sm:$0x3] }
 0x54e   :  { %4805 = vmatmul.msk.f32.vlgmr.msra.gmra.mxu1 %vm322_vm2, %v4803_v52 }
 0x54f   :  { %1316 = vmatpush.msrb.mxu1 %v1248_v53  ;;  %v1483_v53 = vld [vmem:[#allocation8 + $0x2d8] sm:$0xff] }
 0x551   :  { %1317 = vmatpush.msrb.mxu1 %v1245_v55  ;;  %v1477_v55 = vld [vmem:[#allocation8 + $0x2a8] sm:$0xff] }
 0x553   :  { %1318 = vmatpush.msrb.mxu1 %v1242_v57 }
 0x555   :  { %1319 = vmatpush.msrb.mxu1 %v1239_v58  ;;  %v1576_v58 = vld [vmem:[#allocation10 + $0x2e8] sm:$0xff] }
 0x557   :  { %1435 = vmatpush.msra.mxu1 %v5690_v63 }
 0x559   :  { %1436 = vmatpush.msra.mxu1 %v5692_v1 }
 0x55b   :  { %1437 = vmatpush.msra.mxu1 %v5697_v2 }
 0x55d   :  { %1438 = vmatpush.msra.mxu1 %v5702_v3  ;;  %v5776_v29 = vpop.f32.mrf.mxu1 }
 0x55e   :  { %v5762_v59 = vpop.f32.mrf.mxu0 }
 0x565   :  { %v5778_v30 = vpop.f32.mrf.mxu1 }
 0x566   :  { %v986_v61 = vpop.f32.mrf.mxu0 }
 0x567   :  { %4797 = vmatmul.msk.f32.vlgmr.msrb.gmra.mxu3 %vm232_vm0, %v986_v61  ;;  %4798 = vmatmul.msk.f32.vlgmr.msrb.gmra.mxu0 %vm232_vm0, %v986_v61 }
 0x568   :  { %4799 = vmatmul.msk.f32.vlgmr.msrb.gmra.mxu2 %vm232_vm0, %v986_v61  ;;  %1363 = vmatpush.msrb.mxu0 %v1349_v60  ;;  %v1485_v60 = vld [vmem:[#allocation8 + $0x2e8] sm:$0xff]  ;;  %v1484_v61 = vld [vmem:[#allocation8 + $0x2e0] sm:$0xff] }
 0x569   :  { %1272 = vmatpush.msrb.mxu2 %v1258_v62  ;;  %1292 = vmatpush.msrb.mxu3 %v1259_v0  ;;  %v1474_v62 = vld [vmem:[#allocation8 + $0x290] sm:$0xff] }
 0x56a   :  { %1364 = vmatpush.msrb.mxu0 %v1346_v4  ;;  %v1573_v0 = vld [vmem:[#allocation10 + $0x2d0] sm:$0xff] }
 0x56b   :  { %1273 = vmatpush.msrb.mxu2 %v1255_v5  ;;  %1293 = vmatpush.msrb.mxu3 %v1256_v6  ;;  %v1482_v4 = vld [vmem:[#allocation8 + $0x2d0] sm:$0xff]  ;;  %v1481_v5 = vld [vmem:[#allocation8 + $0x2c8] sm:$0xff]  ;;  %v1471_v6 = vld [vmem:[#allocation8 + $0x278] sm:$0xff] }
 0x56c   :  { %1365 = vmatpush.msrb.mxu0 %v1343_v7  ;;  %v1570_v7 = vld [vmem:[#allocation10 + $0x2b8] sm:$0xff] }
 0x56d   :  { %1274 = vmatpush.msrb.mxu2 %v1252_v8  ;;  %1294 = vmatpush.msrb.mxu3 %v1253_v13  ;;  %v1479_v8 = vld [vmem:[#allocation8 + $0x2b8] sm:$0xff]  ;;  %v1478_v13 = vld [vmem:[#allocation8 + $0x2b0] sm:$0xff] }
 0x56e   :  { %1366 = vmatpush.msrb.mxu0 %v1340_v14  ;;  %v1468_v14 = vld [vmem:[#allocation8 + $0x260] sm:$0xff] }
 0x56f   :  { %4801 = vmatmul.msk.f32.vlgmr.msra.gmra.mxu3 %vm232_vm0, %v5750_v50  ;;  %4802 = vmatmul.msk.f32.vlgmr.msra.gmra.mxu0 %vm232_vm0, %v5750_v50  ;;  %v1335_v50 = vld [vmem:[#allocation10 + $0x1b8] sm:$0xff] }
 0x570   :  { %4804 = vmatmul.msk.f32.vlgmr.msra.gmra.mxu2 %vm322_vm2, %v4803_v52  ;;  %1367 = vmatpush.msrb.mxu0 %v1337_v16  ;;  %v1486_v52 = vld [vmem:[#allocation8 + $0x2f0] sm:$0xff]  ;;  %v1567_v16 = vld [vmem:[#allocation10 + $0x2a0] sm:$0xff] }
 0x571   :  { %1275 = vmatpush.msrb.mxu2 %v1249_v17  ;;  %1295 = vmatpush.msrb.mxu3 %v1250_v18  ;;  %v1475_v17 = vld [vmem:[#allocation8 + $0x298] sm:$0xff]  ;;  %v1564_v18 = vld [vmem:[#allocation10 + $0x288] sm:$0xff] }
 0x572   :  { %1368 = vmatpush.msrb.mxu0 %v1334_v19  ;;  %v1476_v19 = vld [vmem:[#allocation8 + $0x2a0] sm:$0xff] }
 0x573   :  { %1276 = vmatpush.msrb.mxu2 %v1246_v20  ;;  %1296 = vmatpush.msrb.mxu3 %v1247_v22  ;;  %v1465_v20 = vld [vmem:[#allocation8 + $0x248] sm:$0xff]  ;;  %v1472_v22 = vld [vmem:[#allocation8 + $0x280] sm:$0xff] }
 0x574   :  { %1369 = vmatpush.msrb.mxu0 %v1331_v15  ;;  %v1561_v15 = vld [vmem:[#allocation10 + $0x270] sm:$0xff] }
 0x575   :  { %1277 = vmatpush.msrb.mxu2 %v1243_v23  ;;  %1297 = vmatpush.msrb.mxu3 %v1244_v21  ;;  %v1473_v23 = vld [vmem:[#allocation8 + $0x288] sm:$0xff]  ;;  %v1578_v21 = vld [vmem:[#allocation10 + $0x2f8] sm:$0xff] }
 0x576   :  { %1370 = vmatpush.msrb.mxu0 %v1328_v24  ;;  %v1469_v24 = vld [vmem:[#allocation8 + $0x268] sm:$0xff] }
 0x577   :  { %1278 = vmatpush.msrb.mxu2 %v1240_v25  ;;  %1298 = vmatpush.msrb.mxu3 %v1241_v26  ;;  %v1558_v25 = vld [vmem:[#allocation10 + $0x258] sm:$0xff]  ;;  %v1470_v26 = vld [vmem:[#allocation8 + $0x270] sm:$0xff] }
 0x578   :  { %1455 = vmatpush.msra.mxu0 %v5712_v9 }
 0x579   :  { %1279 = vmatpush.msrb.mxu2 %v1237_v27  ;;  %1299 = vmatpush.msrb.mxu3 %v1238_v28  ;;  %v1466_v27 = vld [vmem:[#allocation8 + $0x250] sm:$0xff]  ;;  %v1555_v28 = vld [vmem:[#allocation10 + $0x240] sm:$0xff] }
 0x57a   :  { %1456 = vmatpush.msra.mxu0 %v5714_v10 }
 0x57b   :  { %1383 = vmatpush.msra.mxu2 %v1350_v33  ;;  %1403 = vmatpush.msra.mxu3 %v1351_v35  ;;  %v1467_v33 = vld [vmem:[#allocation8 + $0x258] sm:$0xff]  ;;  %v1464_v35 = vld [vmem:[#allocation8 + $0x240] sm:$0xff] }
 0x57c   :  { %1457 = vmatpush.msra.mxu0 %v5717_v11 }
 0x57d   :  { %1384 = vmatpush.msra.mxu2 %v1347_v39  ;;  %1404 = vmatpush.msra.mxu3 %v1348_v40  ;;  %v1577_v39 = vld [vmem:[#allocation10 + $0x2f0] sm:$0xff]  ;;  %v1574_v40 = vld [vmem:[#allocation10 + $0x2d8] sm:$0xff] }
 0x57e   :  { %1458 = vmatpush.msra.mxu0 %v5720_v12 }
 0x57f   :  { %1385 = vmatpush.msra.mxu2 %v1344_v41  ;;  %1405 = vmatpush.msra.mxu3 %v1345_v42  ;;  %v1575_v41 = vld [vmem:[#allocation10 + $0x2e0] sm:$0xff] }
 0x580   :  { %v1571_v42 = vld [vmem:[#allocation10 + $0x2c0] sm:$0xff] }
 0x581   :  { %1386 = vmatpush.msra.mxu2 %v1341_v43  ;;  %1406 = vmatpush.msra.mxu3 %v1342_v44  ;;  %v1572_v43 = vld [vmem:[#allocation10 + $0x2c8] sm:$0xff] }
 0x583   :  { %1387 = vmatpush.msra.mxu2 %v1338_v45  ;;  %1407 = vmatpush.msra.mxu3 %v1339_v48 }
 0x585   :  { %1388 = vmatpush.msra.mxu2 %v1335_v50  ;;  %1408 = vmatpush.msra.mxu3 %v1336_v51  ;;  %v1569_v50 = vld [vmem:[#allocation10 + $0x2b0] sm:$0xff] }
 0x586   :  { %v1565_v51 = vld [vmem:[#allocation10 + $0x290] sm:$0xff] }
 0x587   :  { %1389 = vmatpush.msra.mxu2 %v1332_v31  ;;  %1409 = vmatpush.msra.mxu3 %v1333_v32  ;;  %v1566_v31 = vld [vmem:[#allocation10 + $0x298] sm:$0xff] }
 0x588   :  { %v1562_v32 = vld [vmem:[#allocation10 + $0x278] sm:$0xff] }
 0x589   :  { %1390 = vmatpush.msra.mxu2 %v1329_v34  ;;  %1410 = vmatpush.msra.mxu3 %v1330_v38  ;;  %v1563_v34 = vld [vmem:[#allocation10 + $0x280] sm:$0xff] }
 0x5c3   :  { %v5780_v36 = vpop.f32.mrf.mxu1 }
 0x5cb   :  { %v1233_v49 = vpop.f32.mrf.mxu1 }
 0x5cc   :  { %4809 = vmatmul.msk.f32.vlgmr.msrb.gmra.mxu0 %vm232_vm0, %v1233_v49 }
 0x5cd   :  { %1519 = vmatpush.msrb.mxu0 %v1486_v52  ;;  %v1560_v52 = vld [vmem:[#allocation10 + $0x268] sm:$0xff] }
 0x5cf   :  { %1520 = vmatpush.msrb.mxu0 %v1483_v53  ;;  %v1556_v53 = vld [vmem:[#allocation10 + $0x248] sm:$0xff] }
 0x5d1   :  { %1521 = vmatpush.msrb.mxu0 %v1480_v54  ;;  %v1557_v54 = vld [vmem:[#allocation10 + $0x250] sm:$0xff] }
 0x5d3   :  { %1522 = vmatpush.msrb.mxu0 %v1477_v55  ;;  %v4821_v55 = vld [vmem:[%s6314_s8 + $0x8] sm:$0x3] }
 0x5d4   :  { %4814 = vmatmul.msk.f32.vlgmr.msra.gmra.mxu0 %vm322_vm2, %v4812_v46 }
 0x5d5   :  { %1523 = vmatpush.msrb.mxu0 %v1474_v62  ;;  %v1714_v62 = vld [vmem:[#allocation8 + $0x3b8] sm:$0xff] }
 0x5d7   :  { %1524 = vmatpush.msrb.mxu0 %v1471_v6  ;;  %v1711_v6 = vld [vmem:[#allocation8 + $0x3a0] sm:$0xff] }
 0x5d9   :  { %1525 = vmatpush.msrb.mxu0 %v1468_v14  ;;  %v1708_v14 = vld [vmem:[#allocation8 + $0x388] sm:$0xff] }
 0x5db   :  { %1526 = vmatpush.msrb.mxu0 %v1465_v20  ;;  %v1695_v20 = vld [vmem:[#allocation8 + $0x320] sm:$0xff] }
 0x5dd   :  { %1630 = vmatpush.msra.mxu0 %v1578_v21  ;;  %v1703_v21 = vld [vmem:[#allocation8 + $0x360] sm:$0xff] }
 0x5df   :  { %1631 = vmatpush.msra.mxu0 %v1575_v41  ;;  %v1694_v41 = vld [vmem:[#allocation8 + $0x318] sm:$0xff] }
 0x5e1   :  { %1632 = vmatpush.msra.mxu0 %v1572_v43  ;;  %v5830_v43 = vpop.f32.mrf.mxu3 }
 0x5e3   :  { %1633 = vmatpush.msra.mxu0 %v1569_v50 }
 0x5e4   :  { %v5803_v44 = vpop.f32.mrf.mxu0 }
 0x5e5   :  { %1634 = vmatpush.msra.mxu0 %v1566_v31 }
 0x5e7   :  { %1635 = vmatpush.msra.mxu0 %v1563_v34  ;;  %v1804_v34 = vld [vmem:[#allocation10 + $0x3b0] sm:$0xff] }
 0x5e9   :  { %1636 = vmatpush.msra.mxu0 %v1560_v52  ;;  %v1801_v52 = vld [vmem:[#allocation10 + $0x398] sm:$0xff] }
 0x5eb   :  { %v5787_v47 = vpop.f32.mrf.mxu2  ;;  %1637 = vmatpush.msra.mxu0 %v1557_v54  ;;  %v1798_v54 = vld [vmem:[#allocation10 + $0x380] sm:$0xff] }
 0x5ec   :  { %v5805_v45 = vpop.f32.mrf.mxu0 }
 0x5f3   :  { %v1213_v57 = vpop.f32.mrf.mxu2 }
 0x5f4   :  { %4806 = vmatmul.msk.f32.vlgmr.msrb.gmra.mxu2 %vm232_vm0, %v1213_v57  ;;  %4807 = vmatmul.msk.f32.vlgmr.msrb.gmra.mxu3 %vm232_vm0, %v1213_v57 }
 0x5f5   :  { %4808 = vmatmul.msk.f32.vlgmr.msrb.gmra.mxu1 %vm232_vm0, %v1213_v57  ;;  %1539 = vmatpush.msrb.mxu2 %v1487_v56  ;;  %v1713_v57 = vld [vmem:[#allocation8 + $0x3b0] sm:$0xff] }
 0x5f6   :  { %1590 = vmatpush.msrb.mxu3 %v1576_v58  ;;  %1499 = vmatpush.msrb.mxu1 %v1485_v60  ;;  %v1710_v58 = vld [vmem:[#allocation8 + $0x398] sm:$0xff]  ;;  %v1707_v60 = vld [vmem:[#allocation8 + $0x380] sm:$0xff] }
 0x5f7   :  { %1540 = vmatpush.msrb.mxu2 %v1484_v61  ;;  %v1704_v61 = vld [vmem:[#allocation8 + $0x368] sm:$0xff] }
 0x5f8   :  { %1591 = vmatpush.msrb.mxu3 %v1573_v0  ;;  %1500 = vmatpush.msrb.mxu1 %v1482_v4  ;;  %v1803_v4 = vld [vmem:[#allocation10 + $0x3a8] sm:$0xff] }
 0x5f9   :  { %1541 = vmatpush.msrb.mxu2 %v1481_v5  ;;  %v1712_v5 = vld [vmem:[#allocation8 + $0x3a8] sm:$0xff] }
 0x5fa   :  { %1592 = vmatpush.msrb.mxu3 %v1570_v7  ;;  %1501 = vmatpush.msrb.mxu1 %v1479_v8  ;;  %v1701_v7 = vld [vmem:[#allocation8 + $0x350] sm:$0xff] }
 0x5fb   :  { %1542 = vmatpush.msrb.mxu2 %v1478_v13  ;;  %v1800_v8 = vld [vmem:[#allocation10 + $0x390] sm:$0xff] }
 0x5fc   :  { %1593 = vmatpush.msrb.mxu3 %v1567_v16  ;;  %4810 = vmatmul.msk.f32.vlgmr.msra.gmra.mxu2 %vm232_vm0, %v1233_v49  ;;  %v1709_v13 = vld [vmem:[#allocation8 + $0x390] sm:$0xff]  ;;  %v1698_v16 = vld [vmem:[#allocation8 + $0x338] sm:$0xff] }
 0x5fd   :  { %4811 = vmatmul.msk.f32.vlgmr.msra.gmra.mxu3 %vm232_vm0, %v1233_v49  ;;  %4813 = vmatmul.msk.f32.vlgmr.msra.gmra.mxu1 %vm322_vm2, %v4812_v46  ;;  %v1568_v49 = vld [vmem:[#allocation10 + $0x2a8] sm:$0xff]  ;;  %v1559_v46 = vld [vmem:[#allocation10 + $0x260] sm:$0xff] }
 0x5fe   :  { %1543 = vmatpush.msrb.mxu2 %v1475_v17  ;;  %1594 = vmatpush.msrb.mxu3 %v1564_v18  ;;  %v1797_v17 = vld [vmem:[#allocation10 + $0x378] sm:$0xff] }
 0x5ff   :  { %1502 = vmatpush.msrb.mxu1 %v1476_v19  ;;  %v1706_v18 = vld [vmem:[#allocation8 + $0x378] sm:$0xff]  ;;  %v1705_v19 = vld [vmem:[#allocation8 + $0x370] sm:$0xff] }
 0x600   :  { %1544 = vmatpush.msrb.mxu2 %v1472_v22  ;;  %1595 = vmatpush.msrb.mxu3 %v1561_v15  ;;  %v1794_v22 = vld [vmem:[#allocation10 + $0x360] sm:$0xff]  ;;  %v1702_v15 = vld [vmem:[#allocation8 + $0x358] sm:$0xff] }
 0x601   :  { %1503 = vmatpush.msrb.mxu1 %v1473_v23  ;;  %v1791_v23 = vld [vmem:[#allocation10 + $0x348] sm:$0xff] }
 0x602   :  { %1545 = vmatpush.msrb.mxu2 %v1469_v24  ;;  %1596 = vmatpush.msrb.mxu3 %v1558_v25  ;;  %v1692_v24 = vld [vmem:[#allocation8 + $0x308] sm:$0xff]  ;;  %v1699_v25 = vld [vmem:[#allocation8 + $0x340] sm:$0xff] }
 0x603   :  { %1504 = vmatpush.msrb.mxu1 %v1470_v26  ;;  %v1788_v26 = vld [vmem:[#allocation10 + $0x330] sm:$0xff] }
 0x604   :  { %1546 = vmatpush.msrb.mxu2 %v1466_v27  ;;  %1597 = vmatpush.msrb.mxu3 %v1555_v28  ;;  %v1700_v27 = vld [vmem:[#allocation8 + $0x348] sm:$0xff] }
 0x605   :  { %1505 = vmatpush.msrb.mxu1 %v1467_v33  ;;  %v1696_v28 = vld [vmem:[#allocation8 + $0x328] sm:$0xff]  ;;  %v1785_v33 = vld [vmem:[#allocation10 + $0x318] sm:$0xff] }
 0x606   :  { %1662 = vmatpush.msra.mxu2 %v5690_v63  ;;  %1682 = vmatpush.msra.mxu3 %v5712_v9 }
 0x607   :  { %1506 = vmatpush.msrb.mxu1 %v1464_v35  ;;  %v1697_v35 = vld [vmem:[#allocation8 + $0x330] sm:$0xff] }
 0x608   :  { %1663 = vmatpush.msra.mxu2 %v5692_v1  ;;  %1683 = vmatpush.msra.mxu3 %v5714_v10 }
 0x609   :  { %1610 = vmatpush.msra.mxu1 %v1577_v39  ;;  %v1693_v39 = vld [vmem:[#allocation8 + $0x310] sm:$0xff] }
 0x60a   :  { %1664 = vmatpush.msra.mxu2 %v5697_v2  ;;  %1684 = vmatpush.msra.mxu3 %v5717_v11 }
 0x60b   :  { %1611 = vmatpush.msra.mxu1 %v1574_v40  ;;  %v1782_v40 = vld [vmem:[#allocation10 + $0x300] sm:$0xff] }
 0x60c   :  { %1665 = vmatpush.msra.mxu2 %v5702_v3  ;;  %1685 = vmatpush.msra.mxu3 %v5720_v12 }
 0x60d   :  { %1612 = vmatpush.msra.mxu1 %v1571_v42  ;;  %v1691_v42 = vld [vmem:[#allocation8 + $0x300] sm:$0xff] }
 0x60f   :  { %1613 = vmatpush.msra.mxu1 %v1568_v49  ;;  %v5832_v49 = vpop.f32.mrf.mxu3 }
 0x611   :  { %1614 = vmatpush.msra.mxu1 %v1565_v51 }
 0x613   :  { %1615 = vmatpush.msra.mxu1 %v1562_v32 }
 0x615   :  { %1616 = vmatpush.msra.mxu1 %v1559_v46 }
 0x617   :  { %1617 = vmatpush.msra.mxu1 %v1556_v53  ;;  %v5834_v50 = vpop.f32.mrf.mxu3  ;;  %v1802_v53 = vld [vmem:[#allocation10 + $0x3a0] sm:$0xff] }
 0x61f   :  { %v5836_v51 = vpop.f32.mrf.mxu3 }
 0x649   :  { %v5807_v48 = vpop.f32.mrf.mxu0 }
 0x651   :  { %v1460_v38 = vpop.f32.mrf.mxu0 }
 0x652   :  { %4818 = vmatmul.msk.f32.vlgmr.msrb.gmra.mxu3 %vm232_vm0, %v1460_v38 }
 0x653   :  { %1746 = vmatpush.msrb.mxu3 %v1713_v57  ;;  %v1795_v57 = vld [vmem:[#allocation10 + $0x368] sm:$0xff] }
 0x655   :  { %1747 = vmatpush.msrb.mxu3 %v1710_v58  ;;  %v1796_v58 = vld [vmem:[#allocation10 + $0x370] sm:$0xff] }
 0x657   :  { %1748 = vmatpush.msrb.mxu3 %v1707_v60  ;;  %v1792_v60 = vld [vmem:[#allocation10 + $0x350] sm:$0xff] }
 0x659   :  { %1749 = vmatpush.msrb.mxu3 %v1704_v61  ;;  %v1793_v61 = vld [vmem:[#allocation10 + $0x358] sm:$0xff] }
 0x65a   :  { %4823 = vmatmul.msk.f32.vlgmr.msra.gmra.mxu3 %vm322_vm2, %v4821_v55 }
 0x65b   :  { %1750 = vmatpush.msrb.mxu3 %v1701_v7  ;;  %v1783_v7 = vld [vmem:[#allocation10 + $0x308] sm:$0xff] }
 0x65d   :  { %1751 = vmatpush.msrb.mxu3 %v1698_v16 }
 0x65f   :  { %1752 = vmatpush.msrb.mxu3 %v1695_v20  ;;  %v1934_v20 = vld [vmem:[#allocation8 + $0x440] sm:$0xff] }
 0x661   :  { %1753 = vmatpush.msrb.mxu3 %v1692_v24  ;;  %v1939_v24 = vld [vmem:[#allocation8 + $0x468] sm:$0xff] }
 0x672   :  { %v5814_v56 = vpop.f32.mrf.mxu1 }
 0x677   :  { %v5838_v31 = vpop.f32.mrf.mxu3 }
 0x67a   :  { %v1440_v0 = vpop.f32.mrf.mxu1 }
 0x67b   :  { %4815 = vmatmul.msk.f32.vlgmr.msrb.gmra.mxu1 %vm232_vm0, %v1440_v0  ;;  %4816 = vmatmul.msk.f32.vlgmr.msrb.gmra.mxu0 %vm232_vm0, %v1440_v0 }
 0x67c   :  { %4817 = vmatmul.msk.f32.vlgmr.msrb.gmra.mxu2 %vm232_vm0, %v1440_v0  ;;  %1766 = vmatpush.msrb.mxu1 %v1714_v62  ;;  %v1789_v62 = vld [vmem:[#allocation10 + $0x338] sm:$0xff]  ;;  %v1790_v0 = vld [vmem:[#allocation10 + $0x340] sm:$0xff] }
 0x67d   :  { %1817 = vmatpush.msrb.mxu0 %v1803_v4  ;;  %1726 = vmatpush.msrb.mxu2 %v1712_v5  ;;  %v1786_v5 = vld [vmem:[#allocation10 + $0x320] sm:$0xff] }
 0x67e   :  { %1767 = vmatpush.msrb.mxu1 %v1711_v6  ;;  %v1787_v6 = vld [vmem:[#allocation10 + $0x328] sm:$0xff] }
 0x67f   :  { %1818 = vmatpush.msrb.mxu0 %v1800_v8  ;;  %1727 = vmatpush.msrb.mxu2 %v1709_v13  ;;  %v1784_v8 = vld [vmem:[#allocation10 + $0x310] sm:$0xff]  ;;  %v4830_v13 = vld [vmem:[%s6314_s8 + $0xa] sm:$0x3] }
 0x680   :  { %1768 = vmatpush.msrb.mxu1 %v1708_v14  ;;  %v5840_v32 = vpop.f32.mrf.mxu3  ;;  %v5848_v14 = vpop.f32.mrf.mxu2 }
 0x681   :  { %1819 = vmatpush.msrb.mxu0 %v1797_v17  ;;  %1728 = vmatpush.msrb.mxu2 %v1706_v18  ;;  %v1940_v18 = vld [vmem:[#allocation8 + $0x470] sm:$0xff] }
 0x682   :  { %1769 = vmatpush.msrb.mxu1 %v1705_v19  ;;  %v1937_v19 = vld [vmem:[#allocation8 + $0x458] sm:$0xff] }
 0x683   :  { %1820 = vmatpush.msrb.mxu0 %v1794_v22  ;;  %4819 = vmatmul.msk.f32.vlgmr.msra.gmra.mxu1 %vm232_vm0, %v1460_v38  ;;  %v1931_v22 = vld [vmem:[#allocation8 + $0x428] sm:$0xff] }
 0x684   :  { %4820 = vmatmul.msk.f32.vlgmr.msra.gmra.mxu0 %vm232_vm0, %v1460_v38  ;;  %4822 = vmatmul.msk.f32.vlgmr.msra.gmra.mxu2 %vm322_vm2, %v4821_v55  ;;  %v1805_v38 = vld [vmem:[#allocation10 + $0x3b8] sm:$0xff]  ;;  %v1799_v55 = vld [vmem:[#allocation10 + $0x388] sm:$0xff] }
 0x685   :  { %1770 = vmatpush.msrb.mxu1 %v1702_v15  ;;  %1821 = vmatpush.msrb.mxu0 %v1791_v23  ;;  %v1941_v15 = vld [vmem:[#allocation8 + $0x478] sm:$0xff] }
 0x686   :  { %1729 = vmatpush.msrb.mxu2 %v1703_v21  ;;  %1857 = vmatpush.msra.mxu3 %v1805_v38  ;;  %v2030_v21 = vld [vmem:[#allocation10 + $0x468] sm:$0xff]  ;;  %v1929_v38 = vld [vmem:[#allocation8 + $0x418] sm:$0xff] }
 0x687   :  { %1771 = vmatpush.msrb.mxu1 %v1699_v25  ;;  %1822 = vmatpush.msrb.mxu0 %v1788_v26  ;;  %v1938_v25 = vld [vmem:[#allocation8 + $0x460] sm:$0xff]  ;;  %v1928_v26 = vld [vmem:[#allocation8 + $0x410] sm:$0xff] }
 0x688   :  { %1730 = vmatpush.msrb.mxu2 %v1700_v27  ;;  %1858 = vmatpush.msra.mxu3 %v1802_v53  ;;  %v5851_v16 = vpop.f32.mrf.mxu2  ;;  %v2027_v27 = vld [vmem:[#allocation10 + $0x450] sm:$0xff]  ;;  %v1930_v53 = vld [vmem:[#allocation8 + $0x420] sm:$0xff] }
 0x689   :  { %1772 = vmatpush.msrb.mxu1 %v1696_v28  ;;  %1823 = vmatpush.msrb.mxu0 %v1785_v33  ;;  %v1936_v28 = vld [vmem:[#allocation8 + $0x450] sm:$0xff]  ;;  %v1935_v33 = vld [vmem:[#allocation8 + $0x448] sm:$0xff] }
 0x68a   :  { %1731 = vmatpush.msrb.mxu2 %v1697_v35  ;;  %1859 = vmatpush.msra.mxu3 %v1799_v55  ;;  %v1925_v35 = vld [vmem:[#allocation8 + $0x3f8] sm:$0xff]  ;;  %v1926_v55 = vld [vmem:[#allocation8 + $0x400] sm:$0xff] }
 0x68b   :  { %1773 = vmatpush.msrb.mxu1 %v1693_v39  ;;  %1824 = vmatpush.msrb.mxu0 %v1782_v40  ;;  %v2024_v39 = vld [vmem:[#allocation10 + $0x438] sm:$0xff] }
 0x68c   :  { %1732 = vmatpush.msrb.mxu2 %v1694_v41  ;;  %1860 = vmatpush.msra.mxu3 %v1796_v58  ;;  %v1933_v40 = vld [vmem:[#allocation8 + $0x438] sm:$0xff]  ;;  %v1932_v41 = vld [vmem:[#allocation8 + $0x430] sm:$0xff]  ;;  %v1927_v58 = vld [vmem:[#allocation8 + $0x408] sm:$0xff] }
 0x68d   :  { %1889 = vmatpush.msra.mxu1 %v5690_v63  ;;  %1909 = vmatpush.msra.mxu0 %v5712_v9 }
 0x68e   :  { %1733 = vmatpush.msrb.mxu2 %v1691_v42  ;;  %1861 = vmatpush.msra.mxu3 %v1793_v61  ;;  %v1922_v42 = vld [vmem:[#allocation8 + $0x3e0] sm:$0xff]  ;;  %v1923_v61 = vld [vmem:[#allocation8 + $0x3e8] sm:$0xff] }
 0x68f   :  { %1890 = vmatpush.msra.mxu1 %v5692_v1  ;;  %1910 = vmatpush.msra.mxu0 %v5714_v10 }
 0x690   :  { %1837 = vmatpush.msra.mxu2 %v1804_v34  ;;  %1862 = vmatpush.msra.mxu3 %v1790_v0  ;;  %v2021_v34 = vld [vmem:[#allocation10 + $0x420] sm:$0xff]  ;;  %v1924_v0 = vld [vmem:[#allocation8 + $0x3f0] sm:$0xff] }
 0x691   :  { %1891 = vmatpush.msra.mxu1 %v5697_v2  ;;  %1911 = vmatpush.msra.mxu0 %v5717_v11 }
 0x692   :  { %1838 = vmatpush.msra.mxu2 %v1801_v52  ;;  %1863 = vmatpush.msra.mxu3 %v1787_v6  ;;  %v2018_v52 = vld [vmem:[#allocation10 + $0x408] sm:$0xff]  ;;  %v2009_v6 = vld [vmem:[#allocation10 + $0x3c0] sm:$0xff] }
 0x693   :  { %1892 = vmatpush.msra.mxu1 %v5702_v3  ;;  %1912 = vmatpush.msra.mxu0 %v5720_v12 }
 0x694   :  { %1839 = vmatpush.msra.mxu2 %v1798_v54  ;;  %1864 = vmatpush.msra.mxu3 %v1784_v8  ;;  %v1919_v54 = vld [vmem:[#allocation8 + $0x3c8] sm:$0xff]  ;;  %v2031_v8 = vld [vmem:[#allocation10 + $0x470] sm:$0xff] }
 0x696   :  { %1840 = vmatpush.msra.mxu2 %v1795_v57  ;;  %v2015_v57 = vld [vmem:[#allocation10 + $0x3f0] sm:$0xff] }
 0x698   :  { %1841 = vmatpush.msra.mxu2 %v1792_v60  ;;  %v2032_v60 = vld [vmem:[#allocation10 + $0x478] sm:$0xff] }
 0x69a   :  { %1842 = vmatpush.msra.mxu2 %v1789_v62  ;;  %v2012_v62 = vld [vmem:[#allocation10 + $0x3d8] sm:$0xff] }
 0x69c   :  { %1843 = vmatpush.msra.mxu2 %v1786_v5  ;;  %v1920_v5 = vld [vmem:[#allocation8 + $0x3d0] sm:$0xff] }
 0x69e   :  { %1844 = vmatpush.msra.mxu2 %v1783_v7  ;;  %v1918_v7 = vld [vmem:[#allocation8 + $0x3c0] sm:$0xff] }
 0x6d5   :  { %v5842_v46 = vpop.f32.mrf.mxu3 }
 0x6dd   :  { %v1687_v4 = vpop.f32.mrf.mxu3 }
 0x6de   :  { %4827 = vmatmul.msk.f32.vlgmr.msrb.gmra.mxu0 %vm232_vm0, %v1687_v4 }
 0x6df   :  { %1973 = vmatpush.msrb.mxu0 %v1940_v18  ;;  %v2029_v18 = vld [vmem:[#allocation10 + $0x460] sm:$0xff] }
 0x6e1   :  { %1974 = vmatpush.msrb.mxu0 %v1937_v19  ;;  %v2025_v19 = vld [vmem:[#allocation10 + $0x440] sm:$0xff] }
 0x6e3   :  { %1975 = vmatpush.msrb.mxu0 %v1934_v20  ;;  %v2026_v20 = vld [vmem:[#allocation10 + $0x448] sm:$0xff] }
 0x6e5   :  { %1976 = vmatpush.msrb.mxu0 %v1931_v22 }
 0x6e6   :  { %4832 = vmatmul.msk.f32.vlgmr.msra.gmra.mxu0 %vm322_vm2, %v4830_v13 }
 0x6e7   :  { %1977 = vmatpush.msrb.mxu0 %v1928_v26  ;;  %v2020_v26 = vld [vmem:[#allocation10 + $0x418] sm:$0xff] }
 0x6e9   :  { %1978 = vmatpush.msrb.mxu0 %v1925_v35  ;;  %v2013_v35 = vld [vmem:[#allocation10 + $0x3e0] sm:$0xff] }
 0x6eb   :  { %1979 = vmatpush.msrb.mxu0 %v1922_v42  ;;  %v4839_v42 = vld [vmem:[%s6314_s8 + $0xc] sm:$0x3] }
 0x6ed   :  { %1980 = vmatpush.msrb.mxu0 %v1919_v54  ;;  %v2164_v54 = vld [vmem:[#allocation8 + $0x518] sm:$0xff] }
 0x6ef   :  { %2084 = vmatpush.msra.mxu0 %v2032_v60 }
 0x6f1   :  { %2085 = vmatpush.msra.mxu0 %v2029_v18  ;;  %v2160_v18 = vld [vmem:[#allocation8 + $0x4f8] sm:$0xff] }
 0x6f3   :  { %2086 = vmatpush.msra.mxu0 %v2026_v20  ;;  %v2149_v20 = vld [vmem:[#allocation8 + $0x4a0] sm:$0xff] }
 0x6f8   :  { %v5869_v22 = vpop.f32.mrf.mxu0 }
 0x6ff   :  { %v5853_v17 = vpop.f32.mrf.mxu2 }
 0x707   :  { %v1667_v23 = vpop.f32.mrf.mxu2 }
 0x708   :  { %4824 = vmatmul.msk.f32.vlgmr.msrb.gmra.mxu2 %vm232_vm0, %v1667_v23  ;;  %4825 = vmatmul.msk.f32.vlgmr.msrb.gmra.mxu3 %vm232_vm0, %v1667_v23 }
 0x709   :  { %4826 = vmatmul.msk.f32.vlgmr.msrb.gmra.mxu1 %vm232_vm0, %v1667_v23  ;;  %1993 = vmatpush.msrb.mxu2 %v1941_v15  ;;  %v5871_v15 = vpop.f32.mrf.mxu0 }
 0x70a   :  { %2044 = vmatpush.msrb.mxu3 %v2030_v21  ;;  %1953 = vmatpush.msrb.mxu1 %v1939_v24  ;;  %v2022_v21 = vld [vmem:[#allocation10 + $0x428] sm:$0xff]  ;;  %v2023_v24 = vld [vmem:[#allocation10 + $0x430] sm:$0xff] }
 0x70b   :  { %1994 = vmatpush.msrb.mxu2 %v1938_v25  ;;  %2087 = vmatpush.msra.mxu0 %v2023_v24  ;;  %v2019_v25 = vld [vmem:[#allocation10 + $0x410] sm:$0xff]  ;;  %v2156_v24 = vld [vmem:[#allocation8 + $0x4d8] sm:$0xff] }
 0x70c   :  { %2045 = vmatpush.msrb.mxu3 %v2027_v27  ;;  %1954 = vmatpush.msrb.mxu1 %v1936_v28  ;;  %v2016_v27 = vld [vmem:[#allocation10 + $0x3f8] sm:$0xff]  ;;  %v2017_v28 = vld [vmem:[#allocation10 + $0x400] sm:$0xff] }
 0x70d   :  { %1995 = vmatpush.msrb.mxu2 %v1935_v33  ;;  %2088 = vmatpush.msra.mxu0 %v2020_v26  ;;  %v2157_v26 = vld [vmem:[#allocation8 + $0x4e0] sm:$0xff] }
 0x70e   :  { %2046 = vmatpush.msrb.mxu3 %v2024_v39  ;;  %1955 = vmatpush.msrb.mxu1 %v1933_v40  ;;  %v2014_v39 = vld [vmem:[#allocation10 + $0x3e8] sm:$0xff] }
 0x70f   :  { %1996 = vmatpush.msrb.mxu2 %v1932_v41  ;;  %2089 = vmatpush.msra.mxu0 %v2017_v28  ;;  %v2010_v40 = vld [vmem:[#allocation10 + $0x3c8] sm:$0xff]  ;;  %v2011_v41 = vld [vmem:[#allocation10 + $0x3d0] sm:$0xff]  ;;  %v2153_v28 = vld [vmem:[#allocation8 + $0x4c0] sm:$0xff] }
 0x710   :  { %2047 = vmatpush.msrb.mxu3 %v2021_v34  ;;  %4828 = vmatmul.msk.f32.vlgmr.msra.gmra.mxu2 %vm232_vm0, %v1687_v4  ;;  %v5879_v34 = vpop.f32.mrf.mxu1 }
 0x711   :  { %4829 = vmatmul.msk.f32.vlgmr.msra.gmra.mxu3 %vm232_vm0, %v1687_v4  ;;  %4831 = vmatmul.msk.f32.vlgmr.msra.gmra.mxu1 %vm322_vm2, %v4830_v13  ;;  %v1921_v4 = vld [vmem:[#allocation8 + $0x3d8] sm:$0xff] }
 0x712   :  { %1997 = vmatpush.msrb.mxu2 %v1929_v38  ;;  %2048 = vmatpush.msrb.mxu3 %v2018_v52  ;;  %v2028_v13 = vld [vmem:[#allocation10 + $0x458] sm:$0xff] }
 0x713   :  { %1956 = vmatpush.msrb.mxu1 %v1930_v53  ;;  %2090 = vmatpush.msra.mxu0 %v2014_v39  ;;  %v2167_v53 = vld [vmem:[#allocation8 + $0x530] sm:$0xff]  ;;  %v2154_v39 = vld [vmem:[#allocation8 + $0x4c8] sm:$0xff] }
 0x714   :  { %1998 = vmatpush.msrb.mxu2 %v1926_v55  ;;  %2049 = vmatpush.msrb.mxu3 %v2015_v57  ;;  %v2161_v55 = vld [vmem:[#allocation8 + $0x500] sm:$0xff]  ;;  %v2158_v57 = vld [vmem:[#allocation8 + $0x4e8] sm:$0xff] }
 0x715   :  { %1957 = vmatpush.msrb.mxu1 %v1927_v58  ;;  %2091 = vmatpush.msra.mxu0 %v2011_v41  ;;  %v2168_v58 = vld [vmem:[#allocation8 + $0x538] sm:$0xff] }
 0x716   :  { %1999 = vmatpush.msrb.mxu2 %v1923_v61  ;;  %2050 = vmatpush.msrb.mxu3 %v2012_v62  ;;  %v2257_v61 = vld [vmem:[#allocation10 + $0x528] sm:$0xff]  ;;  %v2239_v41 = vld [vmem:[#allocation10 + $0x498] sm:$0xff] }
 0x717   :  { %1958 = vmatpush.msrb.mxu1 %v1924_v0  ;;  %v2166_v62 = vld [vmem:[#allocation8 + $0x528] sm:$0xff]  ;;  %v2165_v0 = vld [vmem:[#allocation8 + $0x520] sm:$0xff] }
 0x718   :  { %2000 = vmatpush.msrb.mxu2 %v1920_v5  ;;  %2051 = vmatpush.msrb.mxu3 %v2009_v6  ;;  %v5882_v38 = vpop.f32.mrf.mxu1  ;;  %v2155_v5 = vld [vmem:[#allocation8 + $0x4d0] sm:$0xff] }
 0x719   :  { %1959 = vmatpush.msrb.mxu1 %v1921_v4  ;;  %v2254_v6 = vld [vmem:[#allocation10 + $0x510] sm:$0xff] }
 0x71a   :  { %2116 = vmatpush.msra.mxu2 %v5690_v63  ;;  %2136 = vmatpush.msra.mxu3 %v5712_v9  ;;  %v2163_v4 = vld [vmem:[#allocation8 + $0x510] sm:$0xff] }
 0x71b   :  { %1960 = vmatpush.msrb.mxu1 %v1918_v7  ;;  %v2162_v7 = vld [vmem:[#allocation8 + $0x508] sm:$0xff] }
 0x71c   :  { %2117 = vmatpush.msra.mxu2 %v5692_v1  ;;  %2137 = vmatpush.msra.mxu3 %v5714_v10 }
 0x71d   :  { %2064 = vmatpush.msra.mxu1 %v2031_v8  ;;  %v2152_v8 = vld [vmem:[#allocation8 + $0x4b8] sm:$0xff] }
 0x71e   :  { %2118 = vmatpush.msra.mxu2 %v5697_v2  ;;  %2138 = vmatpush.msra.mxu3 %v5717_v11 }
 0x71f   :  { %2065 = vmatpush.msra.mxu1 %v2028_v13  ;;  %v2251_v13 = vld [vmem:[#allocation10 + $0x4f8] sm:$0xff] }
 0x720   :  { %2119 = vmatpush.msra.mxu2 %v5702_v3  ;;  %2139 = vmatpush.msra.mxu3 %v5720_v12 }
 0x721   :  { %2066 = vmatpush.msra.mxu1 %v2025_v19  ;;  %v2159_v19 = vld [vmem:[#allocation8 + $0x4f0] sm:$0xff] }
 0x723   :  { %2067 = vmatpush.msra.mxu1 %v2022_v21  ;;  %v2248_v21 = vld [vmem:[#allocation10 + $0x4e0] sm:$0xff] }
 0x725   :  { %2068 = vmatpush.msra.mxu1 %v2019_v25  ;;  %v2245_v25 = vld [vmem:[#allocation10 + $0x4c8] sm:$0xff] }
 0x727   :  { %2069 = vmatpush.msra.mxu1 %v2016_v27  ;;  %v2146_v27 = vld [vmem:[#allocation8 + $0x488] sm:$0xff] }
 0x729   :  { %2070 = vmatpush.msra.mxu1 %v2013_v35  ;;  %v2242_v35 = vld [vmem:[#allocation10 + $0x4b0] sm:$0xff] }
 0x72b   :  { %2071 = vmatpush.msra.mxu1 %v2010_v40  ;;  %v2150_v40 = vld [vmem:[#allocation8 + $0x4a8] sm:$0xff] }
 0x75b   :  { %v5873_v23 = vpop.f32.mrf.mxu0 }
 0x763   :  { %v1914_v33 = vpop.f32.mrf.mxu0 }
 0x764   :  { %4836 = vmatmul.msk.f32.vlgmr.msrb.gmra.mxu3 %vm232_vm0, %v1914_v33 }
 0x765   :  { %2200 = vmatpush.msrb.mxu3 %v2167_v53  ;;  %v2151_v53 = vld [vmem:[#allocation8 + $0x4b0] sm:$0xff] }
 0x767   :  { %2201 = vmatpush.msrb.mxu3 %v2164_v54  ;;  %v2147_v54 = vld [vmem:[#allocation8 + $0x490] sm:$0xff] }
 0x769   :  { %2202 = vmatpush.msrb.mxu3 %v2161_v55  ;;  %v2236_v55 = vld [vmem:[#allocation10 + $0x480] sm:$0xff] }
 0x76b   :  { %2203 = vmatpush.msrb.mxu3 %v2158_v57 }
 0x76c   :  { %4841 = vmatmul.msk.f32.vlgmr.msra.gmra.mxu3 %vm322_vm2, %v4839_v42 }
 0x76d   :  { %2204 = vmatpush.msrb.mxu3 %v2155_v5  ;;  %v2256_v5 = vld [vmem:[#allocation10 + $0x520] sm:$0xff] }
 0x76f   :  { %2205 = vmatpush.msrb.mxu3 %v2152_v8  ;;  %v2249_v8 = vld [vmem:[#allocation10 + $0x4e8] sm:$0xff] }
 0x771   :  { %2206 = vmatpush.msrb.mxu3 %v2149_v20  ;;  %v2247_v20 = vld [vmem:[#allocation10 + $0x4d8] sm:$0xff] }
 0x773   :  { %2207 = vmatpush.msrb.mxu3 %v2146_v27  ;;  %v2241_v27 = vld [vmem:[#allocation10 + $0x4a8] sm:$0xff] }
 0x786   :  { %v5884_v52 = vpop.f32.mrf.mxu1 }
 0x78b   :  { %v5900_v57 = vpop.f32.mrf.mxu3 }
 0x78e   :  { %v1894_v60 = vpop.f32.mrf.mxu1 }
 0x78f   :  { %4833 = vmatmul.msk.f32.vlgmr.msrb.gmra.mxu1 %vm232_vm0, %v1894_v60  ;;  %4834 = vmatmul.msk.f32.vlgmr.msrb.gmra.mxu0 %vm232_vm0, %v1894_v60 }
 0x790   :  { %4835 = vmatmul.msk.f32.vlgmr.msrb.gmra.mxu2 %vm232_vm0, %v1894_v60  ;;  %2220 = vmatpush.msrb.mxu1 %v2168_v58  ;;  %v2258_v60 = vld [vmem:[#allocation10 + $0x530] sm:$0xff] }
 0x791   :  { %2271 = vmatpush.msrb.mxu0 %v2257_v61  ;;  %2180 = vmatpush.msrb.mxu2 %v2166_v62  ;;  %v2259_v61 = vld [vmem:[#allocation10 + $0x538] sm:$0xff] }
 0x792   :  { %2221 = vmatpush.msrb.mxu1 %v2165_v0  ;;  %2311 = vmatpush.msra.mxu3 %v2259_v61  ;;  %v2255_v0 = vld [vmem:[#allocation10 + $0x518] sm:$0xff] }
 0x793   :  { %2272 = vmatpush.msrb.mxu0 %v2254_v6  ;;  %2181 = vmatpush.msrb.mxu2 %v2163_v4  ;;  %v2252_v6 = vld [vmem:[#allocation10 + $0x500] sm:$0xff]  ;;  %v2253_v4 = vld [vmem:[#allocation10 + $0x508] sm:$0xff]  ;;  %v2391_v61 = vld [vmem:[#allocation8 + $0x5d8] sm:$0xff] }
 0x794   :  { %2222 = vmatpush.msrb.mxu1 %v2162_v7  ;;  %v5902_v58 = vpop.f32.mrf.mxu3  ;;  %2312 = vmatpush.msra.mxu3 %v2256_v5  ;;  %v922_v7 = vadd.f32 %v5748_v37, %v5830_v43  ;;  %v2395_v5 = vld [vmem:[#allocation8 + $0x5f8] sm:$0xff] }
 0x795   :  { %2273 = vmatpush.msrb.mxu0 %v2251_v13  ;;  %2182 = vmatpush.msrb.mxu2 %v2160_v18  ;;  %v2250_v13 = vld [vmem:[#allocation10 + $0x4f0] sm:$0xff] }
 0x796   :  { %2223 = vmatpush.msrb.mxu1 %v2159_v19  ;;  %2313 = vmatpush.msra.mxu3 %v2253_v4  ;;  %v1097_v18 = vadd.f32 %v5834_v50, %v922_v7  ;;  %v2246_v19 = vld [vmem:[#allocation10 + $0x4d0] sm:$0xff]  ;;  %v2237_v50 = vld [vmem:[#allocation10 + $0x488] sm:$0xff] }
 0x797   :  { %2274 = vmatpush.msrb.mxu0 %v2248_v21  ;;  %4837 = vmatmul.msk.f32.vlgmr.msra.gmra.mxu1 %vm232_vm0, %v1914_v33  ;;  %v2243_v21 = vld [vmem:[#allocation10 + $0x4b8] sm:$0xff]  ;;  %v2393_v4 = vld [vmem:[#allocation8 + $0x5e8] sm:$0xff]  ;;  %v2481_v7 = vld [vmem:[#allocation10 + $0x5d0] sm:$0xff] }
 0x798   :  { %4838 = vmatmul.msk.f32.vlgmr.msra.gmra.mxu0 %vm232_vm0, %v1914_v33  ;;  %4840 = vmatmul.msk.f32.vlgmr.msra.gmra.mxu2 %vm322_vm2, %v4839_v42  ;;  %v2148_v33 = vld [vmem:[#allocation8 + $0x498] sm:$0xff]  ;;  %v2145_v42 = vld [vmem:[#allocation8 + $0x480] sm:$0xff]  ;;  %v1188_v37 = vadd.f32 %v5780_v36, %v1097_v18  ;;  %v1735_v36 = vpop.f32.mrf.mxu2 }
 0x799   :  { %2224 = vmatpush.msrb.mxu1 %v2156_v24  ;;  %2275 = vmatpush.msrb.mxu0 %v2245_v25  ;;  %v2244_v24 = vld [vmem:[#allocation10 + $0x4c0] sm:$0xff]  ;;  %v2379_v18 = vld [vmem:[#allocation8 + $0x578] sm:$0xff] }
 0x79a   :  { %2183 = vmatpush.msrb.mxu2 %v2157_v26  ;;  %2314 = vmatpush.msra.mxu3 %v2250_v13  ;;  %v2240_v26 = vld [vmem:[#allocation10 + $0x4a0] sm:$0xff]  ;;  %v1324_v43 = vadd.f32 %v5848_v14, %v1188_v37  ;;  %v2389_v13 = vld [vmem:[#allocation8 + $0x5c8] sm:$0xff] }
 0x79b   :  { %2225 = vmatpush.msrb.mxu1 %v2153_v28  ;;  %2276 = vmatpush.msrb.mxu0 %v2242_v35  ;;  %v2238_v28 = vld [vmem:[#allocation10 + $0x490] sm:$0xff]  ;;  %v2472_v37 = vld [vmem:[#allocation10 + $0x588] sm:$0xff] }
 0x79c   :  { %2184 = vmatpush.msrb.mxu2 %v2154_v39  ;;  %2315 = vmatpush.msra.mxu3 %v2247_v20  ;;  %v1415_v35 = vadd.f32 %v5807_v48, %v1324_v43  ;;  %v4848_v39 = vld [vmem:[%s6314_s8 + $0xe] sm:$0x3]  ;;  %v2384_v43 = vld [vmem:[#allocation8 + $0x5a0] sm:$0xff] }
 0x79d   :  { %2226 = vmatpush.msrb.mxu1 %v2150_v40  ;;  %2277 = vmatpush.msrb.mxu0 %v2239_v41  ;;  %v2387_v20 = vld [vmem:[#allocation8 + $0x5b8] sm:$0xff] }
 0x79e   :  { %2185 = vmatpush.msrb.mxu2 %v2151_v53  ;;  %2316 = vmatpush.msra.mxu3 %v2244_v24  ;;  %v1551_v40 = vadd.f32 %v5879_v34, %v1415_v35  ;;  %v2388_v34 = vld [vmem:[#allocation8 + $0x5c0] sm:$0xff]  ;;  %v2469_v35 = vld [vmem:[#allocation10 + $0x570] sm:$0xff] }
 0x79f   :  { %2227 = vmatpush.msrb.mxu1 %v2147_v54  ;;  %2278 = vmatpush.msrb.mxu0 %v2236_v55  ;;  %v2376_v24 = vld [vmem:[#allocation8 + $0x560] sm:$0xff] }
 0x7a0   :  { %2186 = vmatpush.msrb.mxu2 %v2148_v33  ;;  %2317 = vmatpush.msra.mxu3 %v2241_v27  ;;  %v1642_v41 = vadd.f32 %v5842_v46, %v1551_v40  ;;  %v5920_v54 = vpop.f32.mrf.mxu2  ;;  %v2383_v27 = vld [vmem:[#allocation8 + $0x598] sm:$0xff]  ;;  %v2381_v40 = vld [vmem:[#allocation8 + $0x588] sm:$0xff] }
 0x7a1   :  { %2343 = vmatpush.msra.mxu1 %v5690_v63  ;;  %2363 = vmatpush.msra.mxu0 %v5712_v9 }
 0x7a2   :  { %2187 = vmatpush.msrb.mxu2 %v2145_v42  ;;  %2318 = vmatpush.msra.mxu3 %v2238_v28  ;;  %v1778_v53 = vadd.f32 %v1735_v36, %v1642_v41  ;;  %v2380_v28 = vld [vmem:[#allocation8 + $0x580] sm:$0xff]  ;;  %v2486_v36 = vld [vmem:[#allocation10 + $0x5f8] sm:$0xff]  ;;  %v2377_v41 = vld [vmem:[#allocation8 + $0x568] sm:$0xff] }
 0x7a3   :  { %2344 = vmatpush.msra.mxu1 %v5692_v1  ;;  %2364 = vmatpush.msra.mxu0 %v5714_v10 }
 0x7a4   :  { %2291 = vmatpush.msra.mxu2 %v2258_v60  ;;  %v1869_v14 = vadd.f32 %v5873_v23, %v1778_v53  ;;  %v2394_v60 = vld [vmem:[#allocation8 + $0x5f0] sm:$0xff]  ;;  %v2392_v23 = vld [vmem:[#allocation8 + $0x5e0] sm:$0xff]  ;;  %v2466_v53 = vld [vmem:[#allocation10 + $0x558] sm:$0xff] }
 0x7a5   :  { %2345 = vmatpush.msra.mxu1 %v5697_v2  ;;  %2365 = vmatpush.msra.mxu0 %v5717_v11 }
 0x7a6   :  { %2292 = vmatpush.msra.mxu2 %v2255_v0  ;;  %v2385_v0 = vld [vmem:[#allocation8 + $0x5a8] sm:$0xff] }
 0x7a7   :  { %2346 = vmatpush.msra.mxu1 %v5702_v3  ;;  %2366 = vmatpush.msra.mxu0 %v5720_v12 }
 0x7a8   :  { %2293 = vmatpush.msra.mxu2 %v2252_v6  ;;  %v2484_v6 = vld [vmem:[#allocation10 + $0x5e8] sm:$0xff] }
 0x7aa   :  { %2294 = vmatpush.msra.mxu2 %v2249_v8  ;;  %v2390_v8 = vld [vmem:[#allocation8 + $0x5d0] sm:$0xff] }
 0x7ac   :  { %2295 = vmatpush.msra.mxu2 %v2246_v19  ;;  %v2478_v19 = vld [vmem:[#allocation10 + $0x5b8] sm:$0xff] }
 0x7ae   :  { %2296 = vmatpush.msra.mxu2 %v2243_v21  ;;  %v2386_v21 = vld [vmem:[#allocation8 + $0x5b0] sm:$0xff] }
 0x7b0   :  { %2297 = vmatpush.msra.mxu2 %v2240_v26  ;;  %v2475_v26 = vld [vmem:[#allocation10 + $0x5a0] sm:$0xff] }
 0x7b2   :  { %2298 = vmatpush.msra.mxu2 %v2237_v50  ;;  %v2373_v50 = vld [vmem:[#allocation8 + $0x548] sm:$0xff] }
 0x7e7   :  { %v2053_v62 = vpop.f32.mrf.mxu3 }
 0x7ef   :  { %v5907_v25 = vpop.f32.mrf.mxu3 }
 0x7f0   :  { %4845 = vmatmul.msk.f32.vlgmr.msrb.gmra.mxu0 %vm232_vm0, %v5907_v25 }
 0x7f1   :  { %2427 = vmatpush.msrb.mxu0 %v2394_v60  ;;  %v2485_v60 = vld [vmem:[#allocation10 + $0x5f0] sm:$0xff] }
 0x7f3   :  { %2428 = vmatpush.msrb.mxu0 %v2391_v61  ;;  %v2482_v61 = vld [vmem:[#allocation10 + $0x5d8] sm:$0xff] }
 0x7f5   :  { %2429 = vmatpush.msrb.mxu0 %v2388_v34  ;;  %v2483_v34 = vld [vmem:[#allocation10 + $0x5e0] sm:$0xff] }
 0x7f7   :  { %2430 = vmatpush.msrb.mxu0 %v2385_v0  ;;  %v2479_v0 = vld [vmem:[#allocation10 + $0x5c0] sm:$0xff] }
 0x7f8   :  { %4850 = vmatmul.msk.f32.vlgmr.msra.gmra.mxu0 %vm322_vm2, %v4848_v39 }
 0x80c   :  { %v1962_v55 = vpop.f32.mrf.mxu1 }
 0x80d   :  { %v2005_v33 = vadd.f32 %v1962_v55, %v1869_v14  ;;  %v2378_v14 = vld [vmem:[#allocation8 + $0x570] sm:$0xff] }
 0x80e   :  { %v2374_v55 = vld [vmem:[#allocation8 + $0x550] sm:$0xff] }
 0x80f   :  { %v5923_v42 = vadd.f32 %v2053_v62, %v2005_v33  ;;  %v2382_v62 = vld [vmem:[#allocation8 + $0x590] sm:$0xff]  ;;  %v2463_v33 = vld [vmem:[#allocation10 + $0x540] sm:$0xff] }
 0x810   :  { %2431 = vmatpush.msrb.mxu0 %v2382_v62  ;;  %v2477_v62 = vld [vmem:[#allocation10 + $0x5b0] sm:$0xff] }
 0x812   :  { %2432 = vmatpush.msrb.mxu0 %v2379_v18  ;;  %v2471_v18 = vld [vmem:[#allocation10 + $0x580] sm:$0xff] }
 0x813   :  { %v5925_v48 = vpop.f32.mrf.mxu2 }
 0x814   :  { %2433 = vmatpush.msrb.mxu0 %v2376_v24  ;;  %v2468_v24 = vld [vmem:[#allocation10 + $0x568] sm:$0xff] }
 0x816   :  { %2434 = vmatpush.msrb.mxu0 %v2373_v50 }
 0x818   :  { %2538 = vmatpush.msra.mxu0 %v2486_v36 }
 0x81a   :  { %2539 = vmatpush.msra.mxu0 %v2483_v34 }
 0x81b   :  { %v2121_v46 = vpop.f32.mrf.mxu2 }
 0x81c   :  { %4842 = vmatmul.msk.f32.vlgmr.msrb.gmra.mxu2 %vm232_vm0, %v2121_v46  ;;  %4843 = vmatmul.msk.f32.vlgmr.msrb.gmra.mxu3 %vm232_vm0, %v2121_v46 }
 0x81d   :  { %4844 = vmatmul.msk.f32.vlgmr.msrb.gmra.mxu1 %vm232_vm0, %v2121_v46  ;;  %2447 = vmatpush.msrb.mxu2 %v2395_v5  ;;  %v2480_v5 = vld [vmem:[#allocation10 + $0x5c8] sm:$0xff]  ;;  %v1982_v46 = vpop.f32.mrf.mxu0 }
 0x81e   :  { %2498 = vmatpush.msrb.mxu3 %v2484_v6  ;;  %2407 = vmatpush.msrb.mxu1 %v2393_v4 }
 0x81f   :  { %2448 = vmatpush.msrb.mxu2 %v2392_v23  ;;  %2540 = vmatpush.msra.mxu0 %v2480_v5  ;;  %v2476_v23 = vld [vmem:[#allocation10 + $0x5a8] sm:$0xff]  ;;  %v2609_v5 = vld [vmem:[#allocation8 + $0x650] sm:$0xff] }
 0x820   :  { %2499 = vmatpush.msrb.mxu3 %v2481_v7  ;;  %2408 = vmatpush.msrb.mxu1 %v2390_v8  ;;  %v2473_v7 = vld [vmem:[#allocation10 + $0x590] sm:$0xff]  ;;  %v2474_v8 = vld [vmem:[#allocation10 + $0x598] sm:$0xff] }
 0x821   :  { %2449 = vmatpush.msrb.mxu2 %v2389_v13  ;;  %2541 = vmatpush.msra.mxu0 %v2477_v62  ;;  %v2470_v13 = vld [vmem:[#allocation10 + $0x578] sm:$0xff] }
 0x822   :  { %2500 = vmatpush.msrb.mxu3 %v2478_v19  ;;  %2409 = vmatpush.msrb.mxu1 %v2387_v20  ;;  %v962_v20 = vadd.f32 %v5778_v30, %v5762_v59  ;;  %v5957_v59 = vld [vmem:[%s6314_s8 + $0x10] sm:$0x3] }
 0x823   :  { %2450 = vmatpush.msrb.mxu2 %v2386_v21  ;;  %2542 = vmatpush.msra.mxu0 %v2474_v8  ;;  %v2467_v21 = vld [vmem:[#allocation10 + $0x560] sm:$0xff]  ;;  %v2705_v62 = vld [vmem:[#allocation10 + $0x678] sm:$0xff] }
 0x824   :  { %2501 = vmatpush.msrb.mxu3 %v2475_v26  ;;  %4846 = vmatmul.msk.f32.vlgmr.msra.gmra.mxu2 %vm232_vm0, %v5907_v25  ;;  %v1099_v26 = vadd.f32 %v5787_v47, %v962_v20  ;;  %v942_v47 = vadd.f32 %v5832_v49, %v5776_v29  ;;  %v2603_v8 = vld [vmem:[#allocation8 + $0x620] sm:$0xff]  ;;  %v2699_v20 = vld [vmem:[#allocation10 + $0x648] sm:$0xff] }
 0x825   :  { %4847 = vmatmul.msk.f32.vlgmr.msra.gmra.mxu3 %vm232_vm0, %v5907_v25  ;;  %4849 = vmatmul.msk.f32.vlgmr.msra.gmra.mxu1 %vm322_vm2, %v4848_v39  ;;  %v2375_v25 = vld [vmem:[#allocation8 + $0x558] sm:$0xff]  ;;  %v2372_v39 = vld [vmem:[#allocation8 + $0x540] sm:$0xff]  ;;  %v2093_v6 = vpop.f32.mrf.mxu0 }
 0x826   :  { %2451 = vmatpush.msrb.mxu2 %v2383_v27  ;;  %2502 = vmatpush.msrb.mxu3 %v2472_v37  ;;  %v2464_v27 = vld [vmem:[#allocation10 + $0x548] sm:$0xff]  ;;  %v2465_v37 = vld [vmem:[#allocation10 + $0x550] sm:$0xff] }
 0x827   :  { %2410 = vmatpush.msrb.mxu1 %v2384_v43  ;;  %2543 = vmatpush.msra.mxu0 %v2471_v18  ;;  %v1190_v43 = vadd.f32 %v5805_v45, %v1099_v26  ;;  %v2610_v18 = vld [vmem:[#allocation8 + $0x658] sm:$0xff]  ;;  %v2607_v26 = vld [vmem:[#allocation8 + $0x640] sm:$0xff] }
 0x828   :  { %2452 = vmatpush.msrb.mxu2 %v2380_v28  ;;  %2503 = vmatpush.msrb.mxu3 %v2469_v35  ;;  %v1098_v35 = vadd.f32 %v5803_v44, %v942_v47  ;;  %v2601_v47 = vld [vmem:[#allocation8 + $0x610] sm:$0xff] }
 0x829   :  { %2411 = vmatpush.msrb.mxu1 %v2381_v40  ;;  %2544 = vmatpush.msra.mxu0 %v2468_v24  ;;  %v1326_v50 = vadd.f32 %v5814_v56, %v1190_v43  ;;  %v2600_v24 = vld [vmem:[#allocation8 + $0x608] sm:$0xff] }
 0x82a   :  { %2453 = vmatpush.msrb.mxu2 %v2377_v41  ;;  %2504 = vmatpush.msrb.mxu3 %v2466_v53  ;;  %v1189_v45 = vadd.f32 %v5836_v51, %v1098_v35  ;;  %v2073_v53 = vpop.f32.mrf.mxu1  ;;  %v2604_v43 = vld [vmem:[#allocation8 + $0x628] sm:$0xff] }
 0x82b   :  { %2412 = vmatpush.msrb.mxu1 %v2378_v14  ;;  %2545 = vmatpush.msra.mxu0 %v2465_v37  ;;  %v1417_v30 = vadd.f32 %v5840_v32, %v1326_v50  ;;  %v2608_v37 = vld [vmem:[#allocation8 + $0x648] sm:$0xff]  ;;  %v2693_v50 = vld [vmem:[#allocation10 + $0x618] sm:$0xff] }
 0x82c   :  { %2454 = vmatpush.msrb.mxu2 %v2374_v55  ;;  %2505 = vmatpush.msrb.mxu3 %v2463_v33  ;;  %v1325_v40 = vadd.f32 %v5838_v31, %v1189_v45  ;;  %v2621_v31 = vld [vmem:[#allocation8 + $0x6b0] sm:$0xff]  ;;  %v2615_v33 = vld [vmem:[#allocation8 + $0x680] sm:$0xff] }
 0x82d   :  { %2413 = vmatpush.msrb.mxu1 %v2375_v25  ;;  %v1553_v28 = vadd.f32 %v5853_v17, %v1417_v30  ;;  %v2605_v30 = vld [vmem:[#allocation8 + $0x630] sm:$0xff] }
 0x82e   :  { %2570 = vmatpush.msra.mxu2 %v5690_v63  ;;  %2590 = vmatpush.msra.mxu3 %v5712_v9  ;;  %v1416_v41 = vadd.f32 %v5851_v16, %v1325_v40  ;;  %v2618_v16 = vld [vmem:[#allocation8 + $0x698] sm:$0xff]  ;;  %v2712_v45 = vld [vmem:[#allocation10 + $0x6b0] sm:$0xff] }
 0x82f   :  { %2414 = vmatpush.msrb.mxu1 %v2372_v39  ;;  %v1644_v56 = vadd.f32 %v5871_v15, %v1553_v28  ;;  %v2622_v39 = vld [vmem:[#allocation8 + $0x6b8] sm:$0xff]  ;;  %v2690_v28 = vld [vmem:[#allocation10 + $0x600] sm:$0xff] }
 0x830   :  { %2571 = vmatpush.msra.mxu2 %v5692_v1  ;;  %2591 = vmatpush.msra.mxu3 %v5714_v10  ;;  %v1552_v14 = vadd.f32 %v5869_v22, %v1416_v41  ;;  %v2612_v22 = vld [vmem:[#allocation8 + $0x668] sm:$0xff]  ;;  %v2710_v41 = vld [vmem:[#allocation10 + $0x6a0] sm:$0xff] }
 0x831   :  { %2518 = vmatpush.msra.mxu1 %v2485_v60  ;;  %v1780_v36 = vadd.f32 %v5884_v52, %v1644_v56  ;;  %v2711_v60 = vld [vmem:[#allocation10 + $0x6a8] sm:$0xff]  ;;  %v2713_v56 = vld [vmem:[#allocation10 + $0x6b8] sm:$0xff] }
 0x832   :  { %2572 = vmatpush.msra.mxu2 %v5697_v2  ;;  %2592 = vmatpush.msra.mxu3 %v5717_v11  ;;  %v1643_v49 = vadd.f32 %v5882_v38, %v1552_v14  ;;  %v2703_v14 = vld [vmem:[#allocation10 + $0x668] sm:$0xff] }
 0x833   :  { %2519 = vmatpush.msra.mxu1 %v2482_v61  ;;  %v1871_v32 = vadd.f32 %v5902_v58, %v1780_v36  ;;  %v2620_v61 = vld [vmem:[#allocation8 + $0x6a8] sm:$0xff]  ;;  %v2709_v36 = vld [vmem:[#allocation10 + $0x698] sm:$0xff] }
 0x834   :  { %2573 = vmatpush.msra.mxu2 %v5702_v3  ;;  %2593 = vmatpush.msra.mxu3 %v5720_v12  ;;  %v1779_v44 = vadd.f32 %v5900_v57, %v1643_v49  ;;  %v2700_v49 = vld [vmem:[#allocation10 + $0x650] sm:$0xff] }
 0x835   :  { %2520 = vmatpush.msra.mxu1 %v2479_v0  ;;  %v2007_v29 = vadd.f32 %v5925_v48, %v1871_v32  ;;  %v2619_v0 = vld [vmem:[#allocation8 + $0x6a0] sm:$0xff]  ;;  %v2707_v32 = vld [vmem:[#allocation10 + $0x688] sm:$0xff] }
 0x836   :  { %v1870_v17 = vadd.f32 %v5920_v54, %v1779_v44  ;;  %v2701_v44 = vld [vmem:[#allocation10 + $0x658] sm:$0xff] }
 0x837   :  { %2521 = vmatpush.msra.mxu1 %v2476_v23  ;;  %v2098_v51 = vadd.f32 %v2093_v6, %v2007_v29  ;;  %v2616_v6 = vld [vmem:[#allocation8 + $0x688] sm:$0xff]  ;;  %v2606_v23 = vld [vmem:[#allocation8 + $0x638] sm:$0xff]  ;;  %v2704_v29 = vld [vmem:[#allocation10 + $0x670] sm:$0xff] }
 0x838   :  { %v2006_v52 = vadd.f32 %v1982_v46, %v1870_v17  ;;  %v2617_v46 = vld [vmem:[#allocation8 + $0x690] sm:$0xff]  ;;  %v2698_v17 = vld [vmem:[#allocation10 + $0x640] sm:$0xff] }
 0x839   :  { %2522 = vmatpush.msra.mxu1 %v2473_v7  ;;  %v2614_v7 = vld [vmem:[#allocation8 + $0x678] sm:$0xff] }
 0x83a   :  { %v2097_v58 = vadd.f32 %v2073_v53, %v2006_v52  ;;  %v2706_v53 = vld [vmem:[#allocation10 + $0x680] sm:$0xff]  ;;  %v2691_v52 = vld [vmem:[#allocation10 + $0x608] sm:$0xff] }
 0x83b   :  { %2523 = vmatpush.msra.mxu1 %v2470_v13  ;;  %v2702_v13 = vld [vmem:[#allocation10 + $0x660] sm:$0xff] }
 0x83d   :  { %2524 = vmatpush.msra.mxu1 %v2467_v21  ;;  %v2611_v21 = vld [vmem:[#allocation8 + $0x660] sm:$0xff] }
 0x83f   :  { %2525 = vmatpush.msra.mxu1 %v2464_v27  ;;  %v2696_v27 = vld [vmem:[#allocation10 + $0x630] sm:$0xff] }
 0x86d   :  { %v5943_v4 = vpop.f32.mrf.mxu0 }
 0x875   :  { %v5945_v19 = vpop.f32.mrf.mxu0 }
 0x876   :  { %4854 = vmatmul.msk.f32.vlgmr.msrb.gmra.mxu3 %vm232_vm0, %v5945_v19 }
 0x877   :  { %2654 = vmatpush.msrb.mxu3 %v2621_v31  ;;  %v2694_v31 = vld [vmem:[#allocation10 + $0x620] sm:$0xff] }
 0x879   :  { %2655 = vmatpush.msrb.mxu3 %v2618_v16  ;;  %v2695_v16 = vld [vmem:[#allocation10 + $0x628] sm:$0xff] }
 0x87b   :  { %2656 = vmatpush.msrb.mxu3 %v2615_v33  ;;  %v2692_v33 = vld [vmem:[#allocation10 + $0x610] sm:$0xff] }
 0x87d   :  { %2657 = vmatpush.msrb.mxu3 %v2612_v22 }
 0x87e   :  { %4859 = vmatmul.msk.f32.vlgmr.msra.gmra.mxu3 %vm322_vm2, %v5957_v59 }
 0x87f   :  { %2658 = vmatpush.msrb.mxu3 %v2609_v5  ;;  %v2848_v5 = vld [vmem:[#allocation8 + $0x770] sm:$0xff] }
 0x881   :  { %2659 = vmatpush.msrb.mxu3 %v2606_v23  ;;  %v2839_v23 = vld [vmem:[#allocation8 + $0x728] sm:$0xff] }
 0x883   :  { %2660 = vmatpush.msrb.mxu3 %v2603_v8  ;;  %v2935_v8 = vld [vmem:[#allocation10 + $0x750] sm:$0xff] }
 0x885   :  { %2661 = vmatpush.msrb.mxu3 %v2600_v24  ;;  %v2841_v24 = vld [vmem:[#allocation8 + $0x738] sm:$0xff] }
 0x887   :  { %2765 = vmatpush.msra.mxu3 %v2713_v56  ;;  %v2920_v56 = vld [vmem:[#allocation10 + $0x6d8] sm:$0xff] }
 0x889   :  { %2766 = vmatpush.msra.mxu3 %v2710_v41  ;;  %v2917_v41 = vld [vmem:[#allocation10 + $0x6c0] sm:$0xff] }
 0x88b   :  { %2767 = vmatpush.msra.mxu3 %v2707_v32  ;;  %v2826_v32 = vld [vmem:[#allocation8 + $0x6c0] sm:$0xff] }
 0x88d   :  { %2768 = vmatpush.msra.mxu3 %v2704_v29  ;;  %v2936_v29 = vld [vmem:[#allocation10 + $0x758] sm:$0xff] }
 0x88f   :  { %2769 = vmatpush.msra.mxu3 %v2701_v44  ;;  %v2933_v44 = vld [vmem:[#allocation10 + $0x740] sm:$0xff] }
 0x891   :  { %2770 = vmatpush.msra.mxu3 %v2698_v17 }
 0x893   :  { %2771 = vmatpush.msra.mxu3 %v2695_v16  ;;  %v2931_v16 = vld [vmem:[#allocation10 + $0x730] sm:$0xff] }
 0x895   :  { %2772 = vmatpush.msra.mxu3 %v2692_v33  ;;  %v2928_v33 = vld [vmem:[#allocation10 + $0x718] sm:$0xff] }
 0x89a   :  { %v2229_v15 = vpop.f32.mrf.mxu1 }
 0x89b   :  { %v5977_v55 = vadd.f32 %v2229_v15, %v2098_v51  ;;  %v2697_v51 = vld [vmem:[#allocation10 + $0x638] sm:$0xff] }
 0x89f   :  { %v2189_v25 = vpop.f32.mrf.mxu2  ;;  %v2209_v48 = vpop.f32.mrf.mxu3 }
 0x8a0   :  { %v2232_v38 = vadd.f32 %v2189_v25, %v5923_v42  ;;  %v5980_v57 = vadd.f32 %v2209_v48, %v2097_v58  ;;  %v2708_v42 = vld [vmem:[#allocation10 + $0x690] sm:$0xff]  ;;  %v4866_v58 = vld [vmem:[%s6314_s8 + $0x12] sm:$0x3] }
 0x8a2   :  { %v2348_v54 = vpop.f32.mrf.mxu1  ;;  %v5983_v34 = vadd.f32 %v5943_v4, %v2232_v38  ;;  %v2613_v4 = vld [vmem:[#allocation8 + $0x670] sm:$0xff] }
 0x8a3   :  { %4851 = vmatmul.msk.f32.vlgmr.msrb.gmra.mxu1 %vm232_vm0, %v2348_v54  ;;  %4852 = vmatmul.msk.f32.vlgmr.msrb.gmra.mxu0 %vm232_vm0, %v2348_v54 }
 0x8a4   :  { %4853 = vmatmul.msk.f32.vlgmr.msrb.gmra.mxu2 %vm232_vm0, %v2348_v54  ;;  %2674 = vmatpush.msrb.mxu1 %v2622_v39 }
 0x8a5   :  { %2725 = vmatpush.msrb.mxu0 %v2711_v60  ;;  %2634 = vmatpush.msrb.mxu2 %v2620_v61 }
 0x8a6   :  { %2675 = vmatpush.msrb.mxu1 %v2619_v0 }
 0x8a7   :  { %2726 = vmatpush.msrb.mxu0 %v2708_v42  ;;  %2635 = vmatpush.msrb.mxu2 %v2617_v46  ;;  %v2300_v22 = vpop.f32.mrf.mxu2  ;;  %v2845_v46 = vld [vmem:[#allocation8 + $0x758] sm:$0xff] }
 0x8a8   :  { %2676 = vmatpush.msrb.mxu1 %v2616_v6  ;;  %v2320_v35 = vpop.f32.mrf.mxu3  ;;  %v2324_v25 = vadd.f32 %v2300_v22, %v5980_v57  ;;  %v2842_v6 = vld [vmem:[#allocation8 + $0x740] sm:$0xff]  ;;  %v2849_v57 = vld [vmem:[#allocation8 + $0x778] sm:$0xff] }
 0x8a9   :  { %2727 = vmatpush.msrb.mxu0 %v2705_v62  ;;  %2636 = vmatpush.msrb.mxu2 %v2614_v7  ;;  %v2325_v61 = vadd.f32 %v2320_v35, %v5977_v55  ;;  %v2847_v7 = vld [vmem:[#allocation8 + $0x768] sm:$0xff]  ;;  %v2846_v55 = vld [vmem:[#allocation8 + $0x760] sm:$0xff]  ;;  %v2940_v35 = vld [vmem:[#allocation10 + $0x778] sm:$0xff] }
 0x8aa   :  { %2677 = vmatpush.msrb.mxu1 %v2613_v4  ;;  %v2836_v4 = vld [vmem:[#allocation8 + $0x710] sm:$0xff]  ;;  %v2925_v22 = vld [vmem:[#allocation10 + $0x700] sm:$0xff] }
 0x8ab   :  { %2728 = vmatpush.msrb.mxu0 %v2702_v13  ;;  %4855 = vmatmul.msk.f32.vlgmr.msra.gmra.mxu1 %vm232_vm0, %v5945_v19  ;;  %v2844_v13 = vld [vmem:[#allocation8 + $0x750] sm:$0xff] }
 0x8ac   :  { %4856 = vmatmul.msk.f32.vlgmr.msra.gmra.mxu0 %vm232_vm0, %v5945_v19  ;;  %4858 = vmatmul.msk.f32.vlgmr.msra.gmra.mxu2 %vm322_vm2, %v5957_v59  ;;  %v2602_v19 = vld [vmem:[#allocation8 + $0x618] sm:$0xff]  ;;  %v2599_v59 = vld [vmem:[#allocation8 + $0x600] sm:$0xff] }
 0x8ad   :  { %2678 = vmatpush.msrb.mxu1 %v2610_v18  ;;  %2729 = vmatpush.msrb.mxu0 %v2699_v20  ;;  %v2843_v18 = vld [vmem:[#allocation8 + $0x748] sm:$0xff]  ;;  %v2833_v20 = vld [vmem:[#allocation8 + $0x6f8] sm:$0xff] }
 0x8ae   :  { %2637 = vmatpush.msrb.mxu2 %v2611_v21  ;;  %v2932_v21 = vld [vmem:[#allocation10 + $0x738] sm:$0xff] }
 0x8af   :  { %2679 = vmatpush.msrb.mxu1 %v2607_v26  ;;  %2730 = vmatpush.msrb.mxu0 %v2696_v27  ;;  %v2840_v26 = vld [vmem:[#allocation8 + $0x730] sm:$0xff]  ;;  %v2830_v27 = vld [vmem:[#allocation8 + $0x6e0] sm:$0xff] }
 0x8b0   :  { %2638 = vmatpush.msrb.mxu2 %v2608_v37  ;;  %v2929_v37 = vld [vmem:[#allocation10 + $0x720] sm:$0xff] }
 0x8b1   :  { %2680 = vmatpush.msrb.mxu1 %v2604_v43  ;;  %2731 = vmatpush.msrb.mxu0 %v2693_v50  ;;  %v2837_v43 = vld [vmem:[#allocation8 + $0x718] sm:$0xff]  ;;  %v2926_v50 = vld [vmem:[#allocation10 + $0x708] sm:$0xff] }
 0x8b2   :  { %2639 = vmatpush.msrb.mxu2 %v2605_v30  ;;  %v2838_v30 = vld [vmem:[#allocation8 + $0x720] sm:$0xff] }
 0x8b3   :  { %2681 = vmatpush.msrb.mxu1 %v2601_v47  ;;  %2732 = vmatpush.msrb.mxu0 %v2690_v28  ;;  %v2827_v47 = vld [vmem:[#allocation8 + $0x6c8] sm:$0xff]  ;;  %v2834_v28 = vld [vmem:[#allocation8 + $0x700] sm:$0xff] }
 0x8b4   :  { %2640 = vmatpush.msrb.mxu2 %v2602_v19  ;;  %v2923_v19 = vld [vmem:[#allocation10 + $0x6f0] sm:$0xff] }
 0x8b5   :  { %2797 = vmatpush.msra.mxu1 %v5690_v63  ;;  %2817 = vmatpush.msra.mxu0 %v5712_v9 }
 0x8b6   :  { %2641 = vmatpush.msrb.mxu2 %v2599_v59  ;;  %v2835_v59 = vld [vmem:[#allocation8 + $0x708] sm:$0xff] }
 0x8b7   :  { %2798 = vmatpush.msra.mxu1 %v5692_v1  ;;  %2818 = vmatpush.msra.mxu0 %v5714_v10 }
 0x8b8   :  { %2745 = vmatpush.msra.mxu2 %v2712_v45  ;;  %v2831_v45 = vld [vmem:[#allocation8 + $0x6e8] sm:$0xff] }
 0x8b9   :  { %2799 = vmatpush.msra.mxu1 %v5697_v2  ;;  %2819 = vmatpush.msra.mxu0 %v5717_v11 }
 0x8ba   :  { %2746 = vmatpush.msra.mxu2 %v2709_v36  ;;  %v2828_v36 = vld [vmem:[#allocation8 + $0x6d0] sm:$0xff] }
 0x8bb   :  { %2800 = vmatpush.msra.mxu1 %v5702_v3  ;;  %2820 = vmatpush.msra.mxu0 %v5720_v12 }
 0x8bc   :  { %2747 = vmatpush.msra.mxu2 %v2706_v53  ;;  %v2829_v53 = vld [vmem:[#allocation8 + $0x6d8] sm:$0xff] }
 0x8be   :  { %2748 = vmatpush.msra.mxu2 %v2703_v14  ;;  %v2939_v14 = vld [vmem:[#allocation10 + $0x770] sm:$0xff] }
 0x8c0   :  { %2749 = vmatpush.msra.mxu2 %v2700_v49  ;;  %v2937_v49 = vld [vmem:[#allocation10 + $0x760] sm:$0xff] }
 0x8c2   :  { %2750 = vmatpush.msra.mxu2 %v2697_v51  ;;  %v2934_v51 = vld [vmem:[#allocation10 + $0x748] sm:$0xff] }
 0x8c4   :  { %2751 = vmatpush.msra.mxu2 %v2694_v31  ;;  %v2930_v31 = vld [vmem:[#allocation10 + $0x728] sm:$0xff] }
 0x8c6   :  { %2752 = vmatpush.msra.mxu2 %v2691_v52  ;;  %v2927_v52 = vld [vmem:[#allocation10 + $0x710] sm:$0xff] }
 0x8f9   :  { %v2507_v40 = vpop.f32.mrf.mxu3 }
 0x901   :  { %v6002_v15 = vpop.f32.mrf.mxu3 }
 0x902   :  { %4863 = vmatmul.msk.f32.vlgmr.msrb.gmra.mxu0 %vm232_vm0, %v6002_v15 }
 0x903   :  { %2881 = vmatpush.msrb.mxu0 %v2848_v5 }
 0x905   :  { %2882 = vmatpush.msrb.mxu0 %v2845_v46 }
 0x907   :  { %2883 = vmatpush.msrb.mxu0 %v2842_v6 }
 0x909   :  { %2884 = vmatpush.msrb.mxu0 %v2839_v23  ;;  %v3075_v23 = vld [vmem:[#allocation8 + $0x830] sm:$0xff] }
 0x90a   :  { %4868 = vmatmul.msk.f32.vlgmr.msra.gmra.mxu0 %vm322_vm2, %v4866_v58 }
 0x90b   :  { %2885 = vmatpush.msrb.mxu0 %v2836_v4 }
 0x90d   :  { %2886 = vmatpush.msrb.mxu0 %v2833_v20  ;;  %v3076_v20 = vld [vmem:[#allocation8 + $0x838] sm:$0xff] }
 0x90f   :  { %2887 = vmatpush.msrb.mxu0 %v2830_v27  ;;  %v3063_v27 = vld [vmem:[#allocation8 + $0x7d0] sm:$0xff] }
 0x911   :  { %2888 = vmatpush.msrb.mxu0 %v2827_v47  ;;  %v3068_v47 = vld [vmem:[#allocation8 + $0x7f8] sm:$0xff] }
 0x913   :  { %2992 = vmatpush.msra.mxu0 %v2940_v35  ;;  %v3064_v35 = vld [vmem:[#allocation8 + $0x7d8] sm:$0xff] }
 0x915   :  { %2993 = vmatpush.msra.mxu0 %v2937_v49  ;;  %v3055_v49 = vld [vmem:[#allocation8 + $0x790] sm:$0xff] }
 0x917   :  { %2994 = vmatpush.msra.mxu0 %v2934_v51  ;;  %v3056_v51 = vld [vmem:[#allocation8 + $0x798] sm:$0xff] }
 0x919   :  { %2995 = vmatpush.msra.mxu0 %v2931_v16  ;;  %v3167_v16 = vld [vmem:[#allocation10 + $0x838] sm:$0xff] }
 0x91b   :  { %2996 = vmatpush.msra.mxu0 %v2928_v33  ;;  %v3163_v33 = vld [vmem:[#allocation10 + $0x818] sm:$0xff] }
 0x91d   :  { %2997 = vmatpush.msra.mxu0 %v2925_v22  ;;  %v3160_v22 = vld [vmem:[#allocation10 + $0x800] sm:$0xff] }
 0x920   :  { %v2416_v48 = vpop.f32.mrf.mxu1  ;;  %v2436_v38 = vpop.f32.mrf.mxu0 }
 0x921   :  { %v2459_v39 = vadd.f32 %v2416_v48, %v5983_v34  ;;  %v6012_v54 = vadd.f32 %v2436_v38, %v2324_v25  ;;  %v2938_v34 = vld [vmem:[#allocation10 + $0x768] sm:$0xff]  ;;  %v2921_v48 = vld [vmem:[#allocation10 + $0x6e0] sm:$0xff] }
 0x922   :  { %v2922_v38 = vld [vmem:[#allocation10 + $0x6e8] sm:$0xff] }
 0x923   :  { %v6014_v60 = vadd.f32 %v2507_v40, %v2459_v39  ;;  %v2832_v40 = vld [vmem:[#allocation8 + $0x6f0] sm:$0xff]  ;;  %2998 = vmatpush.msra.mxu0 %v2922_v38  ;;  %v2918_v39 = vld [vmem:[#allocation10 + $0x6c8] sm:$0xff] }
 0x924   :  { %v3158_v38 = vld [vmem:[#allocation10 + $0x7f0] sm:$0xff] }
 0x927   :  { %v2456_v0 = vpop.f32.mrf.mxu2 }
 0x928   :  { %v6017_v42 = vadd.f32 %v2456_v0, %v2325_v61  ;;  %v2919_v61 = vld [vmem:[#allocation10 + $0x6d0] sm:$0xff]  ;;  %v4875_v0 = vld [vmem:[%s6314_s8 + $0x14] sm:$0x3]  ;;  %v2527_v5 = vpop.f32.mrf.mxu1 }
 0x929   :  { %v2547_v17 = vpop.f32.mrf.mxu0  ;;  %2999 = vmatpush.msra.mxu0 %v2919_v61  ;;  %v3155_v61 = vld [vmem:[#allocation10 + $0x7d8] sm:$0xff] }
 0x92a   :  { %v2552_v46 = vadd.f32 %v2547_v17, %v6017_v42  ;;  %v3053_v17 = vld [vmem:[#allocation8 + $0x780] sm:$0xff] }
 0x92f   :  { %v2575_v62 = vpop.f32.mrf.mxu2 }
 0x930   :  { %4860 = vmatmul.msk.f32.vlgmr.msrb.gmra.mxu2 %vm232_vm0, %v2575_v62  ;;  %4861 = vmatmul.msk.f32.vlgmr.msrb.gmra.mxu3 %vm232_vm0, %v2575_v62 }
 0x931   :  { %4862 = vmatmul.msk.f32.vlgmr.msrb.gmra.mxu1 %vm232_vm0, %v2575_v62  ;;  %2901 = vmatpush.msrb.mxu2 %v2849_v57  ;;  %v3072_v62 = vld [vmem:[#allocation8 + $0x818] sm:$0xff] }
 0x932   :  { %2952 = vmatpush.msrb.mxu3 %v2938_v34  ;;  %2861 = vmatpush.msrb.mxu1 %v2847_v7  ;;  %v3069_v34 = vld [vmem:[#allocation8 + $0x800] sm:$0xff]  ;;  %v2551_v7 = vadd.f32 %v2527_v5, %v6012_v54 }
 0x933   :  { %2902 = vmatpush.msrb.mxu2 %v2846_v55  ;;  %v3066_v55 = vld [vmem:[#allocation8 + $0x7e8] sm:$0xff]  ;;  %v3073_v54 = vld [vmem:[#allocation8 + $0x820] sm:$0xff] }
 0x934   :  { %2953 = vmatpush.msrb.mxu3 %v2935_v8  ;;  %2862 = vmatpush.msrb.mxu1 %v2844_v13  ;;  %v3152_v5 = vld [vmem:[#allocation10 + $0x7c0] sm:$0xff] }
 0x935   :  { %2903 = vmatpush.msrb.mxu2 %v2843_v18 }
 0x936   :  { %2954 = vmatpush.msrb.mxu3 %v2932_v21  ;;  %2863 = vmatpush.msrb.mxu1 %v2841_v24  ;;  %v3165_v21 = vld [vmem:[#allocation10 + $0x828] sm:$0xff] }
 0x937   :  { %2904 = vmatpush.msrb.mxu2 %v2840_v26  ;;  %v3074_v24 = vld [vmem:[#allocation8 + $0x828] sm:$0xff] }
 0x938   :  { %2955 = vmatpush.msrb.mxu3 %v2929_v37  ;;  %4864 = vmatmul.msk.f32.vlgmr.msra.gmra.mxu2 %vm232_vm0, %v6002_v15  ;;  %v3162_v37 = vld [vmem:[#allocation10 + $0x810] sm:$0xff] }
 0x939   :  { %4865 = vmatmul.msk.f32.vlgmr.msra.gmra.mxu3 %vm232_vm0, %v6002_v15  ;;  %4867 = vmatmul.msk.f32.vlgmr.msra.gmra.mxu1 %vm322_vm2, %v4866_v58  ;;  %v2924_v58 = vld [vmem:[#allocation10 + $0x6f8] sm:$0xff] }
 0x93a   :  { %2905 = vmatpush.msrb.mxu2 %v2837_v43  ;;  %2956 = vmatpush.msrb.mxu3 %v2926_v50  ;;  %v3070_v43 = vld [vmem:[#allocation8 + $0x808] sm:$0xff]  ;;  %v3060_v50 = vld [vmem:[#allocation8 + $0x7b8] sm:$0xff] }
 0x93b   :  { %2864 = vmatpush.msrb.mxu1 %v2838_v30  ;;  %v3159_v30 = vld [vmem:[#allocation10 + $0x7f8] sm:$0xff] }
 0x93c   :  { %2906 = vmatpush.msrb.mxu2 %v2834_v28  ;;  %2957 = vmatpush.msrb.mxu3 %v2923_v19  ;;  %v3067_v28 = vld [vmem:[#allocation8 + $0x7f0] sm:$0xff]  ;;  %v3057_v19 = vld [vmem:[#allocation8 + $0x7a0] sm:$0xff] }
 0x93d   :  { %2865 = vmatpush.msrb.mxu1 %v2835_v59  ;;  %v3156_v59 = vld [vmem:[#allocation10 + $0x7e0] sm:$0xff] }
 0x93e   :  { %2907 = vmatpush.msrb.mxu2 %v2831_v45  ;;  %2958 = vmatpush.msrb.mxu3 %v2920_v56  ;;  %v3153_v45 = vld [vmem:[#allocation10 + $0x7c8] sm:$0xff]  ;;  %v3065_v56 = vld [vmem:[#allocation8 + $0x7e0] sm:$0xff] }
 0x93f   :  { %2866 = vmatpush.msrb.mxu1 %v2832_v40  ;;  %v3054_v40 = vld [vmem:[#allocation8 + $0x788] sm:$0xff] }
 0x940   :  { %2908 = vmatpush.msrb.mxu2 %v2828_v36  ;;  %2959 = vmatpush.msrb.mxu3 %v2917_v41  ;;  %v3061_v36 = vld [vmem:[#allocation8 + $0x7c0] sm:$0xff]  ;;  %v3150_v41 = vld [vmem:[#allocation10 + $0x7b0] sm:$0xff] }
 0x941   :  { %2867 = vmatpush.msrb.mxu1 %v2829_v53  ;;  %v3062_v53 = vld [vmem:[#allocation8 + $0x7c8] sm:$0xff] }
 0x942   :  { %3024 = vmatpush.msra.mxu2 %v5690_v63  ;;  %3044 = vmatpush.msra.mxu3 %v5712_v9 }
 0x943   :  { %2868 = vmatpush.msrb.mxu1 %v2826_v32  ;;  %v3058_v32 = vld [vmem:[#allocation8 + $0x7a8] sm:$0xff] }
 0x944   :  { %3025 = vmatpush.msra.mxu2 %v5692_v1  ;;  %3045 = vmatpush.msra.mxu3 %v5714_v10 }
 0x945   :  { %2972 = vmatpush.msra.mxu1 %v2939_v14  ;;  %v3147_v14 = vld [vmem:[#allocation10 + $0x798] sm:$0xff] }
 0x946   :  { %3026 = vmatpush.msra.mxu2 %v5697_v2  ;;  %3046 = vmatpush.msra.mxu3 %v5717_v11 }
 0x947   :  { %2973 = vmatpush.msra.mxu1 %v2936_v29  ;;  %v3059_v29 = vld [vmem:[#allocation8 + $0x7b0] sm:$0xff] }
 0x948   :  { %3027 = vmatpush.msra.mxu2 %v5702_v3  ;;  %3047 = vmatpush.msra.mxu3 %v5720_v12 }
 0x949   :  { %2974 = vmatpush.msra.mxu1 %v2933_v44  ;;  %v3144_v44 = vld [vmem:[#allocation10 + $0x780] sm:$0xff] }
 0x94b   :  { %2975 = vmatpush.msra.mxu1 %v2930_v31  ;;  %v3166_v31 = vld [vmem:[#allocation10 + $0x830] sm:$0xff] }
 0x94d   :  { %2976 = vmatpush.msra.mxu1 %v2927_v52 }
 0x94f   :  { %2977 = vmatpush.msra.mxu1 %v2924_v58  ;;  %v3164_v58 = vld [vmem:[#allocation10 + $0x820] sm:$0xff] }
 0x951   :  { %2978 = vmatpush.msra.mxu1 %v2921_v48  ;;  %v3157_v48 = vld [vmem:[#allocation10 + $0x7e8] sm:$0xff] }
 0x953   :  { %2979 = vmatpush.msra.mxu1 %v2918_v39  ;;  %v3154_v39 = vld [vmem:[#allocation10 + $0x7d0] sm:$0xff] }
 0x97f   :  { %v2734_v15 = vpop.f32.mrf.mxu0 }
 0x987   :  { %v6035_v25 = vpop.f32.mrf.mxu0 }
 0x988   :  { %4872 = vmatmul.msk.f32.vlgmr.msrb.gmra.mxu3 %vm232_vm0, %v6035_v25 }
 0x989   :  { %3108 = vmatpush.msrb.mxu3 %v3075_v23  ;;  %v3149_v23 = vld [vmem:[#allocation10 + $0x7a8] sm:$0xff] }
 0x98b   :  { %3109 = vmatpush.msrb.mxu3 %v3072_v62  ;;  %v3145_v62 = vld [vmem:[#allocation10 + $0x788] sm:$0xff] }
 0x98d   :  { %3110 = vmatpush.msrb.mxu3 %v3069_v34  ;;  %v3146_v34 = vld [vmem:[#allocation10 + $0x790] sm:$0xff] }
 0x98f   :  { %3111 = vmatpush.msrb.mxu3 %v3066_v55 }
 0x990   :  { %4877 = vmatmul.msk.f32.vlgmr.msra.gmra.mxu3 %vm322_vm2, %v4875_v0 }
 0x991   :  { %3112 = vmatpush.msrb.mxu3 %v3063_v27  ;;  %v3302_v27 = vld [vmem:[#allocation8 + $0x8f0] sm:$0xff] }
 0x993   :  { %3113 = vmatpush.msrb.mxu3 %v3060_v50  ;;  %v3293_v50 = vld [vmem:[#allocation8 + $0x8a8] sm:$0xff] }
 0x995   :  { %3114 = vmatpush.msrb.mxu3 %v3057_v19  ;;  %v3389_v19 = vld [vmem:[#allocation10 + $0x8d0] sm:$0xff] }
 0x997   :  { %3115 = vmatpush.msrb.mxu3 %v3054_v40  ;;  %v3295_v40 = vld [vmem:[#allocation8 + $0x8b8] sm:$0xff] }
 0x999   :  { %3219 = vmatpush.msra.mxu3 %v3167_v16  ;;  %v3374_v16 = vld [vmem:[#allocation10 + $0x858] sm:$0xff] }
 0x99b   :  { %3220 = vmatpush.msra.mxu3 %v3164_v58  ;;  %v3371_v58 = vld [vmem:[#allocation10 + $0x840] sm:$0xff] }
 0x9ae   :  { %v2683_v6 = vpop.f32.mrf.mxu1 }
 0x9af   :  { %v6044_v57 = vadd.f32 %v2683_v6, %v2552_v46  ;;  %v3148_v6 = vld [vmem:[#allocation10 + $0x7a0] sm:$0xff] }
 0x9b3   :  { %v2643_v4 = vpop.f32.mrf.mxu2  ;;  %v2663_v8 = vpop.f32.mrf.mxu3 }
 0x9b4   :  { %v2686_v13 = vadd.f32 %v2643_v4, %v6014_v60  ;;  %v6048_v18 = vadd.f32 %v2663_v8, %v2551_v7  ;;  %v3071_v60 = vld [vmem:[#allocation8 + $0x810] sm:$0xff]  ;;  %v4884_v7 = vld [vmem:[%s6314_s8 + $0x16] sm:$0x3] }
 0x9b6   :  { %v2802_v42 = vpop.f32.mrf.mxu1  ;;  %v6050_v26 = vadd.f32 %v2734_v15, %v2686_v13 }
 0x9b7   :  { %4869 = vmatmul.msk.f32.vlgmr.msrb.gmra.mxu1 %vm232_vm0, %v2802_v42  ;;  %4870 = vmatmul.msk.f32.vlgmr.msrb.gmra.mxu0 %vm232_vm0, %v2802_v42 }
 0x9b8   :  { %4871 = vmatmul.msk.f32.vlgmr.msrb.gmra.mxu2 %vm232_vm0, %v2802_v42  ;;  %3128 = vmatpush.msrb.mxu1 %v3076_v20 }
 0x9b9   :  { %3179 = vmatpush.msrb.mxu0 %v3165_v21  ;;  %3088 = vmatpush.msrb.mxu2 %v3074_v24 }
 0x9ba   :  { %3129 = vmatpush.msrb.mxu1 %v3073_v54 }
 0x9bb   :  { %3180 = vmatpush.msrb.mxu0 %v3162_v37  ;;  %3089 = vmatpush.msrb.mxu2 %v3071_v60  ;;  %v2754_v55 = vpop.f32.mrf.mxu2  ;;  %v3299_v60 = vld [vmem:[#allocation8 + $0x8d8] sm:$0xff] }
 0x9bc   :  { %3130 = vmatpush.msrb.mxu1 %v3070_v43  ;;  %v2774_v15 = vpop.f32.mrf.mxu3  ;;  %v2778_v4 = vadd.f32 %v2754_v55, %v6048_v18  ;;  %v3296_v43 = vld [vmem:[#allocation8 + $0x8c0] sm:$0xff]  ;;  %v3303_v18 = vld [vmem:[#allocation8 + $0x8f8] sm:$0xff] }
 0x9bd   :  { %3181 = vmatpush.msrb.mxu0 %v3159_v30  ;;  %3090 = vmatpush.msrb.mxu2 %v3068_v47  ;;  %v2779_v24 = vadd.f32 %v2774_v15, %v6044_v57  ;;  %v3301_v47 = vld [vmem:[#allocation8 + $0x8e8] sm:$0xff]  ;;  %v3300_v57 = vld [vmem:[#allocation8 + $0x8e0] sm:$0xff]  ;;  %v3394_v15 = vld [vmem:[#allocation10 + $0x8f8] sm:$0xff] }
 0x9be   :  { %3131 = vmatpush.msrb.mxu1 %v3067_v28  ;;  %v3290_v28 = vld [vmem:[#allocation8 + $0x890] sm:$0xff]  ;;  %v3379_v55 = vld [vmem:[#allocation10 + $0x880] sm:$0xff] }
 0x9bf   :  { %3182 = vmatpush.msrb.mxu0 %v3156_v59  ;;  %4873 = vmatmul.msk.f32.vlgmr.msra.gmra.mxu1 %vm232_vm0, %v6035_v25  ;;  %v3298_v59 = vld [vmem:[#allocation8 + $0x8d0] sm:$0xff] }
 0x9c0   :  { %4874 = vmatmul.msk.f32.vlgmr.msra.gmra.mxu0 %vm232_vm0, %v6035_v25  ;;  %4876 = vmatmul.msk.f32.vlgmr.msra.gmra.mxu2 %vm322_vm2, %v4875_v0  ;;  %v3161_v25 = vld [vmem:[#allocation10 + $0x808] sm:$0xff]  ;;  %v3151_v0 = vld [vmem:[#allocation10 + $0x7b8] sm:$0xff] }
 0x9c1   :  { %3132 = vmatpush.msrb.mxu1 %v3064_v35  ;;  %3183 = vmatpush.msrb.mxu0 %v3153_v45  ;;  %v3297_v35 = vld [vmem:[#allocation8 + $0x8c8] sm:$0xff]  ;;  %v3287_v45 = vld [vmem:[#allocation8 + $0x878] sm:$0xff] }
 0x9c2   :  { %3091 = vmatpush.msrb.mxu2 %v3065_v56  ;;  %3221 = vmatpush.msra.mxu3 %v3161_v25  ;;  %v3386_v56 = vld [vmem:[#allocation10 + $0x8b8] sm:$0xff]  ;;  %v3280_v25 = vld [vmem:[#allocation8 + $0x840] sm:$0xff] }
 0x9c3   :  { %3133 = vmatpush.msrb.mxu1 %v3061_v36  ;;  %3184 = vmatpush.msrb.mxu0 %v3150_v41  ;;  %v3294_v36 = vld [vmem:[#allocation8 + $0x8b0] sm:$0xff]  ;;  %v3284_v41 = vld [vmem:[#allocation8 + $0x860] sm:$0xff] }
 0x9c4   :  { %3092 = vmatpush.msrb.mxu2 %v3062_v53  ;;  %3222 = vmatpush.msra.mxu3 %v3158_v38  ;;  %v3383_v53 = vld [vmem:[#allocation10 + $0x8a0] sm:$0xff]  ;;  %v3390_v38 = vld [vmem:[#allocation10 + $0x8d8] sm:$0xff] }
 0x9c5   :  { %3134 = vmatpush.msrb.mxu1 %v3058_v32  ;;  %3185 = vmatpush.msrb.mxu0 %v3147_v14  ;;  %v3291_v32 = vld [vmem:[#allocation8 + $0x898] sm:$0xff]  ;;  %v3380_v14 = vld [vmem:[#allocation10 + $0x888] sm:$0xff] }
 0x9c6   :  { %3093 = vmatpush.msrb.mxu2 %v3059_v29  ;;  %3223 = vmatpush.msra.mxu3 %v3155_v61  ;;  %v3292_v29 = vld [vmem:[#allocation8 + $0x8a0] sm:$0xff] }
 0x9c7   :  { %3135 = vmatpush.msrb.mxu1 %v3055_v49  ;;  %3186 = vmatpush.msrb.mxu0 %v3144_v44  ;;  %v3281_v49 = vld [vmem:[#allocation8 + $0x848] sm:$0xff]  ;;  %v3288_v44 = vld [vmem:[#allocation8 + $0x880] sm:$0xff] }
 0x9c8   :  { %3094 = vmatpush.msrb.mxu2 %v3056_v51  ;;  %3224 = vmatpush.msra.mxu3 %v3152_v5  ;;  %v3377_v51 = vld [vmem:[#allocation10 + $0x870] sm:$0xff]  ;;  %v3387_v61 = vld [vmem:[#allocation10 + $0x8c0] sm:$0xff] }
 0x9c9   :  { %3251 = vmatpush.msra.mxu1 %v5690_v63  ;;  %3271 = vmatpush.msra.mxu0 %v5712_v9 }
 0x9ca   :  { %3095 = vmatpush.msrb.mxu2 %v3053_v17  ;;  %3225 = vmatpush.msra.mxu3 %v3149_v23  ;;  %v3289_v17 = vld [vmem:[#allocation8 + $0x888] sm:$0xff]  ;;  %v3385_v23 = vld [vmem:[#allocation10 + $0x8b0] sm:$0xff] }
 0x9cb   :  { %3252 = vmatpush.msra.mxu1 %v5692_v1  ;;  %3272 = vmatpush.msra.mxu0 %v5714_v10 }
 0x9cc   :  { %3199 = vmatpush.msra.mxu2 %v3166_v31  ;;  %3226 = vmatpush.msra.mxu3 %v3146_v34  ;;  %v3285_v31 = vld [vmem:[#allocation8 + $0x868] sm:$0xff]  ;;  %v3382_v34 = vld [vmem:[#allocation10 + $0x898] sm:$0xff] }
 0x9cd   :  { %3253 = vmatpush.msra.mxu1 %v5697_v2  ;;  %3273 = vmatpush.msra.mxu0 %v5717_v11 }
 0x9ce   :  { %3200 = vmatpush.msra.mxu2 %v3163_v33  ;;  %v3282_v33 = vld [vmem:[#allocation8 + $0x850] sm:$0xff] }
 0x9cf   :  { %3254 = vmatpush.msra.mxu1 %v5702_v3  ;;  %3274 = vmatpush.msra.mxu0 %v5720_v12 }
 0x9d0   :  { %3201 = vmatpush.msra.mxu2 %v3160_v22  ;;  %v3283_v22 = vld [vmem:[#allocation8 + $0x858] sm:$0xff] }
 0x9d2   :  { %3202 = vmatpush.msra.mxu2 %v3157_v48  ;;  %v3393_v48 = vld [vmem:[#allocation10 + $0x8f0] sm:$0xff] }
 0x9d4   :  { %3203 = vmatpush.msra.mxu2 %v3154_v39  ;;  %v3391_v39 = vld [vmem:[#allocation10 + $0x8e0] sm:$0xff] }
 0x9d6   :  { %3204 = vmatpush.msra.mxu2 %v3151_v0  ;;  %v3388_v0 = vld [vmem:[#allocation10 + $0x8c8] sm:$0xff] }
 0x9d8   :  { %3205 = vmatpush.msra.mxu2 %v3148_v6  ;;  %v3384_v6 = vld [vmem:[#allocation10 + $0x8a8] sm:$0xff] }
 0x9da   :  { %3206 = vmatpush.msra.mxu2 %v3145_v62  ;;  %v3381_v62 = vld [vmem:[#allocation10 + $0x890] sm:$0xff] }
 0xa0b   :  { %v2961_v52 = vpop.f32.mrf.mxu3 }
 0xa13   :  { %v6068_v46 = vpop.f32.mrf.mxu3 }
 0xa14   :  { %4881 = vmatmul.msk.f32.vlgmr.msrb.gmra.mxu0 %vm232_vm0, %v6068_v46 }
 0xa15   :  { %3335 = vmatpush.msrb.mxu0 %v3302_v27 }
 0xa17   :  { %3336 = vmatpush.msrb.mxu0 %v3299_v60 }
 0xa19   :  { %3337 = vmatpush.msrb.mxu0 %v3296_v43 }
 0xa1b   :  { %3338 = vmatpush.msrb.mxu0 %v3293_v50  ;;  %v3529_v50 = vld [vmem:[#allocation8 + $0x9b0] sm:$0xff] }
 0xa1c   :  { %4886 = vmatmul.msk.f32.vlgmr.msra.gmra.mxu0 %vm322_vm2, %v4884_v7 }
 0xa1d   :  { %3339 = vmatpush.msrb.mxu0 %v3290_v28 }
 0xa1f   :  { %3340 = vmatpush.msrb.mxu0 %v3287_v45  ;;  %v3530_v45 = vld [vmem:[#allocation8 + $0x9b8] sm:$0xff] }
 0xa21   :  { %3341 = vmatpush.msrb.mxu0 %v3284_v41  ;;  %v3517_v41 = vld [vmem:[#allocation8 + $0x950] sm:$0xff] }
 0xa23   :  { %3342 = vmatpush.msrb.mxu0 %v3281_v49  ;;  %v3522_v49 = vld [vmem:[#allocation8 + $0x978] sm:$0xff] }
 0xa25   :  { %3446 = vmatpush.msra.mxu0 %v3394_v15  ;;  %v3518_v15 = vld [vmem:[#allocation8 + $0x958] sm:$0xff] }
 0xa27   :  { %3447 = vmatpush.msra.mxu0 %v3391_v39  ;;  %v3509_v39 = vld [vmem:[#allocation8 + $0x910] sm:$0xff] }
 0xa29   :  { %3448 = vmatpush.msra.mxu0 %v3388_v0  ;;  %v3510_v0 = vld [vmem:[#allocation8 + $0x918] sm:$0xff] }
 0xa2b   :  { %3449 = vmatpush.msra.mxu0 %v3385_v23  ;;  %v3621_v23 = vld [vmem:[#allocation10 + $0x9b8] sm:$0xff] }
 0xa2d   :  { %3450 = vmatpush.msra.mxu0 %v3382_v34  ;;  %v3617_v34 = vld [vmem:[#allocation10 + $0x998] sm:$0xff] }
 0xa2f   :  { %3451 = vmatpush.msra.mxu0 %v3379_v55  ;;  %v3614_v55 = vld [vmem:[#allocation10 + $0x980] sm:$0xff] }
 0xa34   :  { %v2870_v8 = vpop.f32.mrf.mxu1  ;;  %v2890_v13 = vpop.f32.mrf.mxu0 }
 0xa35   :  { %v2913_v20 = vadd.f32 %v2870_v8, %v6050_v26  ;;  %v6078_v42 = vadd.f32 %v2890_v13, %v2778_v4  ;;  %v3392_v26 = vld [vmem:[#allocation10 + $0x8e8] sm:$0xff]  ;;  %v3375_v8 = vld [vmem:[#allocation10 + $0x860] sm:$0xff] }
 0xa36   :  { %v3376_v13 = vld [vmem:[#allocation10 + $0x868] sm:$0xff] }
 0xa37   :  { %v6080_v21 = vadd.f32 %v2961_v52, %v2913_v20  ;;  %v3286_v52 = vld [vmem:[#allocation8 + $0x870] sm:$0xff]  ;;  %3452 = vmatpush.msra.mxu0 %v3376_v13  ;;  %v3372_v20 = vld [vmem:[#allocation10 + $0x848] sm:$0xff] }
 0xa38   :  { %v3612_v13 = vld [vmem:[#allocation10 + $0x970] sm:$0xff] }
 0xa3b   :  { %v2910_v54 = vpop.f32.mrf.mxu2 }
 0xa3c   :  { %v6083_v37 = vadd.f32 %v2910_v54, %v2779_v24  ;;  %v3373_v24 = vld [vmem:[#allocation10 + $0x850] sm:$0xff]  ;;  %v4893_v54 = vld [vmem:[%s6314_s8 + $0x18] sm:$0x3]  ;;  %v2981_v27 = vpop.f32.mrf.mxu1 }
 0xa3d   :  { %v3001_v5 = vpop.f32.mrf.mxu0  ;;  %3453 = vmatpush.msra.mxu0 %v3373_v24  ;;  %v3609_v24 = vld [vmem:[#allocation10 + $0x958] sm:$0xff] }
 0xa3e   :  { %v3006_v60 = vadd.f32 %v3001_v5, %v6083_v37  ;;  %v3507_v5 = vld [vmem:[#allocation8 + $0x900] sm:$0xff] }
 0xa43   :  { %v3029_v30 = vpop.f32.mrf.mxu2 }
 0xa44   :  { %4878 = vmatmul.msk.f32.vlgmr.msrb.gmra.mxu2 %vm232_vm0, %v3029_v30  ;;  %4879 = vmatmul.msk.f32.vlgmr.msrb.gmra.mxu3 %vm232_vm0, %v3029_v30 }
 0xa45   :  { %4880 = vmatmul.msk.f32.vlgmr.msrb.gmra.mxu1 %vm232_vm0, %v3029_v30  ;;  %3355 = vmatpush.msrb.mxu2 %v3303_v18  ;;  %v3526_v30 = vld [vmem:[#allocation8 + $0x998] sm:$0xff] }
 0xa46   :  { %3406 = vmatpush.msrb.mxu3 %v3392_v26  ;;  %3315 = vmatpush.msrb.mxu1 %v3301_v47  ;;  %v3523_v26 = vld [vmem:[#allocation8 + $0x980] sm:$0xff]  ;;  %v3005_v47 = vadd.f32 %v2981_v27, %v6078_v42 }
 0xa47   :  { %3356 = vmatpush.msrb.mxu2 %v3300_v57  ;;  %v3520_v57 = vld [vmem:[#allocation8 + $0x968] sm:$0xff]  ;;  %v3527_v42 = vld [vmem:[#allocation8 + $0x9a0] sm:$0xff] }
 0xa48   :  { %3407 = vmatpush.msrb.mxu3 %v3389_v19  ;;  %3316 = vmatpush.msrb.mxu1 %v3298_v59  ;;  %v3606_v27 = vld [vmem:[#allocation10 + $0x940] sm:$0xff] }
 0xa49   :  { %3357 = vmatpush.msrb.mxu2 %v3297_v35 }
 0xa4a   :  { %3408 = vmatpush.msrb.mxu3 %v3386_v56  ;;  %3317 = vmatpush.msrb.mxu1 %v3295_v40  ;;  %v3619_v56 = vld [vmem:[#allocation10 + $0x9a8] sm:$0xff] }
 0xa4b   :  { %3358 = vmatpush.msrb.mxu2 %v3294_v36  ;;  %v3528_v40 = vld [vmem:[#allocation8 + $0x9a8] sm:$0xff] }
 0xa4c   :  { %3409 = vmatpush.msrb.mxu3 %v3383_v53  ;;  %4882 = vmatmul.msk.f32.vlgmr.msra.gmra.mxu2 %vm232_vm0, %v6068_v46  ;;  %v3616_v53 = vld [vmem:[#allocation10 + $0x990] sm:$0xff] }
 0xa4d   :  { %4883 = vmatmul.msk.f32.vlgmr.msra.gmra.mxu3 %vm232_vm0, %v6068_v46  ;;  %4885 = vmatmul.msk.f32.vlgmr.msra.gmra.mxu1 %vm322_vm2, %v4884_v7  ;;  %v3378_v7 = vld [vmem:[#allocation10 + $0x878] sm:$0xff] }
 0xa4e   :  { %3359 = vmatpush.msrb.mxu2 %v3291_v32  ;;  %3410 = vmatpush.msrb.mxu3 %v3380_v14  ;;  %v3524_v32 = vld [vmem:[#allocation8 + $0x988] sm:$0xff]  ;;  %v3514_v14 = vld [vmem:[#allocation8 + $0x938] sm:$0xff] }
 0xa4f   :  { %3318 = vmatpush.msrb.mxu1 %v3292_v29  ;;  %v3613_v29 = vld [vmem:[#allocation10 + $0x978] sm:$0xff] }
 0xa50   :  { %3360 = vmatpush.msrb.mxu2 %v3288_v44  ;;  %3411 = vmatpush.msrb.mxu3 %v3377_v51  ;;  %v3521_v44 = vld [vmem:[#allocation8 + $0x970] sm:$0xff]  ;;  %v3511_v51 = vld [vmem:[#allocation8 + $0x920] sm:$0xff] }
 0xa51   :  { %3319 = vmatpush.msrb.mxu1 %v3289_v17  ;;  %v3610_v17 = vld [vmem:[#allocation10 + $0x960] sm:$0xff] }
 0xa52   :  { %3361 = vmatpush.msrb.mxu2 %v3285_v31  ;;  %3412 = vmatpush.msrb.mxu3 %v3374_v16  ;;  %v3607_v31 = vld [vmem:[#allocation10 + $0x948] sm:$0xff]  ;;  %v3519_v16 = vld [vmem:[#allocation8 + $0x960] sm:$0xff] }
 0xa53   :  { %3320 = vmatpush.msrb.mxu1 %v3286_v52  ;;  %v3508_v52 = vld [vmem:[#allocation8 + $0x908] sm:$0xff] }
 0xa54   :  { %3362 = vmatpush.msrb.mxu2 %v3282_v33  ;;  %3413 = vmatpush.msrb.mxu3 %v3371_v58  ;;  %v3515_v33 = vld [vmem:[#allocation8 + $0x940] sm:$0xff]  ;;  %v3604_v58 = vld [vmem:[#allocation10 + $0x930] sm:$0xff] }
 0xa55   :  { %3321 = vmatpush.msrb.mxu1 %v3283_v22  ;;  %v3516_v22 = vld [vmem:[#allocation8 + $0x948] sm:$0xff] }
 0xa56   :  { %3478 = vmatpush.msra.mxu2 %v5690_v63  ;;  %3498 = vmatpush.msra.mxu3 %v5712_v9 }
 0xa57   :  { %3322 = vmatpush.msrb.mxu1 %v3280_v25  ;;  %v3512_v25 = vld [vmem:[#allocation8 + $0x928] sm:$0xff] }
 0xa58   :  { %3479 = vmatpush.msra.mxu2 %v5692_v1  ;;  %3499 = vmatpush.msra.mxu3 %v5714_v10 }
 0xa59   :  { %3426 = vmatpush.msra.mxu1 %v3393_v48  ;;  %v3601_v48 = vld [vmem:[#allocation10 + $0x918] sm:$0xff] }
 0xa5a   :  { %3480 = vmatpush.msra.mxu2 %v5697_v2  ;;  %3500 = vmatpush.msra.mxu3 %v5717_v11 }
 0xa5b   :  { %3427 = vmatpush.msra.mxu1 %v3390_v38  ;;  %v3513_v38 = vld [vmem:[#allocation8 + $0x930] sm:$0xff] }
 0xa5c   :  { %3481 = vmatpush.msra.mxu2 %v5702_v3  ;;  %3501 = vmatpush.msra.mxu3 %v5720_v12 }
 0xa5d   :  { %3428 = vmatpush.msra.mxu1 %v3387_v61  ;;  %v3598_v61 = vld [vmem:[#allocation10 + $0x900] sm:$0xff] }
 0xa5f   :  { %3429 = vmatpush.msra.mxu1 %v3384_v6  ;;  %v3620_v6 = vld [vmem:[#allocation10 + $0x9b0] sm:$0xff] }
 0xa61   :  { %3430 = vmatpush.msra.mxu1 %v3381_v62 }
 0xa63   :  { %3431 = vmatpush.msra.mxu1 %v3378_v7  ;;  %v3618_v7 = vld [vmem:[#allocation10 + $0x9a0] sm:$0xff] }
 0xa65   :  { %3432 = vmatpush.msra.mxu1 %v3375_v8  ;;  %v3611_v8 = vld [vmem:[#allocation10 + $0x968] sm:$0xff] }
 0xa67   :  { %3433 = vmatpush.msra.mxu1 %v3372_v20  ;;  %v3608_v20 = vld [vmem:[#allocation10 + $0x950] sm:$0xff] }
 0xa91   :  { %v3188_v46 = vpop.f32.mrf.mxu0 }
 0xa99   :  { %v6101_v4 = vpop.f32.mrf.mxu0 }
 0xa9a   :  { %4890 = vmatmul.msk.f32.vlgmr.msrb.gmra.mxu3 %vm232_vm0, %v6101_v4 }
 0xa9b   :  { %3562 = vmatpush.msrb.mxu3 %v3529_v50  ;;  %v3603_v50 = vld [vmem:[#allocation10 + $0x928] sm:$0xff] }
 0xa9d   :  { %3563 = vmatpush.msrb.mxu3 %v3526_v30  ;;  %v3599_v30 = vld [vmem:[#allocation10 + $0x908] sm:$0xff] }
 0xa9f   :  { %3564 = vmatpush.msrb.mxu3 %v3523_v26  ;;  %v3600_v26 = vld [vmem:[#allocation10 + $0x910] sm:$0xff] }
 0xaa1   :  { %3565 = vmatpush.msrb.mxu3 %v3520_v57 }
 0xaa2   :  { %4895 = vmatmul.msk.f32.vlgmr.msra.gmra.mxu3 %vm322_vm2, %v4893_v54 }
 0xaa3   :  { %3566 = vmatpush.msrb.mxu3 %v3517_v41  ;;  %v3756_v41 = vld [vmem:[#allocation8 + $0xa70] sm:$0xff] }
 0xaa5   :  { %3567 = vmatpush.msrb.mxu3 %v3514_v14  ;;  %v3747_v14 = vld [vmem:[#allocation8 + $0xa28] sm:$0xff] }
 0xaa7   :  { %3568 = vmatpush.msrb.mxu3 %v3511_v51  ;;  %v3843_v51 = vld [vmem:[#allocation10 + $0xa50] sm:$0xff] }
 0xaa9   :  { %3569 = vmatpush.msrb.mxu3 %v3508_v52  ;;  %v3749_v52 = vld [vmem:[#allocation8 + $0xa38] sm:$0xff] }
 0xaab   :  { %3673 = vmatpush.msra.mxu3 %v3621_v23  ;;  %v3828_v23 = vld [vmem:[#allocation10 + $0x9d8] sm:$0xff] }
 0xaad   :  { %3674 = vmatpush.msra.mxu3 %v3618_v7  ;;  %v3825_v7 = vld [vmem:[#allocation10 + $0x9c0] sm:$0xff] }
 0xac2   :  { %v3137_v43 = vpop.f32.mrf.mxu1 }
 0xac3   :  { %v6110_v18 = vadd.f32 %v3137_v43, %v3006_v60  ;;  %v3602_v43 = vld [vmem:[#allocation10 + $0x920] sm:$0xff] }
 0xac7   :  { %v3097_v28 = vpop.f32.mrf.mxu2  ;;  %v3117_v19 = vpop.f32.mrf.mxu3 }
 0xac8   :  { %v3140_v59 = vadd.f32 %v3097_v28, %v6080_v21  ;;  %v6114_v35 = vadd.f32 %v3117_v19, %v3005_v47  ;;  %v3525_v21 = vld [vmem:[#allocation8 + $0x990] sm:$0xff]  ;;  %v4902_v47 = vld [vmem:[%s6314_s8 + $0x1a] sm:$0x3] }
 0xaca   :  { %v3256_v37 = vpop.f32.mrf.mxu1  ;;  %v6116_v36 = vadd.f32 %v3188_v46, %v3140_v59 }
 0xacb   :  { %4887 = vmatmul.msk.f32.vlgmr.msrb.gmra.mxu1 %vm232_vm0, %v3256_v37  ;;  %4888 = vmatmul.msk.f32.vlgmr.msrb.gmra.mxu0 %vm232_vm0, %v3256_v37 }
 0xacc   :  { %4889 = vmatmul.msk.f32.vlgmr.msrb.gmra.mxu2 %vm232_vm0, %v3256_v37  ;;  %3582 = vmatpush.msrb.mxu1 %v3530_v45 }
 0xacd   :  { %3633 = vmatpush.msrb.mxu0 %v3619_v56  ;;  %3542 = vmatpush.msrb.mxu2 %v3528_v40 }
 0xace   :  { %3583 = vmatpush.msrb.mxu1 %v3527_v42 }
 0xacf   :  { %3634 = vmatpush.msrb.mxu0 %v3616_v53  ;;  %3543 = vmatpush.msrb.mxu2 %v3525_v21  ;;  %v3208_v57 = vpop.f32.mrf.mxu2  ;;  %v3753_v21 = vld [vmem:[#allocation8 + $0xa58] sm:$0xff] }
 0xad0   :  { %3584 = vmatpush.msrb.mxu1 %v3524_v32  ;;  %v3228_v46 = vpop.f32.mrf.mxu3  ;;  %v3232_v28 = vadd.f32 %v3208_v57, %v6114_v35  ;;  %v3750_v32 = vld [vmem:[#allocation8 + $0xa40] sm:$0xff]  ;;  %v3757_v35 = vld [vmem:[#allocation8 + $0xa78] sm:$0xff] }
 0xad1   :  { %3635 = vmatpush.msrb.mxu0 %v3613_v29  ;;  %3544 = vmatpush.msrb.mxu2 %v3522_v49  ;;  %v3233_v40 = vadd.f32 %v3228_v46, %v6110_v18  ;;  %v3755_v49 = vld [vmem:[#allocation8 + $0xa68] sm:$0xff]  ;;  %v3754_v18 = vld [vmem:[#allocation8 + $0xa60] sm:$0xff]  ;;  %v3848_v46 = vld [vmem:[#allocation10 + $0xa78] sm:$0xff] }
 0xad2   :  { %3585 = vmatpush.msrb.mxu1 %v3521_v44  ;;  %v3744_v44 = vld [vmem:[#allocation8 + $0xa10] sm:$0xff]  ;;  %v3833_v57 = vld [vmem:[#allocation10 + $0xa00] sm:$0xff] }
 0xad3   :  { %3636 = vmatpush.msrb.mxu0 %v3610_v17  ;;  %4891 = vmatmul.msk.f32.vlgmr.msra.gmra.mxu1 %vm232_vm0, %v6101_v4  ;;  %v3752_v17 = vld [vmem:[#allocation8 + $0xa50] sm:$0xff] }
 0xad4   :  { %4892 = vmatmul.msk.f32.vlgmr.msra.gmra.mxu0 %vm232_vm0, %v6101_v4  ;;  %4894 = vmatmul.msk.f32.vlgmr.msra.gmra.mxu2 %vm322_vm2, %v4893_v54  ;;  %v3615_v4 = vld [vmem:[#allocation10 + $0x988] sm:$0xff]  ;;  %v3605_v54 = vld [vmem:[#allocation10 + $0x938] sm:$0xff] }
 0xad5   :  { %3586 = vmatpush.msrb.mxu1 %v3518_v15  ;;  %3637 = vmatpush.msrb.mxu0 %v3607_v31  ;;  %v3751_v15 = vld [vmem:[#allocation8 + $0xa48] sm:$0xff]  ;;  %v3741_v31 = vld [vmem:[#allocation8 + $0x9f8] sm:$0xff] }
 0xad6   :  { %3545 = vmatpush.msrb.mxu2 %v3519_v16  ;;  %3675 = vmatpush.msra.mxu3 %v3615_v4  ;;  %v3840_v16 = vld [vmem:[#allocation10 + $0xa38] sm:$0xff]  ;;  %v3734_v4 = vld [vmem:[#allocation8 + $0x9c0] sm:$0xff] }
 0xad7   :  { %3587 = vmatpush.msrb.mxu1 %v3515_v33  ;;  %3638 = vmatpush.msrb.mxu0 %v3604_v58  ;;  %v3748_v33 = vld [vmem:[#allocation8 + $0xa30] sm:$0xff]  ;;  %v3738_v58 = vld [vmem:[#allocation8 + $0x9e0] sm:$0xff] }
 0xad8   :  { %3546 = vmatpush.msrb.mxu2 %v3516_v22  ;;  %3676 = vmatpush.msra.mxu3 %v3612_v13  ;;  %v3837_v22 = vld [vmem:[#allocation10 + $0xa20] sm:$0xff]  ;;  %v3844_v13 = vld [vmem:[#allocation10 + $0xa58] sm:$0xff] }
 0xad9   :  { %3588 = vmatpush.msrb.mxu1 %v3512_v25  ;;  %3639 = vmatpush.msrb.mxu0 %v3601_v48  ;;  %v3745_v25 = vld [vmem:[#allocation8 + $0xa18] sm:$0xff]  ;;  %v3834_v48 = vld [vmem:[#allocation10 + $0xa08] sm:$0xff] }
 0xada   :  { %3547 = vmatpush.msrb.mxu2 %v3513_v38  ;;  %3677 = vmatpush.msra.mxu3 %v3609_v24  ;;  %v3746_v38 = vld [vmem:[#allocation8 + $0xa20] sm:$0xff] }
 0xadb   :  { %3589 = vmatpush.msrb.mxu1 %v3509_v39  ;;  %3640 = vmatpush.msrb.mxu0 %v3598_v61  ;;  %v3735_v39 = vld [vmem:[#allocation8 + $0x9c8] sm:$0xff]  ;;  %v3742_v61 = vld [vmem:[#allocation8 + $0xa00] sm:$0xff] }
 0xadc   :  { %3548 = vmatpush.msrb.mxu2 %v3510_v0  ;;  %3678 = vmatpush.msra.mxu3 %v3606_v27  ;;  %v3831_v0 = vld [vmem:[#allocation10 + $0x9f0] sm:$0xff]  ;;  %v3841_v24 = vld [vmem:[#allocation10 + $0xa40] sm:$0xff] }
 0xadd   :  { %3705 = vmatpush.msra.mxu1 %v5690_v63  ;;  %3725 = vmatpush.msra.mxu0 %v5712_v9 }
 0xade   :  { %3549 = vmatpush.msrb.mxu2 %v3507_v5  ;;  %3679 = vmatpush.msra.mxu3 %v3603_v50  ;;  %v3743_v5 = vld [vmem:[#allocation8 + $0xa08] sm:$0xff]  ;;  %v3839_v50 = vld [vmem:[#allocation10 + $0xa30] sm:$0xff] }
 0xadf   :  { %3706 = vmatpush.msra.mxu1 %v5692_v1  ;;  %3726 = vmatpush.msra.mxu0 %v5714_v10 }
 0xae0   :  { %3653 = vmatpush.msra.mxu2 %v3620_v6  ;;  %3680 = vmatpush.msra.mxu3 %v3600_v26  ;;  %v3739_v6 = vld [vmem:[#allocation8 + $0x9e8] sm:$0xff]  ;;  %v3836_v26 = vld [vmem:[#allocation10 + $0xa18] sm:$0xff] }
 0xae1   :  { %3707 = vmatpush.msra.mxu1 %v5697_v2  ;;  %3727 = vmatpush.msra.mxu0 %v5717_v11 }
 0xae2   :  { %3654 = vmatpush.msra.mxu2 %v3617_v34  ;;  %v3736_v34 = vld [vmem:[#allocation8 + $0x9d0] sm:$0xff] }
 0xae3   :  { %3708 = vmatpush.msra.mxu1 %v5702_v3  ;;  %3728 = vmatpush.msra.mxu0 %v5720_v12 }
 0xae4   :  { %3655 = vmatpush.msra.mxu2 %v3614_v55  ;;  %v3737_v55 = vld [vmem:[#allocation8 + $0x9d8] sm:$0xff] }
 0xae6   :  { %3656 = vmatpush.msra.mxu2 %v3611_v8  ;;  %v3847_v8 = vld [vmem:[#allocation10 + $0xa70] sm:$0xff] }
 0xae8   :  { %3657 = vmatpush.msra.mxu2 %v3608_v20  ;;  %v3845_v20 = vld [vmem:[#allocation10 + $0xa60] sm:$0xff] }
 0xaea   :  { %3658 = vmatpush.msra.mxu2 %v3605_v54  ;;  %v3842_v54 = vld [vmem:[#allocation10 + $0xa48] sm:$0xff] }
 0xaec   :  { %3659 = vmatpush.msra.mxu2 %v3602_v43  ;;  %v3838_v43 = vld [vmem:[#allocation10 + $0xa28] sm:$0xff] }
 0xaee   :  { %3660 = vmatpush.msra.mxu2 %v3599_v30  ;;  %v3835_v30 = vld [vmem:[#allocation10 + $0xa10] sm:$0xff] }
 0xb1d   :  { %v3415_v62 = vpop.f32.mrf.mxu3 }
 0xb25   :  { %v6134_v60 = vpop.f32.mrf.mxu3 }
 0xb26   :  { %4899 = vmatmul.msk.f32.vlgmr.msrb.gmra.mxu0 %vm232_vm0, %v6134_v60 }
 0xb27   :  { %3789 = vmatpush.msrb.mxu0 %v3756_v41 }
 0xb29   :  { %3790 = vmatpush.msrb.mxu0 %v3753_v21 }
 0xb2b   :  { %3791 = vmatpush.msrb.mxu0 %v3750_v32 }
 0xb2d   :  { %3792 = vmatpush.msrb.mxu0 %v3747_v14  ;;  %v3983_v14 = vld [vmem:[#allocation8 + $0xb30] sm:$0xff] }
 0xb2e   :  { %4904 = vmatmul.msk.f32.vlgmr.msra.gmra.mxu0 %vm322_vm2, %v4902_v47 }
 0xb2f   :  { %3793 = vmatpush.msrb.mxu0 %v3744_v44 }
 0xb31   :  { %3794 = vmatpush.msrb.mxu0 %v3741_v31  ;;  %v3984_v31 = vld [vmem:[#allocation8 + $0xb38] sm:$0xff] }
 0xb33   :  { %3795 = vmatpush.msrb.mxu0 %v3738_v58  ;;  %v4070_v58 = vld [vmem:[#allocation10 + $0xb10] sm:$0xff] }
 0xb35   :  { %3796 = vmatpush.msrb.mxu0 %v3735_v39  ;;  %v4064_v39 = vld [vmem:[#allocation10 + $0xae0] sm:$0xff] }
 0xb37   :  { %3900 = vmatpush.msra.mxu0 %v3848_v46  ;;  %v3969_v46 = vld [vmem:[#allocation8 + $0xac0] sm:$0xff] }
 0xb39   :  { %3901 = vmatpush.msra.mxu0 %v3845_v20  ;;  %v4071_v20 = vld [vmem:[#allocation10 + $0xb18] sm:$0xff] }
 0xb3b   :  { %3902 = vmatpush.msra.mxu0 %v3842_v54 }
 0xb3d   :  { %3903 = vmatpush.msra.mxu0 %v3839_v50  ;;  %v4066_v50 = vld [vmem:[#allocation10 + $0xaf0] sm:$0xff] }
 0xb3f   :  { %3904 = vmatpush.msra.mxu0 %v3836_v26  ;;  %v4063_v26 = vld [vmem:[#allocation10 + $0xad8] sm:$0xff] }
 0xb41   :  { %3905 = vmatpush.msra.mxu0 %v3833_v57  ;;  %v4060_v57 = vld [vmem:[#allocation10 + $0xac0] sm:$0xff] }
 0xb48   :  { %v3324_v19 = vpop.f32.mrf.mxu1  ;;  %v3344_v59 = vpop.f32.mrf.mxu0 }
 0xb49   :  { %v3367_v45 = vadd.f32 %v3324_v19, %v6116_v36  ;;  %v6144_v37 = vadd.f32 %v3344_v59, %v3232_v28  ;;  %v3846_v36 = vld [vmem:[#allocation10 + $0xa68] sm:$0xff]  ;;  %v3829_v19 = vld [vmem:[#allocation10 + $0x9e0] sm:$0xff] }
 0xb4a   :  { %v3830_v59 = vld [vmem:[#allocation10 + $0x9e8] sm:$0xff] }
 0xb4b   :  { %v6146_v56 = vadd.f32 %v3415_v62, %v3367_v45  ;;  %v3740_v62 = vld [vmem:[#allocation8 + $0x9f0] sm:$0xff]  ;;  %3906 = vmatpush.msra.mxu0 %v3830_v59  ;;  %v3826_v45 = vld [vmem:[#allocation10 + $0x9c8] sm:$0xff] }
 0xb4c   :  { %v4057_v59 = vld [vmem:[#allocation10 + $0xaa8] sm:$0xff] }
 0xb4f   :  { %v3364_v42 = vpop.f32.mrf.mxu2 }
 0xb50   :  { %v6149_v53 = vadd.f32 %v3364_v42, %v3233_v40  ;;  %v3827_v40 = vld [vmem:[#allocation10 + $0x9d0] sm:$0xff]  ;;  %v4911_v42 = vld [vmem:[%s6314_s8 + $0x1c] sm:$0x3]  ;;  %v3435_v41 = vpop.f32.mrf.mxu1 }
 0xb51   :  { %v3455_v27 = vpop.f32.mrf.mxu0  ;;  %3907 = vmatpush.msra.mxu0 %v3827_v40  ;;  %v4054_v40 = vld [vmem:[#allocation10 + $0xa90] sm:$0xff] }
 0xb52   :  { %v3460_v21 = vadd.f32 %v3455_v27, %v6149_v53  ;;  %v4068_v27 = vld [vmem:[#allocation10 + $0xb00] sm:$0xff] }
 0xb57   :  { %v3483_v29 = vpop.f32.mrf.mxu2 }
 0xb58   :  { %4896 = vmatmul.msk.f32.vlgmr.msrb.gmra.mxu2 %vm232_vm0, %v3483_v29  ;;  %4897 = vmatmul.msk.f32.vlgmr.msrb.gmra.mxu3 %vm232_vm0, %v3483_v29 }
 0xb59   :  { %4898 = vmatmul.msk.f32.vlgmr.msrb.gmra.mxu1 %vm232_vm0, %v3483_v29  ;;  %3809 = vmatpush.msrb.mxu2 %v3757_v35  ;;  %v3980_v29 = vld [vmem:[#allocation8 + $0xb18] sm:$0xff] }
 0xb5a   :  { %3860 = vmatpush.msrb.mxu3 %v3846_v36  ;;  %3769 = vmatpush.msrb.mxu1 %v3755_v49  ;;  %v3977_v36 = vld [vmem:[#allocation8 + $0xb00] sm:$0xff]  ;;  %v3459_v49 = vadd.f32 %v3435_v41, %v6144_v37  ;;  %v4207_v41 = vld [vmem:[#allocation8 + $0xbd8] sm:$0xff] }
 0xb5b   :  { %3810 = vmatpush.msrb.mxu2 %v3754_v18  ;;  %v3974_v18 = vld [vmem:[#allocation8 + $0xae8] sm:$0xff]  ;;  %v3981_v37 = vld [vmem:[#allocation8 + $0xb20] sm:$0xff] }
 0xb5c   :  { %3861 = vmatpush.msrb.mxu3 %v3843_v51  ;;  %3770 = vmatpush.msrb.mxu1 %v3752_v17 }
 0xb5d   :  { %3811 = vmatpush.msrb.mxu2 %v3751_v15 }
 0xb5e   :  { %3862 = vmatpush.msrb.mxu3 %v3840_v16  ;;  %3771 = vmatpush.msrb.mxu1 %v3749_v52  ;;  %v4073_v16 = vld [vmem:[#allocation10 + $0xb28] sm:$0xff] }
 0xb5f   :  { %3812 = vmatpush.msrb.mxu2 %v3748_v33  ;;  %v3982_v52 = vld [vmem:[#allocation8 + $0xb28] sm:$0xff] }
 0xb60   :  { %3863 = vmatpush.msrb.mxu3 %v3837_v22  ;;  %4900 = vmatmul.msk.f32.vlgmr.msra.gmra.mxu2 %vm232_vm0, %v6134_v60  ;;  %v3979_v22 = vld [vmem:[#allocation8 + $0xb10] sm:$0xff] }
 0xb61   :  { %4901 = vmatmul.msk.f32.vlgmr.msra.gmra.mxu3 %vm232_vm0, %v6134_v60  ;;  %4903 = vmatmul.msk.f32.vlgmr.msra.gmra.mxu1 %vm322_vm2, %v4902_v47  ;;  %v3832_v47 = vld [vmem:[#allocation10 + $0x9f8] sm:$0xff] }
 0xb62   :  { %3813 = vmatpush.msrb.mxu2 %v3745_v25  ;;  %3864 = vmatpush.msrb.mxu3 %v3834_v48  ;;  %v4067_v25 = vld [vmem:[#allocation10 + $0xaf8] sm:$0xff] }
 0xb63   :  { %3772 = vmatpush.msrb.mxu1 %v3746_v38  ;;  %v3976_v48 = vld [vmem:[#allocation8 + $0xaf8] sm:$0xff]  ;;  %v3975_v38 = vld [vmem:[#allocation8 + $0xaf0] sm:$0xff] }
 0xb64   :  { %3814 = vmatpush.msrb.mxu2 %v3742_v61  ;;  %3865 = vmatpush.msrb.mxu3 %v3831_v0  ;;  %v3972_v61 = vld [vmem:[#allocation8 + $0xad8] sm:$0xff]  ;;  %v4061_v0 = vld [vmem:[#allocation10 + $0xac8] sm:$0xff] }
 0xb65   :  { %3773 = vmatpush.msrb.mxu1 %v3743_v5  ;;  %v3973_v5 = vld [vmem:[#allocation8 + $0xae0] sm:$0xff] }
 0xb66   :  { %3815 = vmatpush.msrb.mxu2 %v3739_v6  ;;  %3866 = vmatpush.msrb.mxu3 %v3828_v23  ;;  %v4058_v6 = vld [vmem:[#allocation10 + $0xab0] sm:$0xff]  ;;  %v3966_v23 = vld [vmem:[#allocation8 + $0xaa8] sm:$0xff] }
 0xb67   :  { %3774 = vmatpush.msrb.mxu1 %v3740_v62  ;;  %v4055_v62 = vld [vmem:[#allocation10 + $0xa98] sm:$0xff] }
 0xb68   :  { %3816 = vmatpush.msrb.mxu2 %v3736_v34  ;;  %3867 = vmatpush.msrb.mxu3 %v3825_v7  ;;  %v3963_v34 = vld [vmem:[#allocation8 + $0xa90] sm:$0xff]  ;;  %v4052_v7 = vld [vmem:[#allocation10 + $0xa80] sm:$0xff] }
 0xb69   :  { %3775 = vmatpush.msrb.mxu1 %v3737_v55 }
 0xb6a   :  { %3932 = vmatpush.msra.mxu2 %v5690_v63  ;;  %3952 = vmatpush.msra.mxu3 %v5712_v9 }
 0xb6b   :  { %3776 = vmatpush.msrb.mxu1 %v3734_v4  ;;  %v3970_v4 = vld [vmem:[#allocation8 + $0xac8] sm:$0xff] }
 0xb6c   :  { %3933 = vmatpush.msra.mxu2 %v5692_v1  ;;  %3953 = vmatpush.msra.mxu3 %v5714_v10 }
 0xb6d   :  { %3880 = vmatpush.msra.mxu1 %v3847_v8  ;;  %v3971_v8 = vld [vmem:[#allocation8 + $0xad0] sm:$0xff] }
 0xb6e   :  { %3934 = vmatpush.msra.mxu2 %v5697_v2  ;;  %3954 = vmatpush.msra.mxu3 %v5717_v11 }
 0xb6f   :  { %3881 = vmatpush.msra.mxu1 %v3844_v13  ;;  %v3964_v13 = vld [vmem:[#allocation8 + $0xa98] sm:$0xff] }
 0xb70   :  { %3935 = vmatpush.msra.mxu2 %v5702_v3  ;;  %3955 = vmatpush.msra.mxu3 %v5720_v12 }
 0xb71   :  { %3882 = vmatpush.msra.mxu1 %v3841_v24  ;;  %v4072_v24 = vld [vmem:[#allocation10 + $0xb20] sm:$0xff] }
 0xb73   :  { %3883 = vmatpush.msra.mxu1 %v3838_v43  ;;  %v4065_v43 = vld [vmem:[#allocation10 + $0xae8] sm:$0xff] }
 0xb75   :  { %3884 = vmatpush.msra.mxu1 %v3835_v30  ;;  %v4062_v30 = vld [vmem:[#allocation10 + $0xad0] sm:$0xff] }
 0xb77   :  { %3885 = vmatpush.msra.mxu1 %v3832_v47  ;;  %v4059_v47 = vld [vmem:[#allocation10 + $0xab8] sm:$0xff] }
 0xb79   :  { %3886 = vmatpush.msra.mxu1 %v3829_v19  ;;  %v4056_v19 = vld [vmem:[#allocation10 + $0xaa0] sm:$0xff] }
 0xb7b   :  { %3887 = vmatpush.msra.mxu1 %v3826_v45  ;;  %v4053_v45 = vld [vmem:[#allocation10 + $0xa88] sm:$0xff] }
 0xba3   :  { %v3642_v60 = vpop.f32.mrf.mxu0 }
 0xbab   :  { %v3730_v28 = vpop.f32.mrf.mxu0 }
 0xbac   :  { %4908 = vmatmul.msk.f32.vlgmr.msrb.gmra.mxu3 %vm232_vm0, %v3730_v28 }
 0xbad   :  { %4016 = vmatpush.msrb.mxu3 %v3983_v14  ;;  %v4201_v14 = vld [vmem:[#allocation8 + $0xba8] sm:$0xff] }
 0xbaf   :  { %4017 = vmatpush.msrb.mxu3 %v3980_v29 }
 0xbb1   :  { %4018 = vmatpush.msrb.mxu3 %v3977_v36  ;;  %v4198_v36 = vld [vmem:[#allocation8 + $0xb90] sm:$0xff] }
 0xbb3   :  { %4019 = vmatpush.msrb.mxu3 %v3974_v18 }
 0xbb4   :  { %4913 = vmatmul.msk.f32.vlgmr.msra.gmra.mxu3 %vm322_vm2, %v4911_v42 }
 0xbb5   :  { %4020 = vmatpush.msrb.mxu3 %v3971_v8  ;;  %v4189_v8 = vld [vmem:[#allocation8 + $0xb48] sm:$0xff] }
 0xbd6   :  { %v3591_v32 = vpop.f32.mrf.mxu1 }
 0xbd7   :  { %v6173_v35 = vadd.f32 %v3591_v32, %v3460_v21  ;;  %v4204_v21 = vld [vmem:[#allocation8 + $0xbc0] sm:$0xff] }
 0xbdb   :  { %v3551_v44 = vpop.f32.mrf.mxu2  ;;  %v3571_v51 = vpop.f32.mrf.mxu3 }
 0xbdc   :  { %v3594_v17 = vadd.f32 %v3551_v44, %v6146_v56  ;;  %v6177_v15 = vadd.f32 %v3571_v51, %v3459_v49  ;;  %v3978_v56 = vld [vmem:[#allocation8 + $0xb08] sm:$0xff] }
 0xbde   :  { %v3710_v53 = vpop.f32.mrf.mxu1  ;;  %v6179_v33 = vadd.f32 %v3642_v60, %v3594_v17  ;;  %v4069_v60 = vld [vmem:[#allocation10 + $0xb08] sm:$0xff] }
 0xbdf   :  { %4905 = vmatmul.msk.f32.vlgmr.msrb.gmra.mxu1 %vm232_vm0, %v3710_v53  ;;  %4906 = vmatmul.msk.f32.vlgmr.msrb.gmra.mxu0 %vm232_vm0, %v3710_v53 }
 0xbe0   :  { %4907 = vmatmul.msk.f32.vlgmr.msrb.gmra.mxu2 %vm232_vm0, %v3710_v53  ;;  %4036 = vmatpush.msrb.mxu1 %v3984_v31 }
 0xbe1   :  { %4087 = vmatpush.msrb.mxu0 %v4073_v16  ;;  %3996 = vmatpush.msrb.mxu2 %v3982_v52  ;;  %v4300_v52 = vld [vmem:[#allocation10 + $0xbe8] sm:$0xff] }
 0xbe2   :  { %4037 = vmatpush.msrb.mxu1 %v3981_v37  ;;  %v4209_v37 = vld [vmem:[#allocation8 + $0xbe8] sm:$0xff] }
 0xbe3   :  { %4088 = vmatpush.msrb.mxu0 %v4070_v58  ;;  %3997 = vmatpush.msrb.mxu2 %v3979_v22  ;;  %v3662_v32 = vpop.f32.mrf.mxu2  ;;  %v4211_v58 = vld [vmem:[#allocation8 + $0xbf8] sm:$0xff]  ;;  %v4206_v22 = vld [vmem:[#allocation8 + $0xbd0] sm:$0xff] }
 0xbe4   :  { %4038 = vmatpush.msrb.mxu1 %v3978_v56  ;;  %v6195_v55 = vpop.f32.mrf.mxu3  ;;  %v3686_v29 = vadd.f32 %v3662_v32, %v6177_v15  ;;  %v4294_v56 = vld [vmem:[#allocation10 + $0xbb8] sm:$0xff]  ;;  %v4407_v32 = vld [vmem:[#allocation13 + $0xc0] sm:$0xff] }
 0xbe5   :  { %4089 = vmatpush.msrb.mxu0 %v4067_v25  ;;  %3998 = vmatpush.msrb.mxu2 %v3976_v48  ;;  %v3687_v31 = vadd.f32 %v6195_v55, %v6173_v35  ;;  %v4203_v35 = vld [vmem:[#allocation8 + $0xbb8] sm:$0xff]  ;;  %v4200_v25 = vld [vmem:[#allocation8 + $0xba0] sm:$0xff]  ;;  %v4197_v48 = vld [vmem:[#allocation8 + $0xb88] sm:$0xff] }
 0xbe6   :  { %4039 = vmatpush.msrb.mxu1 %v3975_v38  ;;  %v4208_v38 = vld [vmem:[#allocation8 + $0xbe0] sm:$0xff]  ;;  %v4285_v55 = vld [vmem:[#allocation10 + $0xb70] sm:$0xff] }
 0xbe7   :  { %4090 = vmatpush.msrb.mxu0 %v4064_v39  ;;  %4909 = vmatmul.msk.f32.vlgmr.msra.gmra.mxu1 %vm232_vm0, %v3730_v28  ;;  %v4291_v39 = vld [vmem:[#allocation10 + $0xba0] sm:$0xff] }
 0xbe8   :  { %4910 = vmatmul.msk.f32.vlgmr.msra.gmra.mxu0 %vm232_vm0, %v3730_v28  ;;  %4912 = vmatmul.msk.f32.vlgmr.msra.gmra.mxu2 %vm322_vm2, %v4911_v42  ;;  %v4920_v28 = vld [vmem:[%s6314_s8 + $0x1e] sm:$0x3]  ;;  %v4210_v42 = vld [vmem:[#allocation8 + $0xbf0] sm:$0xff] }
 0xbe9   :  { %4040 = vmatpush.msrb.mxu1 %v3972_v61  ;;  %4091 = vmatpush.msrb.mxu0 %v4061_v0  ;;  %v4194_v61 = vld [vmem:[#allocation8 + $0xb70] sm:$0xff]  ;;  %v4195_v0 = vld [vmem:[#allocation8 + $0xb78] sm:$0xff] }
 0xbea   :  { %3999 = vmatpush.msrb.mxu2 %v3973_v5  ;;  %v4205_v5 = vld [vmem:[#allocation8 + $0xbc8] sm:$0xff] }
 0xbeb   :  { %4041 = vmatpush.msrb.mxu1 %v3969_v46  ;;  %4092 = vmatpush.msrb.mxu0 %v4058_v6  ;;  %v4288_v46 = vld [vmem:[#allocation10 + $0xb88] sm:$0xff]  ;;  %v4191_v6 = vld [vmem:[#allocation8 + $0xb58] sm:$0xff] }
 0xbec   :  { %4000 = vmatpush.msrb.mxu2 %v3970_v4  ;;  %v4188_v4 = vld [vmem:[#allocation8 + $0xb40] sm:$0xff] }
 0xbed   :  { %4042 = vmatpush.msrb.mxu1 %v3966_v23  ;;  %4093 = vmatpush.msrb.mxu0 %v4055_v62  ;;  %v4192_v23 = vld [vmem:[#allocation8 + $0xb60] sm:$0xff] }
 0xbef   :  { %4043 = vmatpush.msrb.mxu1 %v3963_v34  ;;  %4094 = vmatpush.msrb.mxu0 %v4052_v7  ;;  %v4202_v7 = vld [vmem:[#allocation8 + $0xbb0] sm:$0xff] }
 0xbf1   :  { %4159 = vmatpush.msra.mxu1 %v5690_v63  ;;  %4179 = vmatpush.msra.mxu0 %v5712_v9  ;;  %v3967_v9 = vld [vmem:[#allocation8 + $0xab0] sm:$0xff] }
 0xbf2   :  { %4001 = vmatpush.msrb.mxu2 %v3967_v9  ;;  %v4282_v9 = vld [vmem:[#allocation10 + $0xb58] sm:$0xff] }
 0xbf3   :  { %4160 = vmatpush.msra.mxu1 %v5692_v1  ;;  %4180 = vmatpush.msra.mxu0 %v5714_v10  ;;  %v3968_v1 = vld [vmem:[#allocation8 + $0xab8] sm:$0xff]  ;;  %v3961_v10 = vld [vmem:[#allocation8 + $0xa80] sm:$0xff] }
 0xbf4   :  { %4021 = vmatpush.msrb.mxu3 %v3968_v1  ;;  %4002 = vmatpush.msrb.mxu2 %v3964_v13  ;;  %v4301_v1 = vld [vmem:[#allocation10 + $0xbf0] sm:$0xff]  ;;  %v4302_v13 = vld [vmem:[#allocation10 + $0xbf8] sm:$0xff] }
 0xbf5   :  { %4161 = vmatpush.msra.mxu1 %v5697_v2  ;;  %4181 = vmatpush.msra.mxu0 %v5717_v11  ;;  %v3965_v2 = vld [vmem:[#allocation8 + $0xaa0] sm:$0xff]  ;;  %v4074_v11 = vld [vmem:[#allocation10 + $0xb30] sm:$0xff] }
 0xbf6   :  { %4022 = vmatpush.msrb.mxu3 %v3965_v2  ;;  %4003 = vmatpush.msrb.mxu2 %v3961_v10  ;;  %v4196_v2 = vld [vmem:[#allocation8 + $0xb80] sm:$0xff] }
 0xbf7   :  { %4162 = vmatpush.msra.mxu1 %v5702_v3  ;;  %4182 = vmatpush.msra.mxu0 %v5720_v12  ;;  %v3962_v3 = vld [vmem:[#allocation8 + $0xa88] sm:$0xff]  ;;  %v4075_v12 = vld [vmem:[#allocation10 + $0xb38] sm:$0xff]  ;;  %v4279_v10 = vld [vmem:[#allocation10 + $0xb40] sm:$0xff] }
 0xbf8   :  { %4023 = vmatpush.msrb.mxu3 %v3962_v3  ;;  %4107 = vmatpush.msra.mxu2 %v4074_v11  ;;  %v4298_v3 = vld [vmem:[#allocation10 + $0xbd8] sm:$0xff]  ;;  %v4299_v11 = vld [vmem:[#allocation10 + $0xbe0] sm:$0xff] }
 0xbfa   :  { %4127 = vmatpush.msra.mxu3 %v4075_v12  ;;  %4108 = vmatpush.msra.mxu2 %v4071_v20  ;;  %v4193_v20 = vld [vmem:[#allocation8 + $0xb68] sm:$0xff] }
 0xbfc   :  { %4128 = vmatpush.msra.mxu3 %v4072_v24  ;;  %4109 = vmatpush.msra.mxu2 %v4068_v27  ;;  %v4295_v24 = vld [vmem:[#allocation10 + $0xbc0] sm:$0xff]  ;;  %v4190_v27 = vld [vmem:[#allocation8 + $0xb50] sm:$0xff] }
 0xbfe   :  { %4129 = vmatpush.msra.mxu3 %v4069_v60  ;;  %4110 = vmatpush.msra.mxu2 %v4065_v43  ;;  %v4292_v60 = vld [vmem:[#allocation10 + $0xba8] sm:$0xff]  ;;  %v4293_v43 = vld [vmem:[#allocation10 + $0xbb0] sm:$0xff] }
 0xc00   :  { %4130 = vmatpush.msra.mxu3 %v4066_v50  ;;  %4111 = vmatpush.msra.mxu2 %v4062_v30  ;;  %v4289_v50 = vld [vmem:[#allocation10 + $0xb90] sm:$0xff]  ;;  %v4290_v30 = vld [vmem:[#allocation10 + $0xb98] sm:$0xff] }
 0xc02   :  { %4131 = vmatpush.msra.mxu3 %v4063_v26  ;;  %4112 = vmatpush.msra.mxu2 %v4059_v47  ;;  %v4286_v26 = vld [vmem:[#allocation10 + $0xb78] sm:$0xff]  ;;  %v4287_v47 = vld [vmem:[#allocation10 + $0xb80] sm:$0xff] }
 0xc04   :  { %4132 = vmatpush.msra.mxu3 %v4060_v57  ;;  %4113 = vmatpush.msra.mxu2 %v4056_v19  ;;  %v4283_v57 = vld [vmem:[#allocation10 + $0xb60] sm:$0xff]  ;;  %v4280_v19 = vld [vmem:[#allocation10 + $0xb48] sm:$0xff] }
 0xc06   :  { %4133 = vmatpush.msra.mxu3 %v4057_v59  ;;  %4114 = vmatpush.msra.mxu2 %v4053_v45  ;;  %v4281_v59 = vld [vmem:[#allocation10 + $0xb50] sm:$0xff] }
 0xc07   :  { %v4413_v45 = vld [vmem:[#allocation13 + $0xf0] sm:$0xff] }
 0xc08   :  { %4134 = vmatpush.msra.mxu3 %v4054_v40  ;;  %v4411_v40 = vld [vmem:[#allocation13 + $0xe0] sm:$0xff] }
 0xc2f   :  { %v6197_v63 = vpop.f32.mrf.mxu3 }
 0xc37   :  { %v6199_v54 = vpop.f32.mrf.mxu3 }
 0xc38   :  { %4917 = vmatmul.msk.f32.vlgmr.msrb.gmra.mxu0 %vm232_vm0, %v6199_v54 }
 0xc39   :  { %4243 = vmatpush.msrb.mxu0 %v4210_v42  ;;  %v4409_v42 = vld [vmem:[#allocation13 + $0xd0] sm:$0xff] }
 0xc3b   :  { %4244 = vmatpush.msrb.mxu0 %v4207_v41  ;;  %v4445_v41 = vld [vmem:[#allocation13 + $0x1f0] sm:$0xff] }
 0xc3d   :  { %4245 = vmatpush.msrb.mxu0 %v4204_v21  ;;  %v4443_v21 = vld [vmem:[#allocation13 + $0x1e0] sm:$0xff] }
 0xc3f   :  { %4246 = vmatpush.msrb.mxu0 %v4201_v14  ;;  %v4441_v14 = vld [vmem:[#allocation13 + $0x1d0] sm:$0xff] }
 0xc40   :  { %4922 = vmatmul.msk.f32.vlgmr.msra.gmra.mxu0 %vm322_vm2, %v4920_v28 }
 0xc41   :  { %4247 = vmatpush.msrb.mxu0 %v4198_v36  ;;  %v4439_v36 = vld [vmem:[#allocation13 + $0x1c0] sm:$0xff] }
 0xc43   :  { %4248 = vmatpush.msrb.mxu0 %v4195_v0  ;;  %v4425_v0 = vld [vmem:[#allocation13 + $0x150] sm:$0xff] }
 0xc45   :  { %4249 = vmatpush.msrb.mxu0 %v4192_v23  ;;  %v4423_v23 = vld [vmem:[#allocation13 + $0x140] sm:$0xff] }
 0xc47   :  { %4250 = vmatpush.msrb.mxu0 %v4189_v8  ;;  %v4410_v8 = vld [vmem:[#allocation13 + $0xd8] sm:$0xff] }
 0xc49   :  { %4354 = vmatpush.msra.mxu0 %v4302_v13  ;;  %v4467_v13 = vld [vmem:[#allocation13 + $0x2a0] sm:$0xff] }
 0xc4b   :  { %4355 = vmatpush.msra.mxu0 %v4299_v11  ;;  %v4417_v11 = vld [vmem:[#allocation13 + $0x110] sm:$0xff] }
 0xc5c   :  { %v3778_v49 = vpop.f32.mrf.mxu1  ;;  %v3798_v18 = vpop.f32.mrf.mxu0 }
 0xc5d   :  { %v3821_v44 = vadd.f32 %v3778_v49, %v6179_v33  ;;  %v6209_v51 = vadd.f32 %v3798_v18, %v3686_v29  ;;  %v4297_v33 = vld [vmem:[#allocation10 + $0xbd0] sm:$0xff]  ;;  %v4403_v18 = vld [vmem:[#allocation13 + $0xa0] sm:$0xff] }
 0xc5e   :  { %v4405_v29 = vld [vmem:[#allocation13 + $0xb0] sm:$0xff] }
 0xc5f   :  { %v6212_v17 = vadd.f32 %v6197_v63, %v3821_v44  ;;  %v4199_v63 = vld [vmem:[#allocation8 + $0xb98] sm:$0xff] }
 0xc60   :  { %v4437_v44 = vld [vmem:[#allocation13 + $0x1b0] sm:$0xff] }
 0xc63   :  { %v3818_v53 = vpop.f32.mrf.mxu2 }
 0xc64   :  { %v6216_v16 = vadd.f32 %v3818_v53, %v3687_v31  ;;  %v6234_v49 = vpop.f32.mrf.mxu1  ;;  %v4401_v31 = vld [vmem:[#allocation13 + $0x90] sm:$0xff]  ;;  %v4435_v53 = vld [vmem:[#allocation13 + $0x1a0] sm:$0xff] }
 0xc65   :  { %v6226_v62 = vpop.f32.mrf.mxu0 }
 0xc6b   :  { %v3937_v15 = vpop.f32.mrf.mxu2 }
 0xc6c   :  { %4914 = vmatmul.msk.f32.vlgmr.msrb.gmra.mxu2 %vm232_vm0, %v3937_v15  ;;  %4915 = vmatmul.msk.f32.vlgmr.msrb.gmra.mxu3 %vm232_vm0, %v3937_v15 }
 0xc6d   :  { %4916 = vmatmul.msk.f32.vlgmr.msrb.gmra.mxu1 %vm232_vm0, %v3937_v15  ;;  %4314 = vmatpush.msrb.mxu3 %v4300_v52  ;;  %v4399_v52 = vld [vmem:[#allocation13 + $0x80] sm:$0xff]  ;;  %v4433_v15 = vld [vmem:[#allocation13 + $0x190] sm:$0xff] }
 0xc6e   :  { %4223 = vmatpush.msrb.mxu1 %v4209_v37  ;;  %4263 = vmatpush.msrb.mxu2 %v4211_v58  ;;  %v3914_v37 = vadd.f32 %v6226_v62, %v6216_v16  ;;  %v4397_v58 = vld [vmem:[#allocation13 + $0x70] sm:$0xff] }
 0xc6f   :  { %4315 = vmatpush.msrb.mxu3 %v4297_v33  ;;  %v4431_v33 = vld [vmem:[#allocation13 + $0x180] sm:$0xff] }
 0xc70   :  { %4224 = vmatpush.msrb.mxu1 %v4206_v22  ;;  %4264 = vmatpush.msrb.mxu2 %v4208_v38  ;;  %v4427_v38 = vld [vmem:[#allocation13 + $0x160] sm:$0xff] }
 0xc71   :  { %4316 = vmatpush.msrb.mxu3 %v4294_v56 }
 0xc72   :  { %4225 = vmatpush.msrb.mxu1 %v4203_v35  ;;  %4265 = vmatpush.msrb.mxu2 %v4205_v5  ;;  %v4395_v35 = vld [vmem:[#allocation13 + $0x60] sm:$0xff]  ;;  %v4414_v5 = vld [vmem:[#allocation13 + $0xf8] sm:$0xff] }
 0xc73   :  { %4317 = vmatpush.msrb.mxu3 %v4291_v39 }
 0xc74   :  { %4918 = vmatmul.msk.f32.vlgmr.msra.gmra.mxu2 %vm232_vm0, %v6199_v54  ;;  %4919 = vmatmul.msk.f32.vlgmr.msra.gmra.mxu3 %vm232_vm0, %v6199_v54  ;;  %v4296_v54 = vld [vmem:[#allocation10 + $0xbc8] sm:$0xff] }
 0xc75   :  { %4921 = vmatmul.msk.f32.vlgmr.msra.gmra.mxu1 %vm322_vm2, %v4920_v28  ;;  %4318 = vmatpush.msrb.mxu3 %v4288_v46  ;;  %v4284_v28 = vld [vmem:[#allocation10 + $0xb68] sm:$0xff] }
 0xc76   :  { %4226 = vmatpush.msrb.mxu1 %v4200_v25  ;;  %4266 = vmatpush.msrb.mxu2 %v4202_v7  ;;  %v4429_v25 = vld [vmem:[#allocation13 + $0x170] sm:$0xff]  ;;  %v4412_v7 = vld [vmem:[#allocation13 + $0xe8] sm:$0xff] }
 0xc77   :  { %4319 = vmatpush.msrb.mxu3 %v4285_v55  ;;  %4356 = vmatpush.msra.mxu0 %v4296_v54  ;;  %v4471_v55 = vld [vmem:[#allocation13 + $0x2c0] sm:$0xff]  ;;  %v4444_v54 = vld [vmem:[#allocation13 + $0x1e8] sm:$0xff] }
 0xc78   :  { %4227 = vmatpush.msrb.mxu1 %v4197_v48  ;;  %4267 = vmatpush.msrb.mxu2 %v4199_v63  ;;  %v4393_v48 = vld [vmem:[#allocation13 + $0x50] sm:$0xff] }
 0xc79   :  { %4320 = vmatpush.msrb.mxu3 %v4282_v9  ;;  %4357 = vmatpush.msra.mxu0 %v4293_v43  ;;  %v4469_v63 = vld [vmem:[#allocation13 + $0x2b0] sm:$0xff]  ;;  %v4463_v43 = vld [vmem:[#allocation13 + $0x280] sm:$0xff] }
 0xc7a   :  { %4228 = vmatpush.msrb.mxu1 %v4194_v61  ;;  %4268 = vmatpush.msrb.mxu2 %v4196_v2  ;;  %v4391_v61 = vld [vmem:[#allocation13 + $0x40] sm:$0xff]  ;;  %v4385_v9 = vld [vmem:[#allocation13 + $0x10] sm:$0xff] }
 0xc7b   :  { %4321 = vmatpush.msrb.mxu3 %v4279_v10  ;;  %4358 = vmatpush.msra.mxu0 %v4290_v30  ;;  %v4383_v2 = vld [vmem:[#allocation13] sm:$0xff]  ;;  %v4406_v10 = vld [vmem:[#allocation13 + $0xb8] sm:$0xff]  ;;  %v4472_v30 = vld [vmem:[#allocation13 + $0x2c8] sm:$0xff] }
 0xc7c   :  { %4229 = vmatpush.msrb.mxu1 %v4191_v6  ;;  %4269 = vmatpush.msrb.mxu2 %v4193_v20  ;;  %v4389_v6 = vld [vmem:[#allocation13 + $0x30] sm:$0xff]  ;;  %v4404_v20 = vld [vmem:[#allocation13 + $0xa8] sm:$0xff] }
 0xc7d   :  { %4359 = vmatpush.msra.mxu0 %v4287_v47  ;;  %4503 = vmatpush.msra.mxu3 %v4445_v41  ;;  %v4440_v47 = vld [vmem:[#allocation13 + $0x1c8] sm:$0xff] }
 0xc7e   :  { %4230 = vmatpush.msrb.mxu1 %v4188_v4  ;;  %4270 = vmatpush.msrb.mxu2 %v4190_v27  ;;  %v4421_v4 = vld [vmem:[#allocation13 + $0x130] sm:$0xff]  ;;  %v4415_v27 = vld [vmem:[#allocation13 + $0x100] sm:$0xff]  ;;  %v4432_v41 = vld [vmem:[#allocation13 + $0x188] sm:$0xff] }
 0xc7f   :  { %4360 = vmatpush.msra.mxu0 %v4284_v28  ;;  %4504 = vmatpush.msra.mxu3 %v4443_v21  ;;  %v4396_v28 = vld [vmem:[#allocation13 + $0x68] sm:$0xff]  ;;  %v4470_v21 = vld [vmem:[#allocation13 + $0x2b8] sm:$0xff] }
 0xc80   :  { %4334 = vmatpush.msra.mxu1 %v4301_v1  ;;  %4483 = vmatpush.msra.mxu2 %v4413_v45  ;;  %v4408_v1 = vld [vmem:[#allocation13 + $0xc8] sm:$0xff]  ;;  %v4434_v45 = vld [vmem:[#allocation13 + $0x198] sm:$0xff] }
 0xc81   :  { %4361 = vmatpush.msra.mxu0 %v4281_v59  ;;  %4505 = vmatpush.msra.mxu3 %v4441_v14  ;;  %v4394_v59 = vld [vmem:[#allocation13 + $0x58] sm:$0xff] }
 0xc82   :  { %4335 = vmatpush.msra.mxu1 %v4298_v3  ;;  %4484 = vmatpush.msra.mxu2 %v4411_v40  ;;  %v4446_v3 = vld [vmem:[#allocation13 + $0x1f8] sm:$0xff]  ;;  %v4461_v40 = vld [vmem:[#allocation13 + $0x270] sm:$0xff] }
 0xc83   :  { %4506 = vmatpush.msra.mxu3 %v4439_v36  ;;  %v4390_v14 = vld [vmem:[#allocation13 + $0x38] sm:$0xff]  ;;  %v4468_v36 = vld [vmem:[#allocation13 + $0x2a8] sm:$0xff] }
 0xc84   :  { %4336 = vmatpush.msra.mxu1 %v4295_v24  ;;  %4485 = vmatpush.msra.mxu2 %v4409_v42  ;;  %v4465_v24 = vld [vmem:[#allocation13 + $0x290] sm:$0xff]  ;;  %v4392_v42 = vld [vmem:[#allocation13 + $0x48] sm:$0xff] }
 0xc85   :  { %4507 = vmatpush.msra.mxu3 %v4437_v44  ;;  %v4388_v44 = vld [vmem:[#allocation13 + $0x28] sm:$0xff] }
 0xc86   :  { %4337 = vmatpush.msra.mxu1 %v4292_v60  ;;  %4486 = vmatpush.msra.mxu2 %v4407_v32  ;;  %v4402_v60 = vld [vmem:[#allocation13 + $0x98] sm:$0xff]  ;;  %v4459_v32 = vld [vmem:[#allocation13 + $0x260] sm:$0xff] }
 0xc87   :  { %4508 = vmatpush.msra.mxu3 %v4435_v53  ;;  %v4466_v53 = vld [vmem:[#allocation13 + $0x298] sm:$0xff] }
 0xc88   :  { %4338 = vmatpush.msra.mxu1 %v4289_v50  ;;  %4487 = vmatpush.msra.mxu2 %v4405_v29  ;;  %v4442_v50 = vld [vmem:[#allocation13 + $0x1d8] sm:$0xff] }
 0xc89   :  { %4509 = vmatpush.msra.mxu3 %v4433_v15  ;;  %v4430_v29 = vld [vmem:[#allocation13 + $0x178] sm:$0xff] }
 0xc8a   :  { %4339 = vmatpush.msra.mxu1 %v4286_v26  ;;  %4488 = vmatpush.msra.mxu2 %v4403_v18  ;;  %v4400_v26 = vld [vmem:[#allocation13 + $0x88] sm:$0xff]  ;;  %v4457_v18 = vld [vmem:[#allocation13 + $0x250] sm:$0xff]  ;;  %v4386_v15 = vld [vmem:[#allocation13 + $0x18] sm:$0xff] }
 0xc8b   :  { %4510 = vmatpush.msra.mxu3 %v4431_v33  ;;  %v4453_v33 = vld [vmem:[#allocation13 + $0x230] sm:$0xff] }
 0xc8c   :  { %4340 = vmatpush.msra.mxu1 %v4283_v57  ;;  %4489 = vmatpush.msra.mxu2 %v4401_v31  ;;  %v4438_v57 = vld [vmem:[#allocation13 + $0x1b8] sm:$0xff]  ;;  %v4428_v31 = vld [vmem:[#allocation13 + $0x168] sm:$0xff] }
 0xc8d   :  { %4511 = vmatpush.msra.mxu3 %v4429_v25  ;;  %v4462_v25 = vld [vmem:[#allocation13 + $0x278] sm:$0xff] }
 0xc8e   :  { %4341 = vmatpush.msra.mxu1 %v4280_v19  ;;  %4490 = vmatpush.msra.mxu2 %v4399_v52  ;;  %v4436_v19 = vld [vmem:[#allocation13 + $0x1a8] sm:$0xff]  ;;  %v4455_v52 = vld [vmem:[#allocation13 + $0x240] sm:$0xff] }
 0xc8f   :  { %4512 = vmatpush.msra.mxu3 %v4427_v38  ;;  %v4422_v38 = vld [vmem:[#allocation13 + $0x138] sm:$0xff] }
 0xc90   :  { %4491 = vmatpush.msra.mxu2 %v4397_v58  ;;  %v4464_v58 = vld [vmem:[#allocation13 + $0x288] sm:$0xff] }
 0xc91   :  { %4513 = vmatpush.msra.mxu3 %v4425_v0  ;;  %v4420_v0 = vld [vmem:[#allocation13 + $0x128] sm:$0xff] }
 0xc92   :  { %4492 = vmatpush.msra.mxu2 %v4395_v35  ;;  %v4424_v35 = vld [vmem:[#allocation13 + $0x148] sm:$0xff] }
 0xc93   :  { %4514 = vmatpush.msra.mxu3 %v4423_v23  ;;  %v4456_v23 = vld [vmem:[#allocation13 + $0x248] sm:$0xff] }
 0xc94   :  { %4493 = vmatpush.msra.mxu2 %v4393_v48  ;;  %v4451_v48 = vld [vmem:[#allocation13 + $0x220] sm:$0xff] }
 0xc95   :  { %4515 = vmatpush.msra.mxu3 %v4421_v4  ;;  %v4450_v4 = vld [vmem:[#allocation13 + $0x218] sm:$0xff] }
 0xc96   :  { %4494 = vmatpush.msra.mxu2 %v4391_v61  ;;  %v4449_v61 = vld [vmem:[#allocation13 + $0x210] sm:$0xff] }
 0xc98   :  { %4495 = vmatpush.msra.mxu2 %v4389_v6  ;;  %v4418_v6 = vld [vmem:[#allocation13 + $0x118] sm:$0xff] }
 0xcb5   :  { %v6228_v34 = vpop.f32.mrf.mxu0 }
 0xcbd   :  { %v6230_v12 = vpop.f32.mrf.mxu0 }
 0xcbe   :  { %4926 = vmatmul.msk.f32.vlgmr.msrb.gmra.mxu3 %vm232_vm0, %v6230_v12 }
 0xcea   :  { %v4045_v22 = vpop.f32.mrf.mxu1 }
 0xceb   :  { %v6238_v56 = vadd.f32 %v4045_v22, %v3914_v37  ;;  %v4426_v37 = vld [vmem:[#allocation13 + $0x158] sm:$0xff]  ;;  %v4384_v22 = vld [vmem:[#allocation13 + $0x8] sm:$0xff] }
 0xcef   :  { %v4005_v39 = vpop.f32.mrf.mxu2 }
 0xcf0   :  { %v4048_v16 = vadd.f32 %v4005_v39, %v6212_v17  ;;  %v4387_v17 = vld [vmem:[#allocation13 + $0x20] sm:$0xff]  ;;  %v4460_v39 = vld [vmem:[#allocation13 + $0x268] sm:$0xff] }
 0xcf1   :  { %4496 = vmatpush.msra.mxu2 %v4387_v17  ;;  %v4452_v17 = vld [vmem:[#allocation13 + $0x228] sm:$0xff] }
 0xcf2   :  { %v4164_v46 = vpop.f32.mrf.mxu1  ;;  %v6242_v62 = vadd.f32 %v6228_v34, %v4048_v16  ;;  %v4419_v34 = vld [vmem:[#allocation13 + $0x120] sm:$0xff]  ;;  %v4458_v16 = vld [vmem:[#allocation13 + $0x258] sm:$0xff] }
 0xcf3   :  { %4923 = vmatmul.msk.f32.vlgmr.msrb.gmra.mxu1 %vm232_vm0, %v4164_v46  ;;  %4924 = vmatmul.msk.f32.vlgmr.msrb.gmra.mxu0 %vm232_vm0, %v4164_v46 }
 0xcf4   :  { %4925 = vmatmul.msk.f32.vlgmr.msrb.gmra.mxu2 %vm232_vm0, %v4164_v46  ;;  %4543 = vmatpush.msrb.mxu0 %v4414_v5  ;;  %v4025_v5 = vpop.f32.mrf.mxu3  ;;  %v4447_v46 = vld [vmem:[#allocation13 + $0x200] sm:$0xff] }
 0xcf5   :  { %4526 = vmatpush.msrb.mxu1 %v4471_v55  ;;  %4497 = vmatpush.msra.mxu2 %v4385_v9  ;;  %v4454_v55 = vld [vmem:[#allocation13 + $0x238] sm:$0xff]  ;;  %v4620_v9 = vld [vmem:[#allocation16 + $0x78] sm:$0xff] }
 0xcf6   :  { %4544 = vmatpush.msrb.mxu0 %v4412_v7  ;;  %4516 = vmatpush.msra.mxu3 %v4419_v34  ;;  %v4416_v7 = vld [vmem:[#allocation13 + $0x108] sm:$0xff] }
 0xcf7   :  { %4527 = vmatpush.msrb.mxu1 %v4469_v63  ;;  %4498 = vmatpush.msra.mxu2 %v4383_v2  ;;  %v4619_v34 = vld [vmem:[#allocation16 + $0x70] sm:$0xff] }
 0xcf8   :  { %4545 = vmatpush.msrb.mxu0 %v4410_v8  ;;  %4517 = vmatpush.msra.mxu3 %v4417_v11  ;;  %v4448_v8 = vld [vmem:[#allocation13 + $0x208] sm:$0xff] }
 0xcf9   :  { %4528 = vmatpush.msrb.mxu1 %v4467_v13  ;;  %4563 = vmatpush.msrb.mxu2 %v4446_v3  ;;  %v4618_v13 = vld [vmem:[#allocation16 + $0x68] sm:$0xff]  ;;  %v4635_v2 = vld [vmem:[#allocation16 + $0xf0] sm:$0xff]  ;;  %v4617_v3 = vld [vmem:[#allocation16 + $0x60] sm:$0xff] }
 0xcfa   :  { %4546 = vmatpush.msrb.mxu0 %v4408_v1  ;;  %4518 = vmatpush.msra.mxu3 %v4415_v27  ;;  %v4636_v1 = vld [vmem:[#allocation16 + $0xf8] sm:$0xff]  ;;  %v4615_v27 = vld [vmem:[#allocation16 + $0x50] sm:$0xff] }
 0xcfb   :  { %4927 = vmatmul.msk.f32.vlgmr.msra.gmra.mxu1 %vm232_vm0, %v6230_v12  ;;  %4928 = vmatmul.msk.f32.vlgmr.msra.gmra.mxu0 %vm232_vm0, %v6230_v12  ;;  %v4398_v12 = vld [vmem:[#allocation13 + $0x78] sm:$0xff]  ;;  %v4616_v11 = vld [vmem:[#allocation16 + $0x58] sm:$0xff] }
 0xcfc   :  { %4547 = vmatpush.msrb.mxu0 %v4406_v10  ;;  %4529 = vmatpush.msrb.mxu1 %v4465_v24  ;;  %v4136_v63 = vpop.f32.mrf.mxu3  ;;  %v4634_v10 = vld [vmem:[#allocation16 + $0xe8] sm:$0xff]  ;;  %v4116_v24 = vpop.f32.mrf.mxu2 }
 0xcfd   :  { %4564 = vmatpush.msrb.mxu2 %v4444_v54  ;;  %4586 = vmatpush.msrb.mxu3 %v4472_v30 }
 0xcfe   :  { %4548 = vmatpush.msrb.mxu0 %v4404_v20  ;;  %4530 = vmatpush.msrb.mxu1 %v4463_v43  ;;  %v4369_v20 = vld [vmem:[#allocation11] sm:$0x7] }
 0xcff   :  { %4565 = vmatpush.msrb.mxu2 %v4442_v50  ;;  %4587 = vmatpush.msrb.mxu3 %v4470_v21  ;;  %v3913_v50 = vadd.f32 %v6234_v49, %v6209_v51 }
 0xd00   :  { %4549 = vmatpush.msrb.mxu0 %v4402_v60  ;;  %4531 = vmatpush.msrb.mxu1 %v4461_v40 }
 0xd01   :  { %4566 = vmatpush.msrb.mxu2 %v4440_v47  ;;  %4588 = vmatpush.msrb.mxu3 %v4468_v36  ;;  %v4049_v47 = vadd.f32 %v4025_v5, %v3913_v50  ;;  %v4605_v5 = vld [vmem:[#allocation16] sm:$0xff] }
 0xd02   :  { %4550 = vmatpush.msrb.mxu0 %v4400_v26  ;;  %4532 = vmatpush.msrb.mxu1 %v4459_v32  ;;  %v4371_v26 = vperm.slane %v4369_v20, 0 }
 0xd03   :  { %4567 = vmatpush.msrb.mxu2 %v4438_v57  ;;  %4589 = vmatpush.msrb.mxu3 %v4466_v53  ;;  %v4140_v57 = vadd.f32 %v4116_v24, %v4049_v47  ;;  %v4632_v53 = vld [vmem:[#allocation16 + $0xd8] sm:$0xff] }
 0xd04   :  { %4551 = vmatpush.msrb.mxu0 %v4398_v12  ;;  %4533 = vmatpush.msrb.mxu1 %v4457_v18 }
 0xd05   :  { %4568 = vmatpush.msrb.mxu2 %v4436_v19  ;;  %4590 = vmatpush.msrb.mxu3 %v4464_v58  ;;  %v4141_v19 = vadd.f32 %v4136_v63, %v6238_v56  ;;  %v4614_v56 = vld [vmem:[#allocation16 + $0x48] sm:$0xff]  ;;  %v4693_v63 = vld [vmem:[%s6322_s16 + $0x58] sm:$0xff] }
 0xd06   :  { %4552 = vmatpush.msrb.mxu0 %v4396_v28  ;;  %4534 = vmatpush.msrb.mxu1 %v4455_v52  ;;  %v4612_v52 = vld [vmem:[#allocation16 + $0x38] sm:$0xff]  ;;  %v4630_v58 = vld [vmem:[#allocation16 + $0xc8] sm:$0xff] }
 0xd07   :  { %4569 = vmatpush.msrb.mxu2 %v4434_v45  ;;  %4591 = vmatpush.msrb.mxu3 %v4462_v25  ;;  %v4628_v25 = vld [vmem:[#allocation16 + $0xb8] sm:$0xff] }
 0xd08   :  { %4553 = vmatpush.msrb.mxu0 %v4394_v59  ;;  %4535 = vmatpush.msrb.mxu1 %v4453_v33  ;;  %v4610_v33 = vld [vmem:[#allocation16 + $0x28] sm:$0xff] }
 0xd09   :  { %4570 = vmatpush.msrb.mxu2 %v4432_v41  ;;  %4592 = vmatpush.msrb.mxu3 %v4460_v39  ;;  %v4607_v39 = vld [vmem:[#allocation16 + $0x10] sm:$0xff] }
 0xd0a   :  { %4554 = vmatpush.msrb.mxu0 %v4392_v42  ;;  %4536 = vmatpush.msrb.mxu1 %v4451_v48  ;;  %v4372_v42 = vperm.slane %v4369_v20, 1  ;;  %v4608_v48 = vld [vmem:[#allocation16 + $0x18] sm:$0xff] }
 0xd0b   :  { %4571 = vmatpush.msrb.mxu2 %v4430_v29  ;;  %4593 = vmatpush.msrb.mxu3 %v4458_v16  ;;  %v4625_v16 = vld [vmem:[#allocation16 + $0xa0] sm:$0xff] }
 0xd0c   :  { %4555 = vmatpush.msrb.mxu0 %v4390_v14  ;;  %4537 = vmatpush.msrb.mxu1 %v4449_v61  ;;  %v4373_v14 = vperm.slane %v4369_v20, 2  ;;  %v4626_v61 = vld [vmem:[#allocation16 + $0xa8] sm:$0xff] }
 0xd0d   :  { %4572 = vmatpush.msrb.mxu2 %v4428_v31  ;;  %4594 = vmatpush.msrb.mxu3 %v4456_v23  ;;  %v4613_v31 = vld [vmem:[#allocation16 + $0x40] sm:$0xff]  ;;  %v4622_v23 = vld [vmem:[#allocation16 + $0x88] sm:$0xff] }
 0xd0e   :  { %4556 = vmatpush.msrb.mxu0 %v4388_v44  ;;  %4538 = vmatpush.msrb.mxu1 %v4447_v46  ;;  %v4633_v44 = vld [vmem:[#allocation16 + $0xe0] sm:$0xff]  ;;  %v4624_v46 = vld [vmem:[#allocation16 + $0x98] sm:$0xff] }
 0xd0f   :  { %4573 = vmatpush.msrb.mxu2 %v4426_v37  ;;  %4595 = vmatpush.msrb.mxu3 %v4454_v55  ;;  %v4611_v37 = vld [vmem:[#allocation16 + $0x30] sm:$0xff] }
 0xd10   :  { %4557 = vmatpush.msrb.mxu0 %v4386_v15  ;;  %4641 = vmatpush.msra.mxu1 %v4620_v9  ;;  %v4631_v15 = vld [vmem:[#allocation16 + $0xd0] sm:$0xff] }
 0xd11   :  { %4574 = vmatpush.msrb.mxu2 %v4424_v35  ;;  %4596 = vmatpush.msrb.mxu3 %v4452_v17  ;;  %v4609_v35 = vld [vmem:[#allocation16 + $0x20] sm:$0xff]  ;;  %v4697_v55 = vld [vmem:[%s6322_s16 + $0x78] sm:$0xff]  ;;  %v4696_v17 = vld [vmem:[%s6322_s16 + $0x70] sm:$0xff] }
 0xd12   :  { %4558 = vmatpush.msrb.mxu0 %v4384_v22  ;;  %4642 = vmatpush.msra.mxu1 %v4619_v34  ;;  %v4629_v22 = vld [vmem:[#allocation16 + $0xc0] sm:$0xff]  ;;  %v4692_v9 = vld [vmem:[%s6322_s16 + $0x50] sm:$0xff] }
 0xd13   :  { %4575 = vmatpush.msrb.mxu2 %v4422_v38  ;;  %4597 = vmatpush.msrb.mxu3 %v4450_v4  ;;  %v4627_v38 = vld [vmem:[#allocation16 + $0xb0] sm:$0xff]  ;;  %v4695_v4 = vld [vmem:[%s6322_s16 + $0x68] sm:$0xff] }
 0xd14   :  { %4661 = vmatpush.msra.mxu0 %v4636_v1  ;;  %4643 = vmatpush.msra.mxu1 %v4618_v13  ;;  %v4691_v34 = vld [vmem:[%s6322_s16 + $0x48] sm:$0xff]  ;;  %v4690_v1 = vld [vmem:[%s6322_s16 + $0x40] sm:$0xff] }
 0xd15   :  { %4576 = vmatpush.msrb.mxu2 %v4420_v0  ;;  %4598 = vmatpush.msrb.mxu3 %v4448_v8  ;;  %v4606_v0 = vld [vmem:[#allocation16 + $0x8] sm:$0xff]  ;;  %v4694_v8 = vld [vmem:[%s6322_s16 + $0x60] sm:$0xff] }
 0xd16   :  { %4662 = vmatpush.msra.mxu0 %v4635_v2  ;;  %4644 = vmatpush.msra.mxu1 %v4617_v3  ;;  %v4473_v13 = vld [vmem:[#allocation14] sm:$0x3]  ;;  %v4689_v3 = vld [vmem:[%s6322_s16 + $0x38] sm:$0xff] }
 0xd17   :  { %4577 = vmatpush.msrb.mxu2 %v4418_v6  ;;  %v4623_v6 = vld [vmem:[#allocation16 + $0x90] sm:$0xff] }
 0xd18   :  { %4663 = vmatpush.msra.mxu0 %v4634_v10  ;;  %4645 = vmatpush.msra.mxu1 %v4616_v11  ;;  %v4475_v10 = vperm.slane %v4473_v13, 0  ;;  %v4688_v11 = vld [vmem:[%s6322_s16 + $0x30] sm:$0xff] }
 0xd19   :  { %4578 = vmatpush.msrb.mxu2 %v4416_v7  ;;  %v4621_v7 = vld [vmem:[#allocation16 + $0x80] sm:$0xff] }
 0xd1a   :  { %4646 = vmatpush.msra.mxu1 %v4615_v27  ;;  %4664 = vmatpush.msra.mxu0 %v4633_v44 }
 0xd1c   :  { %4647 = vmatpush.msra.mxu1 %v4614_v56  ;;  %4665 = vmatpush.msra.mxu0 %v4632_v53 }
 0xd1e   :  { %4648 = vmatpush.msra.mxu1 %v4613_v31  ;;  %4666 = vmatpush.msra.mxu0 %v4631_v15 }
 0xd20   :  { %4649 = vmatpush.msra.mxu1 %v4612_v52  ;;  %4667 = vmatpush.msra.mxu0 %v4630_v58 }
 0xd22   :  { %4650 = vmatpush.msra.mxu1 %v4611_v37  ;;  %4668 = vmatpush.msra.mxu0 %v4629_v22 }
 0xd24   :  { %4651 = vmatpush.msra.mxu1 %v4610_v33  ;;  %4669 = vmatpush.msra.mxu0 %v4628_v25 }
 0xd26   :  { %4652 = vmatpush.msra.mxu1 %v4609_v35  ;;  %4670 = vmatpush.msra.mxu0 %v4627_v38 }
 0xd28   :  { %4653 = vmatpush.msra.mxu1 %v4608_v48  ;;  %4671 = vmatpush.msra.mxu0 %v4626_v61 }
 0xd2a   :  { %4654 = vmatpush.msra.mxu1 %v4607_v39  ;;  %4672 = vmatpush.msra.mxu0 %v4625_v16 }
 0xd2c   :  { %4655 = vmatpush.msra.mxu1 %v4606_v0  ;;  %4673 = vmatpush.msra.mxu0 %v4624_v46 }
 0xd2e   :  { %4656 = vmatpush.msra.mxu1 %v4605_v5  ;;  %4674 = vmatpush.msra.mxu0 %v4623_v6 }
 0xd30   :  { %4675 = vmatpush.msra.mxu0 %v4622_v23 }
 0xd32   :  { %4676 = vmatpush.msra.mxu0 %v4621_v7 }
 0xd41   :  { %v4323_v54 = vpop.f32.mrf.mxu3 }
 0xd70   :  { %v4232_v60 = vpop.f32.mrf.mxu1  ;;  %v4252_v43 = vpop.f32.mrf.mxu0 }
 0xd71   :  { %v4275_v30 = vadd.f32 %v4232_v60, %v6242_v62  ;;  %v4276_v59 = vadd.f32 %v4252_v43, %v4140_v57 }
 0xd73   :  { %v4366_v12 = vadd.f32 %v4323_v54, %v4275_v30  ;;  %v4476_v54 = vperm.slane %v4473_v13, 1 }
 0xd75   :  { %v4377_v28 = vadd.f32 %v4371_v26, %v4366_v12 }
 0xd77   :  { %v4380_v45 = vmax.f32 %v4377_v28, 0.0  ;;  %v4272_v40 = vpop.f32.mrf.mxu2 }
 0xd78   :  { %v4277_v41 = vadd.f32 %v4272_v40, %v4141_v19  ;;  %v4343_v21 = vpop.f32.mrf.mxu1  ;;  %v4363_v32 = vpop.f32.mrf.mxu0  ;;  %v4685_v40 = vld [vmem:[%s6322_s16 + $0x18] sm:$0xff] }
 0xd79   :  { %v4367_v29 = vadd.f32 %v4343_v21, %v4276_v59  ;;  %4499 = vmatmul.f32.vlgmr.msra.gmra.mxu2 %v4380_v45  ;;  %4559 = vmatmul.f32.vlgmr.msrb.gmra.mxu0 %v4380_v45  ;;  %v4687_v59 = vld [vmem:[%s6322_s16 + $0x28] sm:$0xff]  ;;  %v4686_v45 = vld [vmem:[%s6322_s16 + $0x20] sm:$0xff] }
 0xd7a   :  { %v4368_v51 = vadd.f32 %v4363_v32, %v4277_v41  ;;  %v4683_v41 = vld [vmem:[%s6322_s16 + $0x8] sm:$0xff]  ;;  %v4682_v21 = vld [vmem:[%s6322_s16] sm:$0xff] }
 0xd7b   :  { %v4378_v49 = vadd.f32 %v4372_v42, %v4367_v29  ;;  %v4684_v42 = vld [vmem:[%s6322_s16 + $0x10] sm:$0xff]  ;;  %v4951_v32 = vld [vmem:[#allocation17] ss:$0 sm:$0xff] }
 0xd7c   :  { %v4379_v62 = vadd.f32 %v4373_v14, %v4368_v51 }
 0xd7d   :  { %v4381_v36 = vmax.f32 %v4378_v49, 0.0 }
 0xd7e   :  { %v4382_v18 = vmax.f32 %v4379_v62, 0.0 }
 0xd7f   :  { %4519 = vmatmul.f32.vlgmr.msra.gmra.mxu3 %v4381_v36 }
 0xd80   :  { %4929 = vmatmul.msk.f32.vlgmr.msrb.gmra.mxu1 %vm4479_vm3, %v4382_v18  ;;  %4702 = vmatpush.msra.mxu3 %v4697_v55 }
 0xd81   :  { %4579 = vmatmul.f32.vlgmr.msrb.gmra.mxu2 %v4381_v36  ;;  %v4952_v36 = vld [vmem:[#allocation2] ss:$0 sm:$0xff] }
 0xd82   :  { %4703 = vmatpush.msra.mxu3 %v4696_v17 }
 0xd84   :  { %4704 = vmatpush.msra.mxu3 %v4695_v4 }
 0xd86   :  { %4705 = vmatpush.msra.mxu3 %v4694_v8 }
 0xd87   :  { %4930 = vmatmul.msk.f32.vlgmr.msrb.gmra.mxu3 %vm4479_vm3, %v4382_v18 }
 0xd88   :  { %4706 = vmatpush.msra.mxu3 %v4693_v63 }
 0xd8a   :  { %4707 = vmatpush.msra.mxu3 %v4692_v9 }
 0xd8c   :  { %4708 = vmatpush.msra.mxu3 %v4691_v34 }
 0xd8e   :  { %4709 = vmatpush.msra.mxu3 %v4690_v1 }
 0xd90   :  { %4710 = vmatpush.msra.mxu3 %v4689_v3 }
 0xd92   :  { %4711 = vmatpush.msra.mxu3 %v4688_v11 }
 0xd94   :  { %4712 = vmatpush.msra.mxu3 %v4687_v59 }
 0xd96   :  { %4713 = vmatpush.msra.mxu3 %v4686_v45 }
 0xd98   :  { %4714 = vmatpush.msra.mxu3 %v4685_v40 }
 0xd9a   :  { %4715 = vmatpush.msra.mxu3 %v4684_v42 }
 0xd9c   :  { %4716 = vmatpush.msra.mxu3 %v4683_v41 }
 0xd9e   :  { %4717 = vmatpush.msra.mxu3 %v4682_v21 }
 0xdf6   :  { %v4560_v60 = vpop.f32.mrf.mxu0 }
 0xdf7   :  { %v4561_v26 = vadd.f32 %v4560_v60, %v4476_v54 }
 0xdfc   :  { %v4500_v2 = vpop.f32.mrf.mxu2 }
 0xdfd   :  { %v4501_v20 = vadd.f32 %v4500_v2, %v4475_v10  ;;  %v4540_v43 = vpop.f32.mrf.mxu1 }
 0xe02   :  { %v4520_v24 = vpop.f32.mrf.mxu3 }
 0xe03   :  { %v4521_v27 = vadd.f32 %v4520_v24, %v4501_v20 }
 0xe04   :  { %v4580_v30 = vpop.f32.mrf.mxu2 }
 0xe05   :  { %v4541_v50 = vadd.f32 %v4540_v43, %v4521_v27  ;;  %v4581_v12 = vadd.f32 %v4580_v30, %v4561_v26 }
 0xe07   :  { %v4603_v47 = vmax.f32 %v4541_v50, 0.0 }
 0xe09   :  { %4657 = vmatmul.f32.vlgmr.msra.gmra.mxu1 %v4603_v47 }
 0xe0a   :  { %v4600_v57 = vpop.f32.mrf.mxu3 }
 0xe0b   :  { %v4601_v28 = vadd.f32 %v4600_v57, %v4581_v12 }
 0xe0d   :  { %v4604_v19 = vmax.f32 %v4601_v28, 0.0 }
 0xe0f   :  { %4677 = vmatmul.f32.vlgmr.msra.gmra.mxu0 %v4604_v19 }
 0xe86   :  { %v4658_v14 = vpop.f32.mrf.mxu1 }
 0xe87   :  { %v4659_v29 = vadd.f32 %v4951_v32, %v4658_v14 }
 0xe8c   :  { %v4678_v51 = vpop.f32.mrf.mxu0 }
 0xe8d   :  { %v4679_v49 = vadd.f32 %v4678_v51, %v4659_v29 }
 0xe8f   :  { %v4681_v62 = vmax.f32 %v4679_v49, 0.0 }
 0xe91   :  { %4718 = vmatmul.f32.vlgmr.msra.gmra.mxu3 %v4681_v62 }
 0xf14   :  { %v4719_v18 = vpop.f32.mrf.mxu3 }
 0xf15   :  { %v4720_v56 = vadd.f32 %v4952_v36, %v4719_v18 }
 0xf17   :  { %4723 = vst.msk [vmem:[%s6324_s18] sm:$0x3] %vm4722_vm4, %v4720_v56 }
 0xf18   :  { %4728 = vsyncpa [#allocation4], 1 }
 0xf19   :  { %4729 = vsyncpa [#allocation6], 1 }
 0xf1a   :  { %4730 = vsyncpa [#allocation9], 1 }
 0xf1b   :  { %4731 = vsyncpa [#allocation12], 1 }
 0xf1c   :  { %4732 = vsyncpa [#allocation15], 1 }
 0xf1d   :  { %4733 = vsyncpa [#allocation18], 1 }

</bundles_post_ra>
